<compile_context>
chip_gen: v7x
topology: tpu7x:2x2x1
jax: 0.10.0
libtpu: 0.0.40
codegen_flags: <defaults>
</compile_context>

<pallas_src>
import functools

import jax
import jax.numpy as jnp
from jax import lax
from jax.experimental import pallas as pl
from jax.experimental.pallas import tpu as pltpu


def _round_up(n, m):
    return ((n + m - 1) // m) * m


def _pad_to(a, shape):
    pads = [(0, s - d) for d, s in zip(a.shape, shape)]
    return jnp.pad(a, pads)


# ----------------------------------------------------------------------------
# Kernel: one time chunk per grid step.  Hidden state carried in h_scr.
# ----------------------------------------------------------------------------
def _gru_decoder_kernel(x_ref,        # (Bp, Tc, Dp)   bf16  streamed chunk of inputs
                        h0_ref,       # (Bp, Hp)       f32   initial hidden (pinned)
                        wih_ref,      # (Dp, 3Hp)      bf16  [r|z|n] input->gate (pinned)
                        whh_ref,      # (Hp, 3Hp)      bf16  [r|z|n] hidden->gate (pinned)
                        bgi_ref,      # (1, 3Hp)       f32   folded gi bias (pinned)
                        bhn_ref,      # (1, Hp)        f32   b_hh of the 'new' gate (pinned)
                        wp_ref,       # (Hp, Vp)       bf16  projection weights (pinned)
                        bp_ref,       # (1, Vp)        f32   projection bias (pinned)
                        logits_ref,   # (Bp, Tc, Vp)   f32   streamed logits chunk
                        hT_ref,       # (Bp, Hp)       f32   final hidden (pinned)
                        h_scr,        # VMEM (Bp, Hp)        carried hidden state
                        gi_scr,       # VMEM (Bp, Tc, 3Hp)   chunk input-gate pre-acts
                        hids_scr,     # VMEM (Bp, Tc, Hp)    chunk hidden states
                        *, t_valid):
    c = pl.program_id(0)
    Bp, Tc, Dp = x_ref.shape
    Hp = h0_ref.shape[1]

    # Seed the carried hidden state on the first chunk.
    @pl.when(c == 0)
    def _():
        h_scr[...] = h0_ref[...]

    # -- (1) chunk-batched input->gate matmul (no recurrent dep): M = Bp*Tc ---
    x = x_ref[...].reshape(Bp * Tc, Dp)                        # bf16, (b, t) row order
    gi = jnp.dot(x, wih_ref[...], preferred_element_type=jnp.float32)
    gi_scr[...] = (gi + bgi_ref[...]).reshape(Bp, Tc, 3 * Hp)  # bias added once/chunk

    # Loop invariants hoisted out of the recurrence (JAX does not CSE
    # broadcast_in_dim inside the loop).
    whh = whh_ref[...]                                         # (Hp, 3Hp) bf16
    bhn = jnp.broadcast_to(bhn_ref[...], (Bp, Hp))             # (Bp, Hp) f32

    # -- (2) sequential GRU recurrence; h carried in vregs (fori_loop carry) --
    # TODO(synk): pltpu.matmul_push_rhs could keep W_hh resident in MXU staging
    #             registers across timesteps (advanced, v6e/v7x).
    def step(t, h):
        gi_t = gi_scr[:, pl.ds(t, 1), :].reshape(Bp, 3 * Hp)   # f32 gate pre-acts
        gh = jnp.dot(h.astype(jnp.bfloat16), whh,
                     preferred_element_type=jnp.float32)       # (Bp, 3Hp) f32
        # PyTorch GRU gate order: [reset, update, new]; gate math kept in f32.
        r = jax.nn.sigmoid(gi_t[:, 0:Hp] + gh[:, 0:Hp])
        z = jax.nn.sigmoid(gi_t[:, Hp:2 * Hp] + gh[:, Hp:2 * Hp])
        n = jnp.tanh(gi_t[:, 2 * Hp:] + r * (gh[:, 2 * Hp:] + bhn))
        h_new = (1.0 - z) * n + z * h
        if t_valid is not None:            # freeze h on padded tail timesteps
            h_new = jnp.where(c * Tc + t < t_valid, h_new, h)
        hids_scr[:, pl.ds(t, 1), :] = h_new.reshape(Bp, 1, Hp)
        return h_new

    h_last = lax.fori_loop(0, Tc, step, h_scr[...], unroll=True)
    h_scr[...] = h_last
    hT_ref[...] = h_last

    # -- (3) chunk-batched vocab projection: M = Bp*Tc, lane-dense store ------
    hids = hids_scr[...].astype(jnp.bfloat16).reshape(Bp * Tc, Hp)
    logits = jnp.dot(hids, wp_ref[...],
                     preferred_element_type=jnp.float32) + bp_ref[...]
    logits_ref[...] = logits.reshape(Bp, Tc, -1).astype(logits_ref.dtype)


# ----------------------------------------------------------------------------
# Wrapper: pad to lane/sublane-dense tiles, pack gate weights, call the kernel.
# ----------------------------------------------------------------------------
def rnn_decoder_forward(inputs, init_h, params, context=None, embedding=None,
                        t_chunk=None):
    """
    inputs : (B, T, input_size) embedded decoder inputs, or int32 token ids
             of shape (B, T) if `embedding` (vocab, input_size) is given.
    init_h : (B, hidden_size)
    params : (w_ih (3H, D), w_hh (3H, H), b_ih (3H,), b_hh (3H,),
              w_proj (V, H), b_proj (V,))        -- PyTorch layouts.
    Returns (decoded (B, T, V), h (1, B, H))  -- matching RNNDecoder.forward.
    """
    w_ih, w_hh, b_ih, b_hh, w_proj, b_proj = params

    if embedding is not None:
        inputs = jnp.take(embedding, inputs, axis=0)      # (B, T, D) gather
    # TODO(synk): training-mode dropout omitted (eval forward; F.dropout is identity).
    if context is not None:
        B_, T_, _ = inputs.shape
        ctx = jnp.broadcast_to(context[:, None, :], (B_, T_, context.shape[-1]))
        inputs = jnp.concatenate([inputs, ctx], axis=-1)

    B, T, D = inputs.shape
    H = init_h.shape[1]
    V = w_proj.shape[0]

    Bp = _round_up(max(B, 8), 8)
    Dp = _round_up(D, 128)
    Hp = _round_up(H, 128)
    Vp = _round_up(V, 128)

    if t_chunk is None:
        # Target MXU M-dim ~256 on the chunk-batched matmuls (v6e/v7x sweet spot;
        # >=128 also fills v5e's 128-wide MXU).
        t_chunk = _round_up(max(8, 256 // Bp), 8)
    t_chunk = min(t_chunk, _round_up(T, 8))
    T_pad = _round_up(T, t_chunk)
    num_chunks = T_pad // t_chunk

    # Pack [r|z|n] gate weights: per-gate pad to Hp so the kernel slices at
    # static 128-aligned offsets; transpose to (in, out) so y = x @ W; bf16 MXU.
    def pack_gate_w(w, in_pad):
        gates = jnp.split(w, 3, axis=0)                   # 3 x (H, in_dim)
        gates = [_pad_to(g.T, (in_pad, Hp)) for g in gates]
        return jnp.concatenate(gates, axis=1).astype(jnp.bfloat16)

    wih_p = pack_gate_w(w_ih, Dp)                         # (Dp, 3Hp) bf16
    whh_p = pack_gate_w(w_hh, Hp)                         # (Hp, 3Hp) bf16

    b_ir, b_iz, b_in = jnp.split(b_ih.astype(jnp.float32), 3)
    b_hr, b_hz, b_hn = jnp.split(b_hh.astype(jnp.float32), 3)
    # r/z gates see sigma(gi + gh), so their input/hidden biases fold; the 'new'
    # gate keeps b_ih_n in gi and b_hh_n inside the r*(...) term.
    bgi_p = jnp.concatenate([_pad_to(b_ir + b_hr, (Hp,)),
                             _pad_to(b_iz + b_hz, (Hp,)),
                             _pad_to(b_in, (Hp,))])[None, :]          # (1, 3Hp) f32
    bhn_p = _pad_to(b_hn, (Hp,))[None, :]                             # (1, Hp)  f32

    wp_p = _pad_to(w_proj.T.astype(jnp.float32), (Hp, Vp)).astype(jnp.bfloat16)
    bp_p = _pad_to(b_proj.astype(jnp.float32), (Vp,))[None, :]

    # Caller layouts kept: (B, T, D) in, (B, T, V) out -> no wrapper transposes.
    x_p = _pad_to(inputs.astype(jnp.float32), (Bp, T_pad, Dp)).astype(jnp.bfloat16)
    h0_p = _pad_to(init_h.astype(jnp.float32), (Bp, Hp))

    flops = int(2 * T_pad * Bp * (Dp * 3 * Hp + Hp * 3 * Hp + Hp * Vp))
    transcendentals = int(3 * T_pad * Bp * Hp)
    bytes_accessed = int(
        x_p.size * 2 + h0_p.size * 4
        + (wih_p.size + whh_p.size + wp_p.size) * 2
        + (bgi_p.size + bhn_p.size + bp_p.size) * 4
        + T_pad * Bp * Vp * 4 + Bp * Hp * 4)

    # VMEM budget: pinned weights + double-buffered x / logits chunk blocks +
    # scratches + transient headroom.  Cap at 64 MiB so it also fits v7x.
    vmem_need = int(
        (wih_p.size + whh_p.size + wp_p.size) * 2
        + (bgi_p.size + bhn_p.size + bp_p.size + h0_p.size) * 4
        + 2 * Bp * t_chunk * Dp * 2
        + 2 * Bp * t_chunk * Vp * 4
        + 2 * Bp * Hp * 4
        + Bp * t_chunk * 3 * Hp * 4
        + Bp * t_chunk * Hp * 4
        + Bp * t_chunk * (3 * Hp + Vp) * 4)
    vmem_limit = int(min(64 * 1024 * 1024, max(32 * 1024 * 1024, 2 * vmem_need)))

    kernel = functools.partial(_gru_decoder_kernel,
                               t_valid=T if T_pad != T else None)

    grid_spec = pltpu.PrefetchScalarGridSpec(
        num_scalar_prefetch=0,
        grid=(num_chunks,),
        in_specs=[
            pl.BlockSpec((Bp, t_chunk, Dp), lambda c: (0, c, 0)),   # x (streamed)
            pl.BlockSpec((Bp, Hp), lambda c: (0, 0)),               # h0 (pinned)
            pl.BlockSpec((Dp, 3 * Hp), lambda c: (0, 0)),           # W_ih (pinned)
            pl.BlockSpec((Hp, 3 * Hp), lambda c: (0, 0)),           # W_hh (pinned)
            pl.BlockSpec((1, 3 * Hp), lambda c: (0, 0)),            # folded gi bias
            pl.BlockSpec((1, Hp), lambda c: (0, 0)),                # b_hh (new gate)
            pl.BlockSpec((Hp, Vp), lambda c: (0, 0)),               # W_proj (pinned)
            pl.BlockSpec((1, Vp), lambda c: (0, 0)),                # b_proj
        ],
        out_specs=(
            pl.BlockSpec((Bp, t_chunk, Vp), lambda c: (0, c, 0)),   # logits (streamed)
            pl.BlockSpec((Bp, Hp), lambda c: (0, 0)),               # h_T (pinned)
        ),
        scratch_shapes=[
            pltpu.VMEM((Bp, Hp), jnp.float32),                      # carried hidden
            pltpu.VMEM((Bp, t_chunk, 3 * Hp), jnp.float32),         # chunk input gates
            pltpu.VMEM((Bp, t_chunk, Hp), jnp.float32),             # chunk hidden states
        ],
    )

    logits_p, hT_p = pl.pallas_call(
        kernel,
        out_shape=(jax.ShapeDtypeStruct((Bp, T_pad, Vp), jnp.float32),
                   jax.ShapeDtypeStruct((Bp, Hp), jnp.float32)),
        grid_spec=grid_spec,
        compiler_params=pltpu.CompilerParams(
            dimension_semantics=("arbitrary",),       # sequential recurrence
            vmem_limit_bytes=vmem_limit),
        cost_estimate=pl.CostEstimate(flops=flops,
                                      transcendentals=transcendentals,
                                      bytes_accessed=bytes_accessed),
    )(x_p, h0_p, wih_p, whh_p, bgi_p, bhn_p, wp_p, bp_p)

    decoded = logits_p[:B, :T, :V]            # already (B, T, V): no transpose
    h_final = hT_p[:B, :H][None]              # (1, B, H)
    return decoded, h_final


# ----------------------------------------------------------------------------
# Pure-JAX reference (PyTorch nn.GRU + nn.Linear semantics) for checking.
# ----------------------------------------------------------------------------
def rnn_decoder_ref(inputs, init_h, params):
    w_ih, w_hh, b_ih, b_hh, w_proj, b_proj = params

    def cell(h, x_t):
        gi = x_t @ w_ih.T + b_ih
        gh = h @ w_hh.T + b_hh
        i_r, i_z, i_n = jnp.split(gi, 3, axis=-1)
        h_r, h_z, h_n = jnp.split(gh, 3, axis=-1)
        r = jax.nn.sigmoid(i_r + h_r)
        z = jax.nn.sigmoid(i_z + h_z)
        n = jnp.tanh(i_n + r * h_n)
        h_new = (1.0 - z) * n + z * h
        return h_new, h_new

    h_T, hids = lax.scan(cell, init_h, jnp.swapaxes(inputs, 0, 1))
    hids = jnp.swapaxes(hids, 0, 1)                       # (B, T, H)
    decoded = hids @ w_proj.T + b_proj
    return decoded, h_T[None]


if __name__ == "__main__":
    key = jax.random.PRNGKey(0)
    ks = jax.random.split(key, 8)

    batch, seq = 2, 20
    input_size, hidden_size, vocab_size = 32, 48, 100

    # Already-embedded decoder inputs (embedder=None case of RNNDecoder).
    inputs = jax.random.normal(ks[0], (batch, seq, input_size), jnp.float32)
    init_h = jax.random.normal(ks[1], (batch, hidden_size), jnp.float32)

    w_ih = 0.1 * jax.random.normal(ks[2], (3 * hidden_size, input_size), jnp.float32)
    w_hh = 0.1 * jax.random.normal(ks[3], (3 * hidden_size, hidden_size), jnp.float32)
    b_ih = 0.1 * jax.random.normal(ks[4], (3 * hidden_size,), jnp.float32)
    b_hh = 0.1 * jax.random.normal(ks[5], (3 * hidden_size,), jnp.float32)
    w_proj = jax.random.uniform(ks[6], (vocab_size, hidden_size), jnp.float32,
                                minval=-0.1, maxval=0.1)
    b_proj = 0.01 * jax.random.normal(ks[7], (vocab_size,), jnp.float32)
    params = (w_ih, w_hh, b_ih, b_hh, w_proj, b_proj)

    # t_chunk=8 -> grid=(3,) time chunks; the last chunk exercises the pad mask.
    decoded, h_out = rnn_decoder_forward(inputs, init_h, params, t_chunk=8)
    decoded = jax.block_until_ready(decoded)
    h_out = jax.block_until_ready(h_out)

    dec_ref, h_ref = rnn_decoder_ref(inputs, init_h, params)

    assert decoded.shape == (batch, seq, vocab_size)
    assert h_out.shape == (1, batch, hidden_size)
    # bf16 MXU operands with f32 accumulation -> loosened tolerance vs f32 reference.
    assert jnp.allclose(decoded, dec_ref, atol=5e-2, rtol=5e-2), "logits mismatch"
    assert jnp.allclose(h_out, h_ref, atol=5e-2, rtol=5e-2), "hidden-state mismatch"

    print("KERNEL_OK")
</pallas_src>

<mosaic_0001>
module attributes {stable_mosaic.version = 11 : i64} {
  func.func @_gru_decoder_kernel(%arg0: i32, %arg1: memref<8x8x128xbf16, #tpu.memory_space<vmem>>, %arg2: memref<8x128xf32, #tpu.memory_space<vmem>>, %arg3: memref<128x384xbf16, #tpu.memory_space<vmem>>, %arg4: memref<128x384xbf16, #tpu.memory_space<vmem>>, %arg5: memref<1x384xf32, #tpu.memory_space<vmem>>, %arg6: memref<1x128xf32, #tpu.memory_space<vmem>>, %arg7: memref<128x128xbf16, #tpu.memory_space<vmem>>, %arg8: memref<1x128xf32, #tpu.memory_space<vmem>>, %arg9: memref<8x8x128xf32, #tpu.memory_space<vmem>>, %arg10: memref<8x128xf32, #tpu.memory_space<vmem>>, %arg11: memref<8x128xf32, #tpu.memory_space<vmem>>, %arg12: memref<8x8x384xf32, #tpu.memory_space<vmem>>, %arg13: memref<8x8x128xf32, #tpu.memory_space<vmem>>) attributes {dimension_semantics = [#tpu.dimension_semantics<arbitrary>], iteration_bounds = array<i64: 3>, scalar_prefetch = 0 : i64, scratch_operands = 3 : i64, tpu.core_type = #tpu.core_type<tc>, window_params = [{transform_indices = @transform_0, window_bounds = array<i64: 8, 8, 128>}, {pipeline_mode = #tpu.pipeline_mode<synchronous>, transform_indices = @transform_1, window_bounds = array<i64: 8, 128>}, {pipeline_mode = #tpu.pipeline_mode<synchronous>, transform_indices = @transform_2, window_bounds = array<i64: 128, 384>}, {pipeline_mode = #tpu.pipeline_mode<synchronous>, transform_indices = @transform_3, window_bounds = array<i64: 128, 384>}, {pipeline_mode = #tpu.pipeline_mode<synchronous>, transform_indices = @transform_4, window_bounds = array<i64: 1, 384>}, {pipeline_mode = #tpu.pipeline_mode<synchronous>, transform_indices = @transform_5, window_bounds = array<i64: 1, 128>}, {pipeline_mode = #tpu.pipeline_mode<synchronous>, transform_indices = @transform_6, window_bounds = array<i64: 128, 128>}, {pipeline_mode = #tpu.pipeline_mode<synchronous>, transform_indices = @transform_7, window_bounds = array<i64: 1, 128>}, {transform_indices = @transform_8, window_bounds = array<i64: 8, 8, 128>}, {pipeline_mode = #tpu.pipeline_mode<synchronous>, transform_indices = @transform_9, window_bounds = array<i64: 8, 128>}]} {
    %c0_i32 = arith.constant 0 : i32
    %0 = arith.cmpi eq, %arg0, %c0_i32 : i32
    %1 = arith.extui %0 : i1 to i32
    %c0_i32_0 = arith.constant 0 : i32
    %2 = arith.cmpi ne, %1, %c0_i32_0 : i32
    scf.if %2 {
      %c0_111 = arith.constant 0 : index
      %c0_112 = arith.constant 0 : index
      %341 = vector.load %arg2[%c0_111, %c0_112] : memref<8x128xf32, #tpu.memory_space<vmem>>, vector<8x128xf32>
      %c0_113 = arith.constant 0 : index
      %c0_114 = arith.constant 0 : index
      %342 = vector.load %arg11[%c0_113, %c0_114] : memref<8x128xf32, #tpu.memory_space<vmem>>, vector<8x128xf32>
      tpu.vector_store %arg11[%c0_113, %c0_114], %341 {strides = array<i32>} : memref<8x128xf32, #tpu.memory_space<vmem>>, vector<8x128xf32>,
    } else {
    }
    %c0 = arith.constant 0 : index
    %c0_1 = arith.constant 0 : index
    %c0_2 = arith.constant 0 : index
    %3 = vector.load %arg1[%c0, %c0_1, %c0_2] : memref<8x8x128xbf16, #tpu.memory_space<vmem>>, vector<8x8x128xbf16>
    %4 = vector.shape_cast %3 : vector<8x8x128xbf16> to vector<64x128xbf16>
    %c0_3 = arith.constant 0 : index
    %c0_4 = arith.constant 0 : index
    %5 = vector.load %arg3[%c0_3, %c0_4] : memref<128x384xbf16, #tpu.memory_space<vmem>>, vector<128x384xbf16>
    %cst = arith.constant dense<0.000000e+00> : vector<64x384xf32>
    %6 = tpu.matmul %4, %5, %cst {dimension_numbers = #tpu.dot_dimension_numbers<[1], [0], [0], [1], [0, 0, 1, 1], [], []>} : vector<64x128xbf16>, vector<128x384xbf16>, vector<64x384xf32> -> vector<64x384xf32>
    %c0_5 = arith.constant 0 : index
    %c0_6 = arith.constant 0 : index
    %7 = vector.load %arg5[%c0_5, %c0_6] : memref<1x384xf32, #tpu.memory_space<vmem>>, vector<1x384xf32>
    %8 = vector.broadcast %7 : vector<1x384xf32> to vector<64x384xf32>
    %9 = arith.addf %6, %8 : vector<64x384xf32>
    %10 = vector.shape_cast %9 : vector<64x384xf32> to vector<8x8x384xf32>
    %c0_7 = arith.constant 0 : index
    %c0_8 = arith.constant 0 : index
    %c0_9 = arith.constant 0 : index
    %11 = vector.load %arg12[%c0_7, %c0_8, %c0_9] : memref<8x8x384xf32, #tpu.memory_space<vmem>>, vector<8x8x384xf32>
    tpu.vector_store %arg12[%c0_7, %c0_8, %c0_9], %10 {strides = array<i32>} : memref<8x8x384xf32, #tpu.memory_space<vmem>>, vector<8x8x384xf32>,
    %c0_10 = arith.constant 0 : index
    %c0_11 = arith.constant 0 : index
    %12 = vector.load %arg4[%c0_10, %c0_11] : memref<128x384xbf16, #tpu.memory_space<vmem>>, vector<128x384xbf16>
    %c0_12 = arith.constant 0 : index
    %c0_13 = arith.constant 0 : index
    %13 = vector.load %arg6[%c0_12, %c0_13] : memref<1x128xf32, #tpu.memory_space<vmem>>, vector<1x128xf32>
    %14 = vector.shape_cast %13 : vector<1x128xf32> to vector<1x128xf32>
    %15 = vector.broadcast %14 : vector<1x128xf32> to vector<8x128xf32>
    %c0_14 = arith.constant 0 : index
    %c0_15 = arith.constant 0 : index
    %16 = vector.load %arg11[%c0_14, %c0_15] : memref<8x128xf32, #tpu.memory_space<vmem>>, vector<8x128xf32>
    %c0_i32_16 = arith.constant 0 : i32
    %c0_17 = arith.constant 0 : index
    %17 = arith.index_cast %c0_i32_16 : i32 to index
    %c0_18 = arith.constant 0 : index
    %18 = vector.load %arg12[%c0_17, %17, %c0_18] : memref<8x8x384xf32, #tpu.memory_space<vmem>>, vector<8x1x384xf32>
    %19 = vector.shape_cast %18 : vector<8x1x384xf32> to vector<8x384xf32>
    %20 = arith.truncf %16 : vector<8x128xf32> to vector<8x128xbf16>
    %cst_19 = arith.constant dense<0.000000e+00> : vector<8x384xf32>
    %21 = tpu.matmul %20, %12, %cst_19 {dimension_numbers = #tpu.dot_dimension_numbers<[1], [0], [0], [1], [0, 0, 1, 1], [], []>} : vector<8x128xbf16>, vector<128x384xbf16>, vector<8x384xf32> -> vector<8x384xf32>
    %22 = vector.extract_strided_slice %19 {offsets = [0, 0], sizes = [8, 128], strides = [1, 1]} : vector<8x384xf32> to vector<8x128xf32>
    %23 = vector.extract_strided_slice %21 {offsets = [0, 0], sizes = [8, 128], strides = [1, 1]} : vector<8x384xf32> to vector<8x128xf32>
    %24 = arith.addf %22, %23 : vector<8x128xf32>
    %25 = arith.negf %24 : vector<8x128xf32>
    %26 = math.exp %25 : vector<8x128xf32>
    %cst_20 = arith.constant 1.000000e+00 : f32
    %27 = vector.broadcast %cst_20 : f32 to vector<8x128xf32>
    %28 = arith.addf %27, %26 : vector<8x128xf32>
    %29 = arith.divf %27, %28 : vector<8x128xf32>
    %30 = vector.extract_strided_slice %19 {offsets = [0, 128], sizes = [8, 128], strides = [1, 1]} : vector<8x384xf32> to vector<8x128xf32>
    %31 = vector.extract_strided_slice %21 {offsets = [0, 128], sizes = [8, 128], strides = [1, 1]} : vector<8x384xf32> to vector<8x128xf32>
    %32 = arith.addf %30, %31 : vector<8x128xf32>
    %33 = arith.negf %32 : vector<8x128xf32>
    %34 = math.exp %33 : vector<8x128xf32>
    %cst_21 = arith.constant 1.000000e+00 : f32
    %35 = vector.broadcast %cst_21 : f32 to vector<8x128xf32>
    %36 = arith.addf %35, %34 : vector<8x128xf32>
    %37 = arith.divf %35, %36 : vector<8x128xf32>
    %38 = vector.extract_strided_slice %19 {offsets = [0, 256], sizes = [8, 128], strides = [1, 1]} : vector<8x384xf32> to vector<8x128xf32>
    %39 = vector.extract_strided_slice %21 {offsets = [0, 256], sizes = [8, 128], strides = [1, 1]} : vector<8x384xf32> to vector<8x128xf32>
    %40 = arith.addf %39, %15 : vector<8x128xf32>
    %41 = arith.mulf %29, %40 : vector<8x128xf32>
    %42 = arith.addf %38, %41 : vector<8x128xf32>
    %43 = math.tanh %42 : vector<8x128xf32>
    %cst_22 = arith.constant 1.000000e+00 : f32
    %44 = vector.broadcast %cst_22 : f32 to vector<8x128xf32>
    %45 = arith.subf %44, %37 : vector<8x128xf32>
    %46 = arith.mulf %45, %43 : vector<8x128xf32>
    %47 = arith.mulf %37, %16 : vector<8x128xf32>
    %48 = arith.addf %46, %47 : vector<8x128xf32>
    %c8_i32 = arith.constant 8 : i32
    %49 = arith.muli %arg0, %c8_i32 : i32
    %50 = arith.addi %49, %c0_i32_16 : i32
    %c20_i32 = arith.constant 20 : i32
    %51 = arith.cmpi slt, %50, %c20_i32 : i32
    %52 = arith.select %51, %48, %16 : vector<8x128xf32>
    %53 = vector.shape_cast %52 : vector<8x128xf32> to vector<8x1x128xf32>
    %c0_23 = arith.constant 0 : index
    %54 = arith.index_cast %c0_i32_16 : i32 to index
    %c0_24 = arith.constant 0 : index
    %55 = vector.load %arg13[%c0_23, %54, %c0_24] : memref<8x8x128xf32, #tpu.memory_space<vmem>>, vector<8x1x128xf32>
    tpu.vector_store %arg13[%c0_23, %54, %c0_24], %53 {strides = array<i32>} : memref<8x8x128xf32, #tpu.memory_space<vmem>>, vector<8x1x128xf32>,
    %c1_i32 = arith.constant 1 : i32
    %c0_25 = arith.constant 0 : index
    %56 = arith.index_cast %c1_i32 : i32 to index
    %c0_26 = arith.constant 0 : index
    %57 = vector.load %arg12[%c0_25, %56, %c0_26] : memref<8x8x384xf32, #tpu.memory_space<vmem>>, vector<8x1x384xf32>
    %58 = vector.shape_cast %57 : vector<8x1x384xf32> to vector<8x384xf32>
    %59 = arith.truncf %52 : vector<8x128xf32> to vector<8x128xbf16>
    %cst_27 = arith.constant dense<0.000000e+00> : vector<8x384xf32>
    %60 = tpu.matmul %59, %12, %cst_27 {dimension_numbers = #tpu.dot_dimension_numbers<[1], [0], [0], [1], [0, 0, 1, 1], [], []>} : vector<8x128xbf16>, vector<128x384xbf16>, vector<8x384xf32> -> vector<8x384xf32>
    %61 = vector.extract_strided_slice %58 {offsets = [0, 0], sizes = [8, 128], strides = [1, 1]} : vector<8x384xf32> to vector<8x128xf32>
    %62 = vector.extract_strided_slice %60 {offsets = [0, 0], sizes = [8, 128], strides = [1, 1]} : vector<8x384xf32> to vector<8x128xf32>
    %63 = arith.addf %61, %62 : vector<8x128xf32>
    %64 = arith.negf %63 : vector<8x128xf32>
    %65 = math.exp %64 : vector<8x128xf32>
    %cst_28 = arith.constant 1.000000e+00 : f32
    %66 = vector.broadcast %cst_28 : f32 to vector<8x128xf32>
    %67 = arith.addf %66, %65 : vector<8x128xf32>
    %68 = arith.divf %66, %67 : vector<8x128xf32>
    %69 = vector.extract_strided_slice %58 {offsets = [0, 128], sizes = [8, 128], strides = [1, 1]} : vector<8x384xf32> to vector<8x128xf32>
    %70 = vector.extract_strided_slice %60 {offsets = [0, 128], sizes = [8, 128], strides = [1, 1]} : vector<8x384xf32> to vector<8x128xf32>
    %71 = arith.addf %69, %70 : vector<8x128xf32>
    %72 = arith.negf %71 : vector<8x128xf32>
    %73 = math.exp %72 : vector<8x128xf32>
    %cst_29 = arith.constant 1.000000e+00 : f32
    %74 = vector.broadcast %cst_29 : f32 to vector<8x128xf32>
    %75 = arith.addf %74, %73 : vector<8x128xf32>
    %76 = arith.divf %74, %75 : vector<8x128xf32>
    %77 = vector.extract_strided_slice %58 {offsets = [0, 256], sizes = [8, 128], strides = [1, 1]} : vector<8x384xf32> to vector<8x128xf32>
    %78 = vector.extract_strided_slice %60 {offsets = [0, 256], sizes = [8, 128], strides = [1, 1]} : vector<8x384xf32> to vector<8x128xf32>
    %79 = arith.addf %78, %15 : vector<8x128xf32>
    %80 = arith.mulf %68, %79 : vector<8x128xf32>
    %81 = arith.addf %77, %80 : vector<8x128xf32>
    %82 = math.tanh %81 : vector<8x128xf32>
    %cst_30 = arith.constant 1.000000e+00 : f32
    %83 = vector.broadcast %cst_30 : f32 to vector<8x128xf32>
    %84 = arith.subf %83, %76 : vector<8x128xf32>
    %85 = arith.mulf %84, %82 : vector<8x128xf32>
    %86 = arith.mulf %76, %52 : vector<8x128xf32>
    %87 = arith.addf %85, %86 : vector<8x128xf32>
    %c8_i32_31 = arith.constant 8 : i32
    %88 = arith.muli %arg0, %c8_i32_31 : i32
    %89 = arith.addi %88, %c1_i32 : i32
    %c20_i32_32 = arith.constant 20 : i32
    %90 = arith.cmpi slt, %89, %c20_i32_32 : i32
    %91 = arith.select %90, %87, %52 : vector<8x128xf32>
    %92 = vector.shape_cast %91 : vector<8x128xf32> to vector<8x1x128xf32>
    %c0_33 = arith.constant 0 : index
    %93 = arith.index_cast %c1_i32 : i32 to index
    %c0_34 = arith.constant 0 : index
    %94 = vector.load %arg13[%c0_33, %93, %c0_34] : memref<8x8x128xf32, #tpu.memory_space<vmem>>, vector<8x1x128xf32>
    tpu.vector_store %arg13[%c0_33, %93, %c0_34], %92 {strides = array<i32>} : memref<8x8x128xf32, #tpu.memory_space<vmem>>, vector<8x1x128xf32>,
    %c2_i32 = arith.constant 2 : i32
    %c0_35 = arith.constant 0 : index
    %95 = arith.index_cast %c2_i32 : i32 to index
    %c0_36 = arith.constant 0 : index
    %96 = vector.load %arg12[%c0_35, %95, %c0_36] : memref<8x8x384xf32, #tpu.memory_space<vmem>>, vector<8x1x384xf32>
    %97 = vector.shape_cast %96 : vector<8x1x384xf32> to vector<8x384xf32>
    %98 = arith.truncf %91 : vector<8x128xf32> to vector<8x128xbf16>
    %cst_37 = arith.constant dense<0.000000e+00> : vector<8x384xf32>
    %99 = tpu.matmul %98, %12, %cst_37 {dimension_numbers = #tpu.dot_dimension_numbers<[1], [0], [0], [1], [0, 0, 1, 1], [], []>} : vector<8x128xbf16>, vector<128x384xbf16>, vector<8x384xf32> -> vector<8x384xf32>
    %100 = vector.extract_strided_slice %97 {offsets = [0, 0], sizes = [8, 128], strides = [1, 1]} : vector<8x384xf32> to vector<8x128xf32>
    %101 = vector.extract_strided_slice %99 {offsets = [0, 0], sizes = [8, 128], strides = [1, 1]} : vector<8x384xf32> to vector<8x128xf32>
    %102 = arith.addf %100, %101 : vector<8x128xf32>
    %103 = arith.negf %102 : vector<8x128xf32>
    %104 = math.exp %103 : vector<8x128xf32>
    %cst_38 = arith.constant 1.000000e+00 : f32
    %105 = vector.broadcast %cst_38 : f32 to vector<8x128xf32>
    %106 = arith.addf %105, %104 : vector<8x128xf32>
    %107 = arith.divf %105, %106 : vector<8x128xf32>
    %108 = vector.extract_strided_slice %97 {offsets = [0, 128], sizes = [8, 128], strides = [1, 1]} : vector<8x384xf32> to vector<8x128xf32>
    %109 = vector.extract_strided_slice %99 {offsets = [0, 128], sizes = [8, 128], strides = [1, 1]} : vector<8x384xf32> to vector<8x128xf32>
    %110 = arith.addf %108, %109 : vector<8x128xf32>
    %111 = arith.negf %110 : vector<8x128xf32>
    %112 = math.exp %111 : vector<8x128xf32>
    %cst_39 = arith.constant 1.000000e+00 : f32
    %113 = vector.broadcast %cst_39 : f32 to vector<8x128xf32>
    %114 = arith.addf %113, %112 : vector<8x128xf32>
    %115 = arith.divf %113, %114 : vector<8x128xf32>
    %116 = vector.extract_strided_slice %97 {offsets = [0, 256], sizes = [8, 128], strides = [1, 1]} : vector<8x384xf32> to vector<8x128xf32>
    %117 = vector.extract_strided_slice %99 {offsets = [0, 256], sizes = [8, 128], strides = [1, 1]} : vector<8x384xf32> to vector<8x128xf32>
    %118 = arith.addf %117, %15 : vector<8x128xf32>
    %119 = arith.mulf %107, %118 : vector<8x128xf32>
    %120 = arith.addf %116, %119 : vector<8x128xf32>
    %121 = math.tanh %120 : vector<8x128xf32>
    %cst_40 = arith.constant 1.000000e+00 : f32
    %122 = vector.broadcast %cst_40 : f32 to vector<8x128xf32>
    %123 = arith.subf %122, %115 : vector<8x128xf32>
    %124 = arith.mulf %123, %121 : vector<8x128xf32>
    %125 = arith.mulf %115, %91 : vector<8x128xf32>
    %126 = arith.addf %124, %125 : vector<8x128xf32>
    %c8_i32_41 = arith.constant 8 : i32
    %127 = arith.muli %arg0, %c8_i32_41 : i32
    %128 = arith.addi %127, %c2_i32 : i32
    %c20_i32_42 = arith.constant 20 : i32
    %129 = arith.cmpi slt, %128, %c20_i32_42 : i32
    %130 = arith.select %129, %126, %91 : vector<8x128xf32>
    %131 = vector.shape_cast %130 : vector<8x128xf32> to vector<8x1x128xf32>
    %c0_43 = arith.constant 0 : index
    %132 = arith.index_cast %c2_i32 : i32 to index
    %c0_44 = arith.constant 0 : index
    %133 = vector.load %arg13[%c0_43, %132, %c0_44] : memref<8x8x128xf32, #tpu.memory_space<vmem>>, vector<8x1x128xf32>
    tpu.vector_store %arg13[%c0_43, %132, %c0_44], %131 {strides = array<i32>} : memref<8x8x128xf32, #tpu.memory_space<vmem>>, vector<8x1x128xf32>,
    %c3_i32 = arith.constant 3 : i32
    %c0_45 = arith.constant 0 : index
    %134 = arith.index_cast %c3_i32 : i32 to index
    %c0_46 = arith.constant 0 : index
    %135 = vector.load %arg12[%c0_45, %134, %c0_46] : memref<8x8x384xf32, #tpu.memory_space<vmem>>, vector<8x1x384xf32>
    %136 = vector.shape_cast %135 : vector<8x1x384xf32> to vector<8x384xf32>
    %137 = arith.truncf %130 : vector<8x128xf32> to vector<8x128xbf16>
    %cst_47 = arith.constant dense<0.000000e+00> : vector<8x384xf32>
    %138 = tpu.matmul %137, %12, %cst_47 {dimension_numbers = #tpu.dot_dimension_numbers<[1], [0], [0], [1], [0, 0, 1, 1], [], []>} : vector<8x128xbf16>, vector<128x384xbf16>, vector<8x384xf32> -> vector<8x384xf32>
    %139 = vector.extract_strided_slice %136 {offsets = [0, 0], sizes = [8, 128], strides = [1, 1]} : vector<8x384xf32> to vector<8x128xf32>
    %140 = vector.extract_strided_slice %138 {offsets = [0, 0], sizes = [8, 128], strides = [1, 1]} : vector<8x384xf32> to vector<8x128xf32>
    %141 = arith.addf %139, %140 : vector<8x128xf32>
    %142 = arith.negf %141 : vector<8x128xf32>
    %143 = math.exp %142 : vector<8x128xf32>
    %cst_48 = arith.constant 1.000000e+00 : f32
    %144 = vector.broadcast %cst_48 : f32 to vector<8x128xf32>
    %145 = arith.addf %144, %143 : vector<8x128xf32>
    %146 = arith.divf %144, %145 : vector<8x128xf32>
    %147 = vector.extract_strided_slice %136 {offsets = [0, 128], sizes = [8, 128], strides = [1, 1]} : vector<8x384xf32> to vector<8x128xf32>
    %148 = vector.extract_strided_slice %138 {offsets = [0, 128], sizes = [8, 128], strides = [1, 1]} : vector<8x384xf32> to vector<8x128xf32>
    %149 = arith.addf %147, %148 : vector<8x128xf32>
    %150 = arith.negf %149 : vector<8x128xf32>
    %151 = math.exp %150 : vector<8x128xf32>
    %cst_49 = arith.constant 1.000000e+00 : f32
    %152 = vector.broadcast %cst_49 : f32 to vector<8x128xf32>
    %153 = arith.addf %152, %151 : vector<8x128xf32>
    %154 = arith.divf %152, %153 : vector<8x128xf32>
    %155 = vector.extract_strided_slice %136 {offsets = [0, 256], sizes = [8, 128], strides = [1, 1]} : vector<8x384xf32> to vector<8x128xf32>
    %156 = vector.extract_strided_slice %138 {offsets = [0, 256], sizes = [8, 128], strides = [1, 1]} : vector<8x384xf32> to vector<8x128xf32>
    %157 = arith.addf %156, %15 : vector<8x128xf32>
    %158 = arith.mulf %146, %157 : vector<8x128xf32>
    %159 = arith.addf %155, %158 : vector<8x128xf32>
    %160 = math.tanh %159 : vector<8x128xf32>
    %cst_50 = arith.constant 1.000000e+00 : f32
    %161 = vector.broadcast %cst_50 : f32 to vector<8x128xf32>
    %162 = arith.subf %161, %154 : vector<8x128xf32>
    %163 = arith.mulf %162, %160 : vector<8x128xf32>
    %164 = arith.mulf %154, %130 : vector<8x128xf32>
    %165 = arith.addf %163, %164 : vector<8x128xf32>
    %c8_i32_51 = arith.constant 8 : i32
    %166 = arith.muli %arg0, %c8_i32_51 : i32
    %167 = arith.addi %166, %c3_i32 : i32
    %c20_i32_52 = arith.constant 20 : i32
    %168 = arith.cmpi slt, %167, %c20_i32_52 : i32
    %169 = arith.select %168, %165, %130 : vector<8x128xf32>
    %170 = vector.shape_cast %169 : vector<8x128xf32> to vector<8x1x128xf32>
    %c0_53 = arith.constant 0 : index
    %171 = arith.index_cast %c3_i32 : i32 to index
    %c0_54 = arith.constant 0 : index
    %172 = vector.load %arg13[%c0_53, %171, %c0_54] : memref<8x8x128xf32, #tpu.memory_space<vmem>>, vector<8x1x128xf32>
    tpu.vector_store %arg13[%c0_53, %171, %c0_54], %170 {strides = array<i32>} : memref<8x8x128xf32, #tpu.memory_space<vmem>>, vector<8x1x128xf32>,
    %c4_i32 = arith.constant 4 : i32
    %c0_55 = arith.constant 0 : index
    %173 = arith.index_cast %c4_i32 : i32 to index
    %c0_56 = arith.constant 0 : index
    %174 = vector.load %arg12[%c0_55, %173, %c0_56] : memref<8x8x384xf32, #tpu.memory_space<vmem>>, vector<8x1x384xf32>
    %175 = vector.shape_cast %174 : vector<8x1x384xf32> to vector<8x384xf32>
    %176 = arith.truncf %169 : vector<8x128xf32> to vector<8x128xbf16>
    %cst_57 = arith.constant dense<0.000000e+00> : vector<8x384xf32>
    %177 = tpu.matmul %176, %12, %cst_57 {dimension_numbers = #tpu.dot_dimension_numbers<[1], [0], [0], [1], [0, 0, 1, 1], [], []>} : vector<8x128xbf16>, vector<128x384xbf16>, vector<8x384xf32> -> vector<8x384xf32>
    %178 = vector.extract_strided_slice %175 {offsets = [0, 0], sizes = [8, 128], strides = [1, 1]} : vector<8x384xf32> to vector<8x128xf32>
    %179 = vector.extract_strided_slice %177 {offsets = [0, 0], sizes = [8, 128], strides = [1, 1]} : vector<8x384xf32> to vector<8x128xf32>
    %180 = arith.addf %178, %179 : vector<8x128xf32>
    %181 = arith.negf %180 : vector<8x128xf32>
    %182 = math.exp %181 : vector<8x128xf32>
    %cst_58 = arith.constant 1.000000e+00 : f32
    %183 = vector.broadcast %cst_58 : f32 to vector<8x128xf32>
    %184 = arith.addf %183, %182 : vector<8x128xf32>
    %185 = arith.divf %183, %184 : vector<8x128xf32>
    %186 = vector.extract_strided_slice %175 {offsets = [0, 128], sizes = [8, 128], strides = [1, 1]} : vector<8x384xf32> to vector<8x128xf32>
    %187 = vector.extract_strided_slice %177 {offsets = [0, 128], sizes = [8, 128], strides = [1, 1]} : vector<8x384xf32> to vector<8x128xf32>
    %188 = arith.addf %186, %187 : vector<8x128xf32>
    %189 = arith.negf %188 : vector<8x128xf32>
    %190 = math.exp %189 : vector<8x128xf32>
    %cst_59 = arith.constant 1.000000e+00 : f32
    %191 = vector.broadcast %cst_59 : f32 to vector<8x128xf32>
    %192 = arith.addf %191, %190 : vector<8x128xf32>
    %193 = arith.divf %191, %192 : vector<8x128xf32>
    %194 = vector.extract_strided_slice %175 {offsets = [0, 256], sizes = [8, 128], strides = [1, 1]} : vector<8x384xf32> to vector<8x128xf32>
    %195 = vector.extract_strided_slice %177 {offsets = [0, 256], sizes = [8, 128], strides = [1, 1]} : vector<8x384xf32> to vector<8x128xf32>
    %196 = arith.addf %195, %15 : vector<8x128xf32>
    %197 = arith.mulf %185, %196 : vector<8x128xf32>
    %198 = arith.addf %194, %197 : vector<8x128xf32>
    %199 = math.tanh %198 : vector<8x128xf32>
    %cst_60 = arith.constant 1.000000e+00 : f32
    %200 = vector.broadcast %cst_60 : f32 to vector<8x128xf32>
    %201 = arith.subf %200, %193 : vector<8x128xf32>
    %202 = arith.mulf %201, %199 : vector<8x128xf32>
    %203 = arith.mulf %193, %169 : vector<8x128xf32>
    %204 = arith.addf %202, %203 : vector<8x128xf32>
    %c8_i32_61 = arith.constant 8 : i32
    %205 = arith.muli %arg0, %c8_i32_61 : i32
    %206 = arith.addi %205, %c4_i32 : i32
    %c20_i32_62 = arith.constant 20 : i32
    %207 = arith.cmpi slt, %206, %c20_i32_62 : i32
    %208 = arith.select %207, %204, %169 : vector<8x128xf32>
    %209 = vector.shape_cast %208 : vector<8x128xf32> to vector<8x1x128xf32>
    %c0_63 = arith.constant 0 : index
    %210 = arith.index_cast %c4_i32 : i32 to index
    %c0_64 = arith.constant 0 : index
    %211 = vector.load %arg13[%c0_63, %210, %c0_64] : memref<8x8x128xf32, #tpu.memory_space<vmem>>, vector<8x1x128xf32>
    tpu.vector_store %arg13[%c0_63, %210, %c0_64], %209 {strides = array<i32>} : memref<8x8x128xf32, #tpu.memory_space<vmem>>, vector<8x1x128xf32>,
    %c5_i32 = arith.constant 5 : i32
    %c0_65 = arith.constant 0 : index
    %212 = arith.index_cast %c5_i32 : i32 to index
    %c0_66 = arith.constant 0 : index
    %213 = vector.load %arg12[%c0_65, %212, %c0_66] : memref<8x8x384xf32, #tpu.memory_space<vmem>>, vector<8x1x384xf32>
    %214 = vector.shape_cast %213 : vector<8x1x384xf32> to vector<8x384xf32>
    %215 = arith.truncf %208 : vector<8x128xf32> to vector<8x128xbf16>
    %cst_67 = arith.constant dense<0.000000e+00> : vector<8x384xf32>
    %216 = tpu.matmul %215, %12, %cst_67 {dimension_numbers = #tpu.dot_dimension_numbers<[1], [0], [0], [1], [0, 0, 1, 1], [], []>} : vector<8x128xbf16>, vector<128x384xbf16>, vector<8x384xf32> -> vector<8x384xf32>
    %217 = vector.extract_strided_slice %214 {offsets = [0, 0], sizes = [8, 128], strides = [1, 1]} : vector<8x384xf32> to vector<8x128xf32>
    %218 = vector.extract_strided_slice %216 {offsets = [0, 0], sizes = [8, 128], strides = [1, 1]} : vector<8x384xf32> to vector<8x128xf32>
    %219 = arith.addf %217, %218 : vector<8x128xf32>
    %220 = arith.negf %219 : vector<8x128xf32>
    %221 = math.exp %220 : vector<8x128xf32>
    %cst_68 = arith.constant 1.000000e+00 : f32
    %222 = vector.broadcast %cst_68 : f32 to vector<8x128xf32>
    %223 = arith.addf %222, %221 : vector<8x128xf32>
    %224 = arith.divf %222, %223 : vector<8x128xf32>
    %225 = vector.extract_strided_slice %214 {offsets = [0, 128], sizes = [8, 128], strides = [1, 1]} : vector<8x384xf32> to vector<8x128xf32>
    %226 = vector.extract_strided_slice %216 {offsets = [0, 128], sizes = [8, 128], strides = [1, 1]} : vector<8x384xf32> to vector<8x128xf32>
    %227 = arith.addf %225, %226 : vector<8x128xf32>
    %228 = arith.negf %227 : vector<8x128xf32>
    %229 = math.exp %228 : vector<8x128xf32>
    %cst_69 = arith.constant 1.000000e+00 : f32
    %230 = vector.broadcast %cst_69 : f32 to vector<8x128xf32>
    %231 = arith.addf %230, %229 : vector<8x128xf32>
    %232 = arith.divf %230, %231 : vector<8x128xf32>
    %233 = vector.extract_strided_slice %214 {offsets = [0, 256], sizes = [8, 128], strides = [1, 1]} : vector<8x384xf32> to vector<8x128xf32>
    %234 = vector.extract_strided_slice %216 {offsets = [0, 256], sizes = [8, 128], strides = [1, 1]} : vector<8x384xf32> to vector<8x128xf32>
    %235 = arith.addf %234, %15 : vector<8x128xf32>
    %236 = arith.mulf %224, %235 : vector<8x128xf32>
    %237 = arith.addf %233, %236 : vector<8x128xf32>
    %238 = math.tanh %237 : vector<8x128xf32>
    %cst_70 = arith.constant 1.000000e+00 : f32
    %239 = vector.broadcast %cst_70 : f32 to vector<8x128xf32>
    %240 = arith.subf %239, %232 : vector<8x128xf32>
    %241 = arith.mulf %240, %238 : vector<8x128xf32>
    %242 = arith.mulf %232, %208 : vector<8x128xf32>
    %243 = arith.addf %241, %242 : vector<8x128xf32>
    %c8_i32_71 = arith.constant 8 : i32
    %244 = arith.muli %arg0, %c8_i32_71 : i32
    %245 = arith.addi %244, %c5_i32 : i32
    %c20_i32_72 = arith.constant 20 : i32
    %246 = arith.cmpi slt, %245, %c20_i32_72 : i32
    %247 = arith.select %246, %243, %208 : vector<8x128xf32>
    %248 = vector.shape_cast %247 : vector<8x128xf32> to vector<8x1x128xf32>
    %c0_73 = arith.constant 0 : index
    %249 = arith.index_cast %c5_i32 : i32 to index
    %c0_74 = arith.constant 0 : index
    %250 = vector.load %arg13[%c0_73, %249, %c0_74] : memref<8x8x128xf32, #tpu.memory_space<vmem>>, vector<8x1x128xf32>
    tpu.vector_store %arg13[%c0_73, %249, %c0_74], %248 {strides = array<i32>} : memref<8x8x128xf32, #tpu.memory_space<vmem>>, vector<8x1x128xf32>,
    %c6_i32 = arith.constant 6 : i32
    %c0_75 = arith.constant 0 : index
    %251 = arith.index_cast %c6_i32 : i32 to index
    %c0_76 = arith.constant 0 : index
    %252 = vector.load %arg12[%c0_75, %251, %c0_76] : memref<8x8x384xf32, #tpu.memory_space<vmem>>, vector<8x1x384xf32>
    %253 = vector.shape_cast %252 : vector<8x1x384xf32> to vector<8x384xf32>
    %254 = arith.truncf %247 : vector<8x128xf32> to vector<8x128xbf16>
    %cst_77 = arith.constant dense<0.000000e+00> : vector<8x384xf32>
    %255 = tpu.matmul %254, %12, %cst_77 {dimension_numbers = #tpu.dot_dimension_numbers<[1], [0], [0], [1], [0, 0, 1, 1], [], []>} : vector<8x128xbf16>, vector<128x384xbf16>, vector<8x384xf32> -> vector<8x384xf32>
    %256 = vector.extract_strided_slice %253 {offsets = [0, 0], sizes = [8, 128], strides = [1, 1]} : vector<8x384xf32> to vector<8x128xf32>
    %257 = vector.extract_strided_slice %255 {offsets = [0, 0], sizes = [8, 128], strides = [1, 1]} : vector<8x384xf32> to vector<8x128xf32>
    %258 = arith.addf %256, %257 : vector<8x128xf32>
    %259 = arith.negf %258 : vector<8x128xf32>
    %260 = math.exp %259 : vector<8x128xf32>
    %cst_78 = arith.constant 1.000000e+00 : f32
    %261 = vector.broadcast %cst_78 : f32 to vector<8x128xf32>
    %262 = arith.addf %261, %260 : vector<8x128xf32>
    %263 = arith.divf %261, %262 : vector<8x128xf32>
    %264 = vector.extract_strided_slice %253 {offsets = [0, 128], sizes = [8, 128], strides = [1, 1]} : vector<8x384xf32> to vector<8x128xf32>
    %265 = vector.extract_strided_slice %255 {offsets = [0, 128], sizes = [8, 128], strides = [1, 1]} : vector<8x384xf32> to vector<8x128xf32>
    %266 = arith.addf %264, %265 : vector<8x128xf32>
    %267 = arith.negf %266 : vector<8x128xf32>
    %268 = math.exp %267 : vector<8x128xf32>
    %cst_79 = arith.constant 1.000000e+00 : f32
    %269 = vector.broadcast %cst_79 : f32 to vector<8x128xf32>
    %270 = arith.addf %269, %268 : vector<8x128xf32>
    %271 = arith.divf %269, %270 : vector<8x128xf32>
    %272 = vector.extract_strided_slice %253 {offsets = [0, 256], sizes = [8, 128], strides = [1, 1]} : vector<8x384xf32> to vector<8x128xf32>
    %273 = vector.extract_strided_slice %255 {offsets = [0, 256], sizes = [8, 128], strides = [1, 1]} : vector<8x384xf32> to vector<8x128xf32>
    %274 = arith.addf %273, %15 : vector<8x128xf32>
    %275 = arith.mulf %263, %274 : vector<8x128xf32>
    %276 = arith.addf %272, %275 : vector<8x128xf32>
    %277 = math.tanh %276 : vector<8x128xf32>
    %cst_80 = arith.constant 1.000000e+00 : f32
    %278 = vector.broadcast %cst_80 : f32 to vector<8x128xf32>
    %279 = arith.subf %278, %271 : vector<8x128xf32>
    %280 = arith.mulf %279, %277 : vector<8x128xf32>
    %281 = arith.mulf %271, %247 : vector<8x128xf32>
    %282 = arith.addf %280, %281 : vector<8x128xf32>
    %c8_i32_81 = arith.constant 8 : i32
    %283 = arith.muli %arg0, %c8_i32_81 : i32
    %284 = arith.addi %283, %c6_i32 : i32
    %c20_i32_82 = arith.constant 20 : i32
    %285 = arith.cmpi slt, %284, %c20_i32_82 : i32
    %286 = arith.select %285, %282, %247 : vector<8x128xf32>
    %287 = vector.shape_cast %286 : vector<8x128xf32> to vector<8x1x128xf32>
    %c0_83 = arith.constant 0 : index
    %288 = arith.index_cast %c6_i32 : i32 to index
    %c0_84 = arith.constant 0 : index
    %289 = vector.load %arg13[%c0_83, %288, %c0_84] : memref<8x8x128xf32, #tpu.memory_space<vmem>>, vector<8x1x128xf32>
    tpu.vector_store %arg13[%c0_83, %288, %c0_84], %287 {strides = array<i32>} : memref<8x8x128xf32, #tpu.memory_space<vmem>>, vector<8x1x128xf32>,
    %c7_i32 = arith.constant 7 : i32
    %c0_85 = arith.constant 0 : index
    %290 = arith.index_cast %c7_i32 : i32 to index
    %c0_86 = arith.constant 0 : index
    %291 = vector.load %arg12[%c0_85, %290, %c0_86] : memref<8x8x384xf32, #tpu.memory_space<vmem>>, vector<8x1x384xf32>
    %292 = vector.shape_cast %291 : vector<8x1x384xf32> to vector<8x384xf32>
    %293 = arith.truncf %286 : vector<8x128xf32> to vector<8x128xbf16>
    %cst_87 = arith.constant dense<0.000000e+00> : vector<8x384xf32>
    %294 = tpu.matmul %293, %12, %cst_87 {dimension_numbers = #tpu.dot_dimension_numbers<[1], [0], [0], [1], [0, 0, 1, 1], [], []>} : vector<8x128xbf16>, vector<128x384xbf16>, vector<8x384xf32> -> vector<8x384xf32>
    %295 = vector.extract_strided_slice %292 {offsets = [0, 0], sizes = [8, 128], strides = [1, 1]} : vector<8x384xf32> to vector<8x128xf32>
    %296 = vector.extract_strided_slice %294 {offsets = [0, 0], sizes = [8, 128], strides = [1, 1]} : vector<8x384xf32> to vector<8x128xf32>
    %297 = arith.addf %295, %296 : vector<8x128xf32>
    %298 = arith.negf %297 : vector<8x128xf32>
    %299 = math.exp %298 : vector<8x128xf32>
    %cst_88 = arith.constant 1.000000e+00 : f32
    %300 = vector.broadcast %cst_88 : f32 to vector<8x128xf32>
    %301 = arith.addf %300, %299 : vector<8x128xf32>
    %302 = arith.divf %300, %301 : vector<8x128xf32>
    %303 = vector.extract_strided_slice %292 {offsets = [0, 128], sizes = [8, 128], strides = [1, 1]} : vector<8x384xf32> to vector<8x128xf32>
    %304 = vector.extract_strided_slice %294 {offsets = [0, 128], sizes = [8, 128], strides = [1, 1]} : vector<8x384xf32> to vector<8x128xf32>
    %305 = arith.addf %303, %304 : vector<8x128xf32>
    %306 = arith.negf %305 : vector<8x128xf32>
    %307 = math.exp %306 : vector<8x128xf32>
    %cst_89 = arith.constant 1.000000e+00 : f32
    %308 = vector.broadcast %cst_89 : f32 to vector<8x128xf32>
    %309 = arith.addf %308, %307 : vector<8x128xf32>
    %310 = arith.divf %308, %309 : vector<8x128xf32>
    %311 = vector.extract_strided_slice %292 {offsets = [0, 256], sizes = [8, 128], strides = [1, 1]} : vector<8x384xf32> to vector<8x128xf32>
    %312 = vector.extract_strided_slice %294 {offsets = [0, 256], sizes = [8, 128], strides = [1, 1]} : vector<8x384xf32> to vector<8x128xf32>
    %313 = arith.addf %312, %15 : vector<8x128xf32>
    %314 = arith.mulf %302, %313 : vector<8x128xf32>
    %315 = arith.addf %311, %314 : vector<8x128xf32>
    %316 = math.tanh %315 : vector<8x128xf32>
    %cst_90 = arith.constant 1.000000e+00 : f32
    %317 = vector.broadcast %cst_90 : f32 to vector<8x128xf32>
    %318 = arith.subf %317, %310 : vector<8x128xf32>
    %319 = arith.mulf %318, %316 : vector<8x128xf32>
    %320 = arith.mulf %310, %286 : vector<8x128xf32>
    %321 = arith.addf %319, %320 : vector<8x128xf32>
    %c8_i32_91 = arith.constant 8 : i32
    %322 = arith.muli %arg0, %c8_i32_91 : i32
    %323 = arith.addi %322, %c7_i32 : i32
    %c20_i32_92 = arith.constant 20 : i32
    %324 = arith.cmpi slt, %323, %c20_i32_92 : i32
    %325 = arith.select %324, %321, %286 : vector<8x128xf32>
    %326 = vector.shape_cast %325 : vector<8x128xf32> to vector<8x1x128xf32>
    %c0_93 = arith.constant 0 : index
    %327 = arith.index_cast %c7_i32 : i32 to index
    %c0_94 = arith.constant 0 : index
    %328 = vector.load %arg13[%c0_93, %327, %c0_94] : memref<8x8x128xf32, #tpu.memory_space<vmem>>, vector<8x1x128xf32>
    tpu.vector_store %arg13[%c0_93, %327, %c0_94], %326 {strides = array<i32>} : memref<8x8x128xf32, #tpu.memory_space<vmem>>, vector<8x1x128xf32>,
    %c8_i32_95 = arith.constant 8 : i32
    %c0_96 = arith.constant 0 : index
    %c0_97 = arith.constant 0 : index
    %329 = vector.load %arg11[%c0_96, %c0_97] : memref<8x128xf32, #tpu.memory_space<vmem>>, vector<8x128xf32>
    tpu.vector_store %arg11[%c0_96, %c0_97], %325 {strides = array<i32>} : memref<8x128xf32, #tpu.memory_space<vmem>>, vector<8x128xf32>,
    %c0_98 = arith.constant 0 : index
    %c0_99 = arith.constant 0 : index
    %330 = vector.load %arg10[%c0_98, %c0_99] : memref<8x128xf32, #tpu.memory_space<vmem>>, vector<8x128xf32>
    tpu.vector_store %arg10[%c0_98, %c0_99], %325 {strides = array<i32>} : memref<8x128xf32, #tpu.memory_space<vmem>>, vector<8x128xf32>,
    %c0_100 = arith.constant 0 : index
    %c0_101 = arith.constant 0 : index
    %c0_102 = arith.constant 0 : index
    %331 = vector.load %arg13[%c0_100, %c0_101, %c0_102] : memref<8x8x128xf32, #tpu.memory_space<vmem>>, vector<8x8x128xf32>
    %332 = arith.truncf %331 : vector<8x8x128xf32> to vector<8x8x128xbf16>
    %333 = vector.shape_cast %332 : vector<8x8x128xbf16> to vector<64x128xbf16>
    %c0_103 = arith.constant 0 : index
    %c0_104 = arith.constant 0 : index
    %334 = vector.load %arg7[%c0_103, %c0_104] : memref<128x128xbf16, #tpu.memory_space<vmem>>, vector<128x128xbf16>
    %cst_105 = arith.constant dense<0.000000e+00> : vector<64x128xf32>
    %335 = tpu.matmul %333, %334, %cst_105 {dimension_numbers = #tpu.dot_dimension_numbers<[1], [0], [0], [1], [0, 0, 1, 1], [], []>} : vector<64x128xbf16>, vector<128x128xbf16>, vector<64x128xf32> -> vector<64x128xf32>
    %c0_106 = arith.constant 0 : index
    %c0_107 = arith.constant 0 : index
    %336 = vector.load %arg8[%c0_106, %c0_107] : memref<1x128xf32, #tpu.memory_space<vmem>>, vector<1x128xf32>
    %337 = vector.broadcast %336 : vector<1x128xf32> to vector<64x128xf32>
    %338 = arith.addf %335, %337 : vector<64x128xf32>
    %339 = vector.shape_cast %338 : vector<64x128xf32> to vector<8x8x128xf32>
    %c0_108 = arith.constant 0 : index
    %c0_109 = arith.constant 0 : index
    %c0_110 = arith.constant 0 : index
    %340 = vector.load %arg9[%c0_108, %c0_109, %c0_110] : memref<8x8x128xf32, #tpu.memory_space<vmem>>, vector<8x8x128xf32>
    tpu.vector_store %arg9[%c0_108, %c0_109, %c0_110], %339 {strides = array<i32>} : memref<8x8x128xf32, #tpu.memory_space<vmem>>, vector<8x8x128xf32>,
    return
  }
  func.func @transform_0(%arg0: i32) -> (i32, i32, i32) {
    %c0_i32 = arith.constant 0 : i32
    %c0_i32_0 = arith.constant 0 : i32
    %c0_i32_1 = arith.constant 0 : i32
    return %c0_i32, %arg0, %c0_i32_0 : i32, i32, i32
  }
  func.func @transform_1(%arg0: i32) -> (i32, i32) {
    %c0_i32 = arith.constant 0 : i32
    %c0_i32_0 = arith.constant 0 : i32
    %c0_i32_1 = arith.constant 0 : i32
    return %c0_i32, %c0_i32_0 : i32, i32
  }
  func.func @transform_2(%arg0: i32) -> (i32, i32) {
    %c0_i32 = arith.constant 0 : i32
    %c0_i32_0 = arith.constant 0 : i32
    %c0_i32_1 = arith.constant 0 : i32
    return %c0_i32, %c0_i32_0 : i32, i32
  }
  func.func @transform_3(%arg0: i32) -> (i32, i32) {
    %c0_i32 = arith.constant 0 : i32
    %c0_i32_0 = arith.constant 0 : i32
    %c0_i32_1 = arith.constant 0 : i32
    return %c0_i32, %c0_i32_0 : i32, i32
  }
  func.func @transform_4(%arg0: i32) -> (i32, i32) {
    %c0_i32 = arith.constant 0 : i32
    %c0_i32_0 = arith.constant 0 : i32
    %c0_i32_1 = arith.constant 0 : i32
    return %c0_i32, %c0_i32_0 : i32, i32
  }
  func.func @transform_5(%arg0: i32) -> (i32, i32) {
    %c0_i32 = arith.constant 0 : i32
    %c0_i32_0 = arith.constant 0 : i32
    %c0_i32_1 = arith.constant 0 : i32
    return %c0_i32, %c0_i32_0 : i32, i32
  }
  func.func @transform_6(%arg0: i32) -> (i32, i32) {
    %c0_i32 = arith.constant 0 : i32
    %c0_i32_0 = arith.constant 0 : i32
    %c0_i32_1 = arith.constant 0 : i32
    return %c0_i32, %c0_i32_0 : i32, i32
  }
  func.func @transform_7(%arg0: i32) -> (i32, i32) {
    %c0_i32 = arith.constant 0 : i32
    %c0_i32_0 = arith.constant 0 : i32
    %c0_i32_1 = arith.constant 0 : i32
    return %c0_i32, %c0_i32_0 : i32, i32
  }
  func.func @transform_8(%arg0: i32) -> (i32, i32, i32) {
    %c0_i32 = arith.constant 0 : i32
    %c0_i32_0 = arith.constant 0 : i32
    %c0_i32_1 = arith.constant 0 : i32
    return %c0_i32, %arg0, %c0_i32_0 : i32, i32, i32
  }
  func.func @transform_9(%arg0: i32) -> (i32, i32) {
    %c0_i32 = arith.constant 0 : i32
    %c0_i32_0 = arith.constant 0 : i32
    %c0_i32_1 = arith.constant 0 : i32
    return %c0_i32, %c0_i32_0 : i32, i32
  }
}

</mosaic_0001>

<bundles_post_ra>
// kernel: tpu_custom_call.1
= control target key start
LH: loop header
LB: loop body
LE: loop exit
PB: predicated region body
PF: predicated region fallthrough
CT: control target
= control target key end

     0   :  { %s9409_s0 = inlined_call_operand.hbm [shape: bf16[8,24,128], index: 0, kind: input, shape index: {}]   ;;  %s9410_s1 = inlined_call_operand.hbm [shape: f32[8,128], index: 1, kind: input, shape index: {}]   ;;  %s9411_s2 = inlined_call_operand.hbm [shape: bf16[128,384], index: 2, kind: input, shape index: {}]   ;;  %s9412_s3 = inlined_call_operand.hbm [shape: bf16[128,384], index: 3, kind: input, shape index: {}]   ;;  %s9413_s4 = inlined_call_operand.vmem [shape: f32[1,384], index: 4, kind: input, shape index: {}]   ;;  %s9414_s5 = inlined_call_operand.vmem [shape: f32[1,128], index: 5, kind: input, shape index: {}]   ;;  %s9415_s6 = inlined_call_operand.hbm [shape: bf16[128,128], index: 6, kind: input, shape index: {}]   ;;  %s9416_s7 = inlined_call_operand.vmem [shape: f32[1,128], index: 7, kind: input, shape index: {}]   ;;  %s9417_s8 = inlined_call_operand.hbm [shape: f32[8,24,128], index: 8, kind: output, shape index: {0}]   ;;  %s9418_s9 = inlined_call_operand.hbm [shape: f32[8,128], index: 9, kind: output, shape index: {1}]  }
   0x1   :  { %9434 = sst [smem:[#allocation26_spill]] %s9410_s1 }
   0x2   :  { %9435 = sst [smem:[#allocation27_spill]] %s9412_s3 }
   0x3   :  { %15 = vsyncpa [#allocation6], 0 }
   0x4   :  { %17 = vsyncpa [#allocation6 + $0x1], 0 }
   0x5   :  { %18 = vsyncpa [#allocation9], 0 }
   0x6   :  { %19 = vsyncpa [#allocation12], 0 }
   0x7   :  { %20 = vsyncpa [#allocation7], 0 }
   0x8   :  { %22 = vsyncpa [#allocation7 + $0x1], 0 }
   0x9   :  { %23 = vsyncpa [#allocation16], 0  ;;  %s7433_s30 = smov 0   ;;  %s7435_s10 = smov 0  }
   0xa   :  { %s7437_s11 = smov 0   ;;  %s7439_s12 = smov 0  }
   0xb LB: > { %s7454_s13 = sadd.s32 4294967295, %s7363_s12   ;;  %s5694_s14 = sadd.s32 4294967294, %s7363_s12   ;;  %s7363_s12 = sphi %s7439_s12, %s9487_s12   ;;  %s7359_s11 = sphi %s7437_s11, %s9486_s11   ;;  %s7355_s10 = sphi %s7435_s10, %s9485_s10   ;;  %s7351_s30 = sphi %s7433_s30, %s9484_s30  }
   0xc   : > { %p49_p0 = scmp.ne.s32.totalorder %s7355_s10, %s7351_s30  ;;  %p9419_p1 = scmp.eq.s32.totalorder %s7454_s13, 0 }
   0xd   : > { %p226_p3 = scmp.eq.s32.totalorder %s5694_s14, 2  ;;  %p5695_p5 = scmp.ge.s32.totalorder %s7363_s12, 1 }
   0xe   : > { %p7463_p4 = por %p9419_p1, %p49_p0  ;;  %p254_p7 = scmp.lt.s32.totalorder %s7363_s12, 4 }
   0xf   : > { %p7468_p6 = por %p226_p3, %p49_p0  ;;  %s7365_s18 = smov [#allocation8]  }
  0x10   : > { %s9436_s15 = scalar_select %p7463_p4, 1, 0 }
  0x11   : > { %s9437_s16 = scalar_select %p7468_p6, 1, 0 }
  0x12   : > { %p7474_p9 = pnand %p5695_p5, %p254_p7  ;;  %s267_s19 = sshll.u32 %s7365_s18, 4  ;;  %s268_s19 = int_to_ptr.vmem [resolvable:$true] %s267_s19 }
  0x13   : > { %9438 = sst [smem:[#allocation22_spill]] %s9437_s16  ;;  %s7366_s21 = smov [#allocation11]  }
  0x14   : > { %s9439_s17 = scalar_select %p7474_p9, 1, 0 }
  0x15   : > { %p6244_p10 = pneg %p7474_p9  ;;  %s290_s22 = sshll.u32 %s7366_s21, 4  ;;  %s7486_s22 = int_to_ptr.vmem [resolvable:$true] %s290_s22 }
  0x16   : > { %s7367_s23 = smov [#allocation10]   ;;  %s9441_s1 = sld [smem:[#allocation26_spill]] }
  0x17   : > { %p7482_p11 = pnand %p6244_p10, %p9419_p1  ;;  %s7488_s24 = sshll.u32 %s7367_s23, 4  ;;  %s278_s24 = int_to_ptr.vmem [resolvable:$true] %s7488_s24 }
  0x19   : > { %p7498_p13 = pneg %p7482_p11 }
  0x1c   : > { %s7117_s27 = scalar_lea.hbm %s9441_s1, 128 }
  0x1d   : > { %p7118_p12 = scmp.ne.s32.totalorder %s9441_s1, %s7117_s27  ;;  %p7124_p5 = scmp.lt.u32.totalorder %s7117_s27, %s9441_s1 }
  0x1f   : > { %p7120_p0 = pnand %p7498_p13, %p7118_p12 }
  0x21   : > { %p7121_p3 = pneg %p7120_p0 }
  0x23   : > { %p7126_p7 = pnand %p7124_p5, %p7121_p3 }
  0x25   : > { %7129 = shalt.err (!%p7126_p7)
}
  0x26   : > { %s7130_s23 = scalar_lea.vmem %s268_s19, 128  ;;  %p7138_p2 = scmp.lt.s32.totalorder %s268_s19, %s268_s19 }
  0x27   : > { %p7131_p10 = scmp.ne.s32.totalorder %s268_s19, %s7130_s23  ;;  %p7139_p6 = scmp.lt.s32.totalorder %s7130_s23, %s7130_s23 }
  0x29   : > { %p7133_p8 = pnand %p7131_p10, %p7498_p13  ;;  %p7140_p4 = por %p7139_p6, %p7138_p2 }
  0x2b   : > { %p7134_p1 = pneg %p7133_p8 }
  0x2d   : > { %p7141_p9 = pnand %p7140_p4, %p7134_p1 }
  0x2f   : > { %7144 = shalt.err (!%p7141_p9)
}
  0x30   : > { %6247 = dma.hbm_to_vmem [thread:$0]  (!%p7482_p11), %s9441_s1, 128, %s268_s19, [#allocation9]  }
  0x31   : > { %s9443_s3 = sld [smem:[#allocation27_spill]] }
  0x37   : > { %s7145_s29 = scalar_lea.hbm %s9443_s3, 3072 }
  0x38   : > { %p7146_p8 = scmp.ne.s32.totalorder %s9443_s3, %s7145_s29  ;;  %p7152_p1 = scmp.lt.u32.totalorder %s7145_s29, %s9443_s3 }
  0x3a   : > { %p7148_p12 = pnand %p7146_p8, %p7498_p13 }
  0x3c   : > { %p7149_p2 = pneg %p7148_p12 }
  0x3e   : > { %p7154_p4 = pnand %p7152_p1, %p7149_p2 }
  0x40   : > { %7157 = shalt.err (!%p7154_p4)
}
  0x41   : > { %s7158_s19 = scalar_lea.vmem %s7486_s22, 3072  ;;  %p7166_p3 = scmp.lt.s32.totalorder %s7486_s22, %s7486_s22 }
  0x42   : > { %p7159_p6 = scmp.ne.s32.totalorder %s7486_s22, %s7158_s19  ;;  %p7167_p5 = scmp.lt.s32.totalorder %s7158_s19, %s7158_s19 }
  0x44   : > { %p7161_p9 = pnand %p7159_p6, %p7498_p13  ;;  %p7168_p7 = por %p7167_p5, %p7166_p3 }
  0x46   : > { %p7162_p0 = pneg %p7161_p9 }
  0x48   : > { %p7169_p10 = pnand %p7168_p7, %p7162_p0 }
  0x4a   : > { %7172 = shalt.err (!%p7169_p10)
}
  0x4b   : > { %s9423_s25 = smov 192   ;;  %s7369_s16 = smov 12  }
  0x4c   : > { %6253 = dma.hbm_to_vmem [thread:$0]  (!%p7482_p11), %s9443_s3, 3072, %s7486_s22, [#allocation12], %s9423_s25, %s9423_s25, %s7369_s16  }
  0x4d   : > { %s7173_s18 = scalar_lea.hbm %s9411_s2, 3072 }
  0x4e   : > { %p7174_p8 = scmp.ne.s32.totalorder %s9411_s2, %s7173_s18  ;;  %p7180_p1 = scmp.lt.u32.totalorder %s7173_s18, %s9411_s2 }
  0x50   : > { %p7176_p12 = pnand %p7174_p8, %p7498_p13 }
  0x52   : > { %p7177_p2 = pneg %p7176_p12 }
  0x54   : > { %p7182_p4 = pnand %p7180_p1, %p7177_p2 }
  0x56   : > { %7185 = shalt.err (!%p7182_p4)
}
  0x57   : > { %s7186_s26 = scalar_lea.vmem %s278_s24, 3072  ;;  %p7194_p3 = scmp.lt.s32.totalorder %s278_s24, %s278_s24 }
  0x58   : > { %p7187_p6 = scmp.ne.s32.totalorder %s278_s24, %s7186_s26  ;;  %p7195_p5 = scmp.lt.s32.totalorder %s7186_s26, %s7186_s26 }
  0x5a   : > { %p7189_p9 = pnand %p7187_p6, %p7498_p13  ;;  %p7196_p7 = por %p7195_p5, %p7194_p3 }
  0x5c   : > { %p7190_p0 = pneg %p7189_p9 }
  0x5e   : > { %p7197_p10 = pnand %p7196_p7, %p7190_p0 }
  0x60   : > { %7200 = shalt.err (!%p7197_p10)
}
  0x61   : > { %6250 = dma.hbm_to_vmem [thread:$0]  (!%p7482_p11), %s9411_s2, 3072, %s278_s24, [#allocation9], %s9423_s25, %s9423_s25, %s7369_s16  }
  0x62   : > { %s7370_s27 = smov [#allocation13]   ;;  %s7201_s21 = scalar_lea.hbm %s9415_s6, 1024 }
  0x63   : > { %s309_s28 = sshll.u32 %s7370_s27, 4  ;;  %p7202_p8 = scmp.ne.s32.totalorder %s9415_s6, %s7201_s21  ;;  %s310_s28 = int_to_ptr.vmem [resolvable:$true] %s309_s28 }
  0x64   : > { %p7208_p1 = scmp.lt.u32.totalorder %s7201_s21, %s9415_s6 }
  0x65   : > { %p7204_p12 = pnand %p7202_p8, %p7498_p13 }
  0x67   : > { %p7205_p2 = pneg %p7204_p12 }
  0x69   : > { %p7210_p4 = pnand %p7208_p1, %p7205_p2 }
  0x6b   : > { %7213 = shalt.err (!%p7210_p4)
}
  0x6c   : > { %s7214_s24 = scalar_lea.vmem %s310_s28, 1024  ;;  %p7222_p3 = scmp.lt.s32.totalorder %s310_s28, %s310_s28 }
  0x6d   : > { %p7215_p6 = scmp.ne.s32.totalorder %s310_s28, %s7214_s24  ;;  %p7223_p5 = scmp.lt.s32.totalorder %s7214_s24, %s7214_s24 }
  0x6f   : > { %p7217_p9 = pnand %p7215_p6, %p7498_p13  ;;  %p7224_p7 = por %p7223_p5, %p7222_p3 }
  0x71   : > { %p7218_p0 = pneg %p7217_p9 }
  0x73   : > { %p7225_p10 = pnand %p7224_p7, %p7218_p0 }
  0x75   : > { %7228 = shalt.err (!%p7225_p10)
}
  0x76   : > { %s7371_s16 = smov 64   ;;  %s7372_s3 = smov 4  }
  0x77   : > { %6256 = dma.hbm_to_vmem [thread:$0]  (!%p7482_p11), %s9415_s6, 1024, %s310_s28, [#allocation12], %s7371_s16, %s7371_s16, %s7372_s3  }
  0x78   : > { %s7582_s1 = sadd.s32 1, %s7363_s12   ;;  %s36_s29 = sadd.s32 1, %s7359_s11 }
  0x79   : > { %s33_s27 = ssub.s32 %s7363_s12, %s7582_s1  ;;  %p43_p8 = scmp.ne.s32.totalorder %s7359_s11, %s7355_s10 }
  0x7a   : > { %p34_p13 = scmp.eq.s32.totalorder %s33_s27, 0  ;;  %p44_p12 = scmp.eq.s32.totalorder %s7363_s12, 0 }
  0x7b   : > { %p9444_p1 = scmp.eq.s32.totalorder %s7454_s13, 2  ;;  %p6269_p6 = scmp.lt.s32.totalorder %s7363_s12, 3 }
  0x7c   : > { %s7591_s18 = scalar_select %p34_p13, %s7359_s11, %s36_s29  }
  0x7d   : > { %p45_p2 = por %p44_p12, %p43_p8  ;;  %p7595_p4 = por %p9444_p1, %p43_p8 }
  0x7e   : > { %s326_s21 = sand.u32 1, %s7359_s11   ;;  %s5702_s28 = sshll.u32 %s7363_s12, 6 }
  0x7f   : > { %s5701_s23 = sshll.u32 %s326_s21, 5  ;;  %s7605_s24 = scalar_lea.hbm %s9409_s0, %s5702_s28 }
  0x80   : > { %s330_s14 = scalar_lea.vmem [#allocation5], %s5701_s23  ;;  %p7609_p11 = pnand %p6269_p6, %p45_p2 }
  0x81   : > { %s336_s22 = sshll.u32 %s330_s14, 4  ;;  %s7613_s29 = scalar_lea.sflag [#allocation6], %s326_s21  ;;  %s7607_s22 = int_to_ptr.vmem [resolvable:$true] %s336_s22 }
  0x82   : > { %s7229_s25 = scalar_lea.hbm %s7605_s24, 512  ;;  %p7231_p0 = pneg %p7609_p11 }
  0x83   : > { %p7230_p9 = scmp.ne.s32.totalorder %s7605_s24, %s7229_s25  ;;  %s7234_s19 = scalar_lea.hbm %s9409_s0, 1536 }
  0x84   : > { %p7235_p7 = scmp.lt.u32.totalorder %s7605_s24, %s9409_s0  ;;  %p7236_p10 = scmp.lt.u32.totalorder %s7234_s19, %s7229_s25 }
  0x85   : > { %p7232_p3 = pnand %p7231_p0, %p7230_p9  ;;  %p7238_p8 = scmp.lt.u32.totalorder %s7229_s25, %s7605_s24 }
  0x86   : > { %p7237_p13 = por %p7236_p10, %p7235_p7 }
  0x87   : > { %p7233_p5 = pneg %p7232_p3 }
  0x88   : > { %p7239_p12 = por %p7238_p8, %p7237_p13 }
  0x8a   : > { %p7240_p2 = pnand %p7239_p12, %p7233_p5 }
  0x8c   : > { %7243 = shalt.err (!%p7240_p2)
}
  0x8d   : > { %s7244_s21 = scalar_lea.vmem %s7607_s22, 512  ;;  %s7373_s23 = smov [#allocation5]  }
  0x8e   : > { %p7245_p1 = scmp.ne.s32.totalorder %s7607_s22, %s7244_s21  ;;  %s7249_s28 = sshll.u32 %s7373_s23, 4  ;;  %s7250_s28 = int_to_ptr.vmem [resolvable:$false] %s7249_s28 }
  0x8f   : > { %s7251_s26 = scalar_lea.vmem %s7250_s28, 1024  ;;  %p7252_p3 = scmp.lt.s32.totalorder %s7607_s22, %s7250_s28 }
  0x90   : > { %p7247_p6 = pnand %p7245_p1, %p7231_p0  ;;  %p7253_p7 = scmp.lt.s32.totalorder %s7251_s26, %s7244_s21 }
  0x92   : > { %p7248_p9 = pneg %p7247_p6  ;;  %p7254_p10 = por %p7253_p7, %p7252_p3 }
  0x94   : > { %p7255_p13 = pnand %p7254_p10, %p7248_p9 }
  0x96   : > { %7258 = shalt.err (!%p7255_p13)
}
  0x97   : > { %s9447_s25 = smov 192   ;;  %p9448_p0 = scmp.ne.s32.totalorder %s9439_s17, 0 }
  0x98   : > { %6260 = dma.hbm_to_vmem [thread:$0]  (!%p7609_p11), %s7605_s24, 512, %s7607_s22, %s7613_s29, %s9447_s25, %s7371_s16, %s7372_s3  }
  0x99   : > { %348 = sbr.rel (%p9448_p0) target bundleno = 2824 (0xb08), region = 52 }
  0xa0   : > { %s7647_s19 = sand.u32 1, %s7355_s10   ;;  %p9449_p5 = scmp.ne.s32.totalorder %s9436_s15, 0 }
  0xa1   : > { %s5704_s14 = sshll.u32 %s7647_s19, 5  ;;  %s351_s21 = scalar_lea.sflag [#allocation6], %s7647_s19 }
  0xa2   : > { %s7651_s23 = scalar_lea.vmem [#allocation5], %s5704_s14 }
  0xa3   : > { %7330 = dma.done.wait (%p9449_p5), %s351_s21, 512  }
  0xa4   : > { %7332 = vsyncadd (%p9449_p5), %s351_s21, 4294966784  ;;  %p9450_p11 = scmp.eq.s32.totalorder %s7454_s13, 0 }
  0xa6   : > { %7334 = dma.done.wait (%p9450_p11), [#allocation9], 3200   ;;  %p9451_p8 = pmov %p9450_p11 }
  0xa8   : > { %7336 = vsyncadd (%p9451_p8), [#allocation9], 4294964096  ;;  %p9452_p12 = pmov %p9451_p8 }
  0xa9   : > { %p9453_p2 = pmov %p9451_p8 }
  0xaa   : > { %7338 = dma.done.wait (%p9452_p12), [#allocation12], 4096  }
  0xab   : > { %7340 = vsyncadd (%p9453_p2), [#allocation12], 4294963200  ;;  %s5709_s17 = sshll.u32 %s7647_s19, 6  ;;  %p9454_p1 = scmp.ne.s32.totalorder %s7454_s13, 0 }
  0xac   : > { %s7666_s16 = scalar_lea.vmem [#allocation14], %s5709_s17  ;;  %v410_v0 = vld [vmem:[#allocation8] sm:$0xff] (!%p9454_p1) }
  0xad   : > { %409 = sbr.rel (%p9454_p1) target bundleno = 180 (0xb4), region = 76  ;;  %411 = vst [vmem:[#allocation2] sm:$0xff] (!%p9454_p1), %v410_v0 }
  0xb4 PF: > { %v6325_v1 = vld [vmem:[#allocation10 + $0x4] ss:$12 sps:$4 sm:$0xff]   ;;  %v6327_v2 = vld [vmem:[#allocation10] ss:$12 sps:$4 sm:$0xff]   ;;  %v9424_v3 = vmov 0   ;;  %v6349_v28 = vld [vmem:[%s7651_s23] sm:$0xff]   ;;  %v454_v57 = vlaneseq }
  0xb5   : > { %653 = vmatprep.mubr.bf16.mxu1 %v9424_v3  ;;  %999 = vmatprep.mubr.bf16.mxu0 %v9424_v3  ;;  %v6328_v4 = vld [vmem:[#allocation10 + $0x1c] ss:$12 sps:$4 sm:$0xff]   ;;  %v6330_v5 = vld [vmem:[#allocation10 + $0x18] ss:$12 sps:$4 sm:$0xff]   ;;  %v6331_v6 = vld [vmem:[#allocation10 + $0x34] ss:$12 sps:$4 sm:$0xff]  }
  0xb6   : > { %621 = vmatprep.subr.bf16.mxu1 %v6325_v1  ;;  %v6333_v7 = vld [vmem:[#allocation10 + $0x30] ss:$12 sps:$4 sm:$0xff]   ;;  %v6334_v8 = vld [vmem:[#allocation10 + $0x4c] ss:$12 sps:$4 sm:$0xff]   ;;  %v6336_v9 = vld [vmem:[#allocation10 + $0x48] ss:$12 sps:$4 sm:$0xff]  }
  0xb7   : > { %622 = vmatpush1.bf16.msra.mxu1 %v6327_v2  ;;  %v6337_v10 = vld [vmem:[#allocation10 + $0x64] ss:$12 sps:$4 sm:$0xff]   ;;  %v7674_v12 = vld [vmem:[#allocation11] ss:$12 sps:$4 sm:$0xff]   ;;  %v6340_v14 = vld [vmem:[#allocation10 + $0x7c] ss:$12 sps:$4 sm:$0xff]  }
  0xb8   : > { %623 = vmatprep.subr.bf16.mxu1 %v6328_v4  ;;  %v7672_v11 = vld [vmem:[#allocation11 + $0x4] ss:$12 sps:$4 sm:$0xff]   ;;  %v6339_v13 = vld [vmem:[#allocation10 + $0x60] ss:$12 sps:$4 sm:$0xff]   ;;  %v7678_v15 = vld [vmem:[#allocation11 + $0x1c] ss:$12 sps:$4 sm:$0xff]  }
  0xb9   : > { %967 = vmatprep.subr.bf16.mxu0 %v7672_v11  ;;  %v7680_v16 = vld [vmem:[#allocation11 + $0x18] ss:$12 sps:$4 sm:$0xff]   ;;  %v6343_v18 = vld [vmem:[#allocation10 + $0x94] ss:$12 sps:$4 sm:$0xff]   ;;  %v7686_v20 = vld [vmem:[#allocation11 + $0x30] ss:$12 sps:$4 sm:$0xff]  }
  0xba   : > { %968 = vmatpush1.bf16.msra.mxu0 %v7674_v12  ;;  %v6342_v17 = vld [vmem:[#allocation10 + $0x78] ss:$12 sps:$4 sm:$0xff]   ;;  %v7683_v19 = vld [vmem:[#allocation11 + $0x34] ss:$12 sps:$4 sm:$0xff]   ;;  %v6345_v21 = vld [vmem:[#allocation10 + $0x90] ss:$12 sps:$4 sm:$0xff]  }
  0xbb   : > { %624 = vmatpush1.bf16.msra.mxu1 %v6330_v5  ;;  %969 = vmatprep.subr.bf16.mxu0 %v7678_v15  ;;  %v7689_v22 = vld [vmem:[#allocation11 + $0x4c] ss:$12 sps:$4 sm:$0xff]   ;;  %v7692_v24 = vld [vmem:[#allocation11 + $0x48] ss:$12 sps:$4 sm:$0xff]   ;;  %v7695_v25 = vld [vmem:[#allocation11 + $0x64] ss:$12 sps:$4 sm:$0xff]  }
  0xbc   : > { %625 = vmatprep.subr.bf16.mxu1 %v6331_v6  ;;  %v6346_v23 = vld [vmem:[#allocation10 + $0xac] ss:$12 sps:$4 sm:$0xff]   ;;  %v6348_v26 = vld [vmem:[#allocation10 + $0xa8] ss:$12 sps:$4 sm:$0xff]   ;;  %v6355_v34 = vld [vmem:[%s7651_s23 + $0x8] sm:$0xff]   ;;  %v9426_v49 = vmov 0.0  }
  0xbd   : > { %v6350_v27 = vld [vmem:[#allocation10 + $0x8] ss:$12 sps:$4 sm:$0xff]   ;;  %v7699_v29 = vld [vmem:[#allocation11 + $0x60] ss:$12 sps:$4 sm:$0xff]   ;;  %v7705_v32 = vld [vmem:[#allocation11 + $0x78] ss:$12 sps:$4 sm:$0xff]  }
  0xbe   : > { %970 = vmatpush1.bf16.msra.mxu0 %v7680_v16  ;;  %v7702_v30 = vld [vmem:[#allocation11 + $0x7c] ss:$12 sps:$4 sm:$0xff]   ;;  %v6351_v31 = vld [vmem:[#allocation10 + $0x20] ss:$12 sps:$4 sm:$0xff]   ;;  %v6356_v35 = vld [vmem:[#allocation10 + $0x38] ss:$12 sps:$4 sm:$0xff]  }
  0xbf   : > { %626 = vmatpush1.bf16.msra.mxu1 %v6333_v7  ;;  %971 = vmatprep.subr.bf16.mxu0 %v7683_v19  ;;  %v7708_v33 = vld [vmem:[#allocation11 + $0x94] ss:$12 sps:$4 sm:$0xff]   ;;  %v6381_v36 = vld [vmem:[#allocation11 + $0x90] ss:$12 sps:$4 sm:$0xff]   ;;  %v6382_v37 = vld [vmem:[#allocation11 + $0xac] ss:$12 sps:$4 sm:$0xff]  }
  0xc0   : > { %627 = vmatprep.subr.bf16.mxu1 %v6334_v8  ;;  %v6360_v38 = vld [vmem:[#allocation10 + $0x50] ss:$12 sps:$4 sm:$0xff]   ;;  %v6384_v39 = vld [vmem:[#allocation11 + $0xa8] ss:$12 sps:$4 sm:$0xff]   ;;  %v6369_v44 = vld [vmem:[#allocation10 + $0x80] ss:$12 sps:$4 sm:$0xff]  }
  0xc1   : > { %v7714_v40 = vld [vmem:[#allocation2] sm:$0xff]  ;;  %v6364_v42 = vld [vmem:[%s7651_s23 + $0x10] sm:$0xff]   ;;  %v6374_v45 = vld [vmem:[#allocation10 + $0x98] ss:$12 sps:$4 sm:$0xff]   ;;  %vm7376_vm0 = vmmov 0   ;;  %v7794_v58 = vshrl.u32 %v454_v57, 7 }
  0xc2   : > { %972 = vmatpush1.bf16.msra.mxu0 %v7686_v20  ;;  %v6365_v41 = vld [vmem:[#allocation10 + $0x68] ss:$12 sps:$4 sm:$0xff]   ;;  %v7720_v43 = vpack.c.bf16 %v7714_v40, %v7714_v40  ;;  %v6378_v47 = vld [vmem:[#allocation10 + $0xb0] ss:$12 sps:$4 sm:$0xff]   ;;  %v7741_v50 = vld [vmem:[#allocation11 + $0x20] ss:$12 sps:$4 sm:$0xff]  }
  0xc3   : > { %628 = vmatpush1.bf16.msra.mxu1 %v6336_v9  ;;  %973 = vmatprep.subr.bf16.mxu0 %v7689_v22  ;;  %v6373_v46 = vld [vmem:[%s7651_s23 + $0x18] sm:$0xff]   ;;  %v7747_v51 = vld [vmem:[#allocation11 + $0x38] ss:$12 sps:$4 sm:$0xff]   ;;  %v7762_v54 = vld [vmem:[#allocation11 + $0x80] ss:$12 sps:$4 sm:$0xff]   ;;  %v456_v59 = vsub.s32 0, %v7794_v58 }
  0xc4   : > { %629 = vmatprep.subr.bf16.mxu1 %v6337_v10  ;;  %v7735_v48 = vld [vmem:[#allocation11 + $0x8] ss:$12 sps:$4 sm:$0xff]   ;;  %v7751_v52 = vld [vmem:[#allocation11 + $0x50] ss:$12 sps:$4 sm:$0xff]   ;;  %v7766_v55 = vld [vmem:[#allocation11 + $0x98] ss:$12 sps:$4 sm:$0xff]  }
  0xc5   : > { %v7758_v53 = vld [vmem:[#allocation11 + $0x68] ss:$12 sps:$4 sm:$0xff]   ;;  %v7770_v56 = vld [vmem:[#allocation11 + $0xb0] ss:$12 sps:$4 sm:$0xff]   ;;  %v460_v61 = vsub.s32 1, %v7794_v58  ;;  %s7874_s27 = sshll.u32 %s7454_s13, 3 }
  0xc6   : > { %974 = vmatpush1.bf16.msra.mxu0 %v7692_v24  ;;  %v452_v60 = vld [vmem:[%s9413_s4] sm:$0x7]  ;;  %p1490_p6 = scmp.lt.s32.totalorder %s7874_s27, 20  ;;  %vm1551_vm2 = vcmask 1041409   ;;  %vm1554_vm3 = vcmask 1042434   ;;  %vm1557_vm4 = vcmask 1043459  }
  0xc7   : > { %630 = vmatpush1.bf16.msra.mxu1 %v6339_v13  ;;  %975 = vmatprep.subr.bf16.mxu0 %v7695_v25  ;;  %v457_v62 = vrot.slane %v452_v60, %v456_v59  ;;  %v461_v63 = vrot.slane %v452_v60, %v460_v61  ;;  %vm1560_vm5 = vcmask 1044484   ;;  %vm1563_vm6 = vcmask 1045509   ;;  %s2037_s28 = sadd.s32 1, %s7874_s27  ;;  %s2578_s23 = sadd.s32 2, %s7874_s27 }
  0xc8   : > { %631 = vmatprep.subr.bf16.mxu1 %v6340_v14  ;;  %s7893_s29 = scalar_select %p1490_p6, 1, 0  ;;  %vm1566_vm7 = vcmask 1046534   ;;  %vm1569_vm8 = vcmask 1047559  }
  0xc9   : > { %p8109_p9 = scmp.lt.s32.totalorder %s2037_s28, 20  ;;  %p8316_p3 = scmp.lt.s32.totalorder %s2578_s23, 20 }
  0xca   : > { %976 = vmatpush1.bf16.msra.mxu0 %v7699_v29  ;;  %s3119_s3 = sadd.s32 3, %s7874_s27  ;;  %s3660_s26 = sadd.s32 4, %s7874_s27 }
  0xcb   : > { %632 = vmatpush1.bf16.msra.mxu1 %v6342_v17  ;;  %977 = vmatprep.subr.bf16.mxu0 %v7702_v30  ;;  %s2039_s25 = scalar_select %p8109_p9, 1, 0 }
  0xcc   : > { %633 = vmatprep.subr.bf16.mxu1 %v6343_v18  ;;  %s2580_s15 = scalar_select %p8316_p3, 1, 0 }
  0xcd   : > { %p8531_p7 = scmp.lt.s32.totalorder %s3119_s3, 20  ;;  %p8738_p10 = scmp.lt.s32.totalorder %s3660_s26, 20 }
  0xce   : > { %978 = vmatpush1.bf16.msra.mxu0 %v7705_v32  ;;  %s4201_s21 = sadd.s32 5, %s7874_s27  ;;  %s4742_s24 = sadd.s32 6, %s7874_s27 }
  0xcf   : > { %634 = vmatpush1.bf16.msra.mxu1 %v6345_v21  ;;  %979 = vmatprep.subr.bf16.mxu0 %v7708_v33  ;;  %v7377_v21 = vmov 1966171168   ;;  %s3121_s22 = scalar_select %p8531_p7, 1, 0 }
  0xd0   : > { %635 = vmatprep.subr.bf16.mxu1 %v6346_v23  ;;  %s3662_s14 = scalar_select %p8738_p10, 1, 0 }
  0xd1   : > { %p8950_p13 = scmp.lt.s32.totalorder %s4201_s21, 20  ;;  %p9131_p0 = scmp.lt.s32.totalorder %s4742_s24, 20 }
  0xd2   : > { %980 = vmatpush1.bf16.msra.mxu0 %v6381_v36  ;;  %s5283_s28 = sadd.s32 7, %s7874_s27  ;;  %p9478_p8 = scmp.eq.s32.totalorder %s7454_s13, 2 }
  0xd3   : > { %636 = vmatpush1.bf16.msra.mxu1 %v6348_v26  ;;  %981 = vmatprep.subr.bf16.mxu0 %v6382_v37  ;;  %s4203_s17 = scalar_select %p8950_p13, 1, 0 }
  0xd4   : > { %6012 = vmatprep.subr.bf16.mxu1 %v6350_v27  ;;  %p9279_p5 = scmp.lt.s32.totalorder %s5283_s28, 20 }
  0xd6   : > { %654 = vmatmul.mubr.bf16.vlgmr.msra.gmra.mrb[0].mxu1 %v6349_v28  ;;  %982 = vmatpush1.bf16.msra.mxu0 %v6384_v39  ;;  %s5285_s27 = scalar_select %p9279_p5, 1, 0 }
  0xd7   : > { %6013 = vmatpush3.bf16.msra.mxu1 %v6350_v27  ;;  %663 = vmatprep.mubr.bf16.mxu1 %v9424_v3 }
  0xd8   : > { %6014 = vmatprep.subr.bf16.mxu1 %v6351_v31  ;;  %1573 = vmatprep.subr.bf16.mxu0 %v7672_v11 }
  0xd9   : > { %1000 = vmatmul.mubr.bf16.vlgmr.msra.gmra.mrb[0].mxu0 %v7720_v43 }
  0xda   : > { %1574 = vmatpush1.bf16.msra.mxu0 %v7674_v12  ;;  %1605 = vmatprep.mubr.bf16.mxu0 %v9424_v3 }
  0xdb   : > { %6015 = vmatpush3.bf16.msra.mxu1 %v6351_v31  ;;  %1575 = vmatprep.subr.bf16.mxu0 %v7678_v15 }
  0xdc   : > { %6016 = vmatprep.subr.bf16.mxu1 %v6356_v35 }
  0xde   : > { %664 = vmatmul.mubr.bf16.gmra.mrb[4].mxu1 %v6355_v34  ;;  %1576 = vmatpush1.bf16.msra.mxu0 %v7680_v16 }
  0xdf   : > { %6017 = vmatpush3.bf16.msra.mxu1 %v6356_v35  ;;  %673 = vmatprep.mubr.bf16.mxu1 %v9424_v3 }
  0xe0   : > { %6018 = vmatprep.subr.bf16.mxu1 %v6360_v38  ;;  %1577 = vmatprep.subr.bf16.mxu0 %v7683_v19 }
  0xe2   : > { %1578 = vmatpush1.bf16.msra.mxu0 %v7686_v20 }
  0xe3   : > { %6019 = vmatpush3.bf16.msra.mxu1 %v6360_v38  ;;  %1579 = vmatprep.subr.bf16.mxu0 %v7689_v22  ;;  %v1051_v22 = vunpack.c.l.s4 %v7377_v21 }
  0xe4   : > { %6020 = vmatprep.subr.bf16.mxu1 %v6365_v41 }
  0xe5   : > { %v1052_v31 = vunpack.c.0.s8 %v1051_v22 }
  0xe6   : > { %674 = vmatmul.mubr.bf16.gmra.mrb[8].mxu1 %v6364_v42  ;;  %1580 = vmatpush1.bf16.msra.mxu0 %v7692_v24 }
  0xe7   : > { %6021 = vmatpush3.bf16.msra.mxu1 %v6365_v41  ;;  %683 = vmatprep.mubr.bf16.mxu1 %v9424_v3 }
  0xe8   : > { %6022 = vmatprep.subr.bf16.mxu1 %v6369_v44  ;;  %1581 = vmatprep.subr.bf16.mxu0 %v7695_v25 }
  0xea   : > { %1582 = vmatpush1.bf16.msra.mxu0 %v7699_v29 }
  0xeb   : > { %6023 = vmatpush3.bf16.msra.mxu1 %v6369_v44  ;;  %1583 = vmatprep.subr.bf16.mxu0 %v7702_v30 }
  0xec   : > { %6024 = vmatprep.subr.bf16.mxu1 %v6374_v45 }
  0xee   : > { %684 = vmatmul.mubr.bf16.gmra.mrb[12].mxu1 %v6373_v46  ;;  %1584 = vmatpush1.bf16.msra.mxu0 %v7705_v32 }
  0xef   : > { %6025 = vmatpush3.bf16.msra.mxu1 %v6374_v45  ;;  %6028 = vmatprep.mubr.bf16.mxu1 %v6349_v28 }
  0xf0   : > { %6026 = vmatprep.subr.bf16.mxu1 %v6378_v47  ;;  %1585 = vmatprep.subr.bf16.mxu0 %v7708_v33  ;;  %v7804_v33 = vsub.s32 %v1052_v31, %v7794_v58 }
  0xf2   : > { %1586 = vmatpush1.bf16.msra.mxu0 %v6381_v36  ;;  %v464_v36 = vsub.s32 2, %v7794_v58 }
  0xf3   : > { %6027 = vmatpush3.bf16.msra.mxu1 %v6378_v47  ;;  %1587 = vmatprep.subr.bf16.mxu0 %v6382_v37 }
  0xf4   : > { %6036 = vmatprep.subr.bf16.mxu1 %v9426_v49 }
  0xf6   : > { %6029 = vmatmul.mubr.bf16.vlgmr.msra.gmra.mrb[16].mxu1 %v6355_v34  ;;  %1588 = vmatpush1.bf16.msra.mxu0 %v6384_v39 }
  0xf7   : > { %6037 = vmatpush3.bf16.msra.mxu1 %v7735_v48  ;;  %6032 = vmatprep.mubr.bf16.mxu1 %v6364_v42 }
  0xf8   : > { %6038 = vmatprep.subr.bf16.mxu1 %v9426_v49  ;;  %2114 = vmatprep.subr.bf16.mxu0 %v7672_v11 }
  0xfb   : > { %6039 = vmatpush3.bf16.msra.mxu1 %v7741_v50 }
  0xfc   : > { %6040 = vmatprep.subr.bf16.mxu1 %v9426_v49 }
  0xfe   : > { %6033 = vmatmul.mubr.bf16.gmra.mrb[20].mxu1 %v6373_v46 }
  0xff   : > { %6041 = vmatpush3.bf16.msra.mxu1 %v7747_v51  ;;  %6052 = vmatprep.mubr.msk.bf16.mxu1 %vm7376_vm0, %v9426_v49 }
 0x100   : > { %6042 = vmatprep.subr.bf16.mxu1 %v9426_v49 }
 0x103   : > { %6043 = vmatpush3.bf16.msra.mxu1 %v7751_v52 }
 0x104   : > { %6044 = vmatprep.subr.bf16.mxu1 %v9426_v49 }
 0x107   : > { %6045 = vmatpush3.bf16.msra.mxu1 %v7758_v53 }
 0x108   : > { %6046 = vmatprep.subr.bf16.mxu1 %v9426_v49 }
 0x10b   : > { %6047 = vmatpush3.bf16.msra.mxu1 %v7762_v54 }
 0x10c   : > { %6048 = vmatprep.subr.bf16.mxu1 %v9426_v49 }
 0x10f   : > { %6049 = vmatpush3.bf16.msra.mxu1 %v7766_v55 }
 0x110   : > { %6050 = vmatprep.subr.bf16.mxu1 %v9426_v49 }
 0x113   : > { %6051 = vmatpush3.bf16.msra.mxu1 %v7770_v56 }
 0x114   : > { %6056 = vmatprep.subr.bf16.mxu1 %v9426_v49 }
 0x116   : > { %6053 = vmatmul.mubr.bf16.vlgmr.msra.gmra.mrb[24].mxu1 %v7720_v43  ;;  %v465_v43 = vrot.slane %v452_v60, %v464_v36 }
 0x117   : > { %6057 = vmatpush3.bf16.msra.mxu1 %v7735_v48  ;;  %6072 = vmatprep.mubr.msk.bf16.mxu1 %vm7376_vm0, %v9426_v49 }
 0x118   : > { %6058 = vmatprep.subr.bf16.mxu1 %v9426_v49 }
 0x11b   : > { %6059 = vmatpush3.bf16.msra.mxu1 %v7741_v50 }
 0x11c   : > { %6060 = vmatprep.subr.bf16.mxu1 %v9426_v49 }
 0x11f   : > { %6061 = vmatpush3.bf16.msra.mxu1 %v7747_v51 }
 0x120   : > { %6062 = vmatprep.subr.bf16.mxu1 %v9426_v49 }
 0x123   : > { %6063 = vmatpush3.bf16.msra.mxu1 %v7751_v52 }
 0x124   : > { %6064 = vmatprep.subr.bf16.mxu1 %v9426_v49 }
 0x127   : > { %6065 = vmatpush3.bf16.msra.mxu1 %v7758_v53 }
 0x128   : > { %6066 = vmatprep.subr.bf16.mxu1 %v9426_v49 }
 0x12b   : > { %6067 = vmatpush3.bf16.msra.mxu1 %v7762_v54 }
 0x12c   : > { %6068 = vmatprep.subr.bf16.mxu1 %v9426_v49 }
 0x12f   : > { %6069 = vmatpush3.bf16.msra.mxu1 %v7766_v55 }
 0x130   : > { %6070 = vmatprep.subr.bf16.mxu1 %v9426_v49 }
 0x133   : > { %6071 = vmatpush3.bf16.msra.mxu1 %v7770_v56 }
 0x134   : > { %6076 = vmatprep.subr.bf16.mxu1 %v9426_v49 }
 0x1a9   : > { %v655_v0 = vpop.f32.mrb[0].mxu1 }
 0x1aa   : > { %v656_v1 = vadd.f32 %v655_v0, %v457_v62  ;;  %v657_v2 = vpop.f32.mrb[1].mxu1 }
 0x1ab   : > { %v658_v4 = vadd.f32 %v657_v2, %v461_v63  ;;  %v659_v5 = vpop.f32.mrb[2].mxu1 }
 0x1ac   : > { %759 = vst [vmem:[#allocation3] sm:$0xff] %v656_v1  ;;  %v660_v6 = vadd.f32 %v659_v5, %v457_v62  ;;  %v661_v7 = vpop.f32.mrb[3].mxu1  ;;  %v1001_v17 = vpop.f32.mrb[0].mxu0 }
 0x1ad   : > { %760 = vst [vmem:[#allocation3 + $0x8] sm:$0xff] %v658_v4  ;;  %v662_v8 = vadd.f32 %v661_v7, %v461_v63  ;;  %v7801_v18 = vpop.f32.mrb[1].mxu0  ;;  %v1056_v44 = vrot.slane %v1001_v17, %v7804_v33  ;;  %v1049_v46 = vcombine.high %v1001_v17, %v1001_v17 }
 0x1ae   : > { %762 = vst [vmem:[#allocation3 + $0x18] sm:$0xff] %v660_v6  ;;  %v1005_v20 = vpop.f32.mrb[2].mxu0  ;;  %v1194_v58 = vrot.slane %v7801_v18, %v7804_v33 }
 0x1af   : > { %763 = vst [vmem:[#allocation3 + $0x20] sm:$0xff] %v662_v8  ;;  %v1006_v25 = vpop.f32.mrb[3].mxu0  ;;  %v1064_v59 = vcombine.high %v1056_v44, %v1056_v44  ;;  %v1063_v2 = vrot.slane %v1049_v46, %v7804_v33  ;;  %v1187_v8 = vcombine.high %v7801_v18, %v7801_v18 }
 0x1b0   : > { %v1202_v5 = vcombine.high %v1194_v58, %v1194_v58  ;;  %v1210_v6 = vrot.slane %v1194_v58, %v7804_v33 }
 0x1b1   : > { %v665_v9 = vpop.f32.mrb[4].mxu1  ;;  %v1086_v4 = vrot.slane %v1064_v59, %v7804_v33  ;;  %v1079_v17 = vrot.slane %v1063_v2, %v7804_v33 }
 0x1b2   : > { %v666_v10 = vadd.f32 %v665_v9, %v457_v62  ;;  %v667_v11 = vpop.f32.mrb[5].mxu1  ;;  %v1065_v9 = vcombine.high %v1063_v2, %v1063_v2 }
 0x1b3   : > { %v668_v12 = vadd.f32 %v667_v11, %v461_v63  ;;  %v669_v13 = vpop.f32.mrb[6].mxu1  ;;  %v1096_v11 = vcombine.high %v1086_v4, %v1086_v4 }
 0x1b4   : > { %765 = vst [vmem:[#allocation3 + $0x30] sm:$0xff] %v666_v10  ;;  %v670_v14 = vadd.f32 %v669_v13, %v457_v62  ;;  %v671_v15 = vpop.f32.mrb[7].mxu1  ;;  %v1232_v13 = vcombine.high %v1210_v6, %v1210_v6 }
 0x1b5   : > { %766 = vst [vmem:[#allocation3 + $0x38] sm:$0xff] %v668_v12  ;;  %v672_v16 = vadd.f32 %v671_v15, %v461_v63  ;;  %v1224_v12 = vrot.slane %v1202_v5, %v7804_v33 }
 0x1b6   : > { %768 = vst [vmem:[#allocation3 + $0x48] sm:$0xff] %v670_v14 }
 0x1b7   : > { %769 = vst [vmem:[#allocation3 + $0x50] sm:$0xff] %v672_v16 }
 0x1b9   : > { %v675_v19 = vpop.f32.mrb[8].mxu1 }
 0x1ba   : > { %v676_v23 = vadd.f32 %v675_v19, %v457_v62  ;;  %v677_v24 = vpop.f32.mrb[9].mxu1 }
 0x1bb   : > { %v678_v26 = vadd.f32 %v677_v24, %v461_v63  ;;  %v679_v27 = vpop.f32.mrb[10].mxu1 }
 0x1bc   : > { %771 = vst [vmem:[#allocation3 + $0x60] sm:$0xff] %v676_v23  ;;  %v680_v28 = vadd.f32 %v679_v27, %v457_v62  ;;  %v681_v29 = vpop.f32.mrb[11].mxu1  ;;  %v7825_v23 = vrot.slane %v1187_v8, %v7804_v33  ;;  %v1093_v27 = vrot.slane %v1065_v9, %v7804_v33 }
 0x1bd   : > { %772 = vst [vmem:[#allocation3 + $0x68] sm:$0xff] %v678_v26  ;;  %v682_v30 = vadd.f32 %v681_v29, %v461_v63 }
 0x1be   : > { %774 = vst [vmem:[#allocation3 + $0x78] sm:$0xff] %v680_v28  ;;  %v1217_v5 = vrot.slane %v7825_v23, %v7804_v33  ;;  %v1203_v9 = vcombine.high %v7825_v23, %v7825_v23 }
 0x1bf   : > { %775 = vst [vmem:[#allocation3 + $0x80] sm:$0xff] %v682_v30 }
 0x1c1   : > { %v685_v32 = vpop.f32.mrb[12].mxu1 }
 0x1c2   : > { %v686_v34 = vadd.f32 %v685_v32, %v457_v62  ;;  %v687_v35 = vpop.f32.mrb[13].mxu1 }
 0x1c3   : > { %v688_v37 = vadd.f32 %v687_v35, %v461_v63  ;;  %v689_v38 = vpop.f32.mrb[14].mxu1  ;;  %v1234_v35 = vcombine.high %v1224_v12, %v1224_v12 }
 0x1c4   : > { %777 = vst [vmem:[#allocation3 + $0x90] sm:$0xff] %v686_v34  ;;  %v690_v39 = vadd.f32 %v689_v38, %v457_v62  ;;  %v691_v41 = vpop.f32.mrb[15].mxu1 }
 0x1c5   : > { %778 = vst [vmem:[#allocation3 + $0x98] sm:$0xff] %v688_v37  ;;  %v692_v42 = vadd.f32 %v691_v41, %v461_v63  ;;  %v1072_v63 = vrot.slane %v1056_v44, %v7804_v33  ;;  %v1095_v37 = vcombine.high %v1079_v17, %v1079_v17 }
 0x1c6   : > { %780 = vst [vmem:[#allocation3 + $0xa8] sm:$0xff] %v690_v39 }
 0x1c7   : > { %781 = vst [vmem:[#allocation3 + $0xb0] sm:$0xff] %v692_v42  ;;  %v1094_v7 = vcombine.high %v1072_v63, %v1072_v63 }
 0x1c9   : > { %v6030_v45 = vpop.f32.mrb[16].mxu1 }
 0x1ca   : > { %v737_v47 = vadd.f32 %v6030_v45, %v465_v43  ;;  %v728_v57 = vpop.f32.mrb[17].mxu1  ;;  %v1097_v45 = vcombine.high %v1093_v27, %v1093_v27 }
 0x1cb   : > { %v729_v61 = vadd.f32 %v728_v57, %v465_v43  ;;  %v6031_v0 = vpop.f32.mrb[18].mxu1 }
 0x1cc   : > { %767 = vst [vmem:[#allocation3 + $0x40] sm:$0xff] %v737_v47  ;;  %v740_v62 = vadd.f32 %v6031_v0, %v465_v43  ;;  %v731_v1 = vpop.f32.mrb[19].mxu1 }
 0x1cd   : > { %761 = vst [vmem:[#allocation3 + $0x10] sm:$0xff] %v729_v61  ;;  %v732_v60 = vadd.f32 %v731_v1, %v465_v43 }
 0x1ce   : > { %770 = vst [vmem:[#allocation3 + $0x58] sm:$0xff] %v740_v62 }
 0x1cf   : > { %764 = vst [vmem:[#allocation3 + $0x28] sm:$0xff] %v732_v60 }
 0x1d1   : > { %v6034_v10 = vpop.f32.mrb[20].mxu1 }
 0x1d2   : > { %v753_v14 = vadd.f32 %v6034_v10, %v465_v43  ;;  %v744_v15 = vpop.f32.mrb[21].mxu1 }
 0x1d3   : > { %v7817_v16 = vld [vmem:[#allocation3 + $0x30] ss:$8 sm:$0x7]  ;;  %v745_v19 = vadd.f32 %v744_v15, %v465_v43  ;;  %v6035_v20 = vpop.f32.mrb[22].mxu1 }
 0x1d4   : > { %v7820_v21 = vld [vmem:[#allocation3] ss:$8 sm:$0x7]  ;;  %v1108_v22 = vadd.f32 %v1094_v7, %v7817_v16  ;;  %v1172_v18 = vrot.slane %v7817_v16, 1  ;;  %779 = vst [vmem:[#allocation3 + $0xa0] sm:$0xff] %v753_v14  ;;  %v756_v24 = vadd.f32 %v6035_v20, %v465_v43  ;;  %v747_v25 = vpop.f32.mrb[23].mxu1 }
 0x1d5   : > { %v7827_v26 = vld [vmem:[#allocation3 + $0x48] ss:$8 sm:$0x7]  ;;  %v1106_v28 = vadd.f32 %v1072_v63, %v7820_v21  ;;  %v1170_v29 = vrot.slane %v7820_v21, 1  ;;  %773 = vst [vmem:[#allocation3 + $0x70] sm:$0xff] %v745_v19  ;;  %v748_v30 = vadd.f32 %v747_v25, %v465_v43 }
 0x1d6   : > { %v7832_v31 = vld [vmem:[#allocation3 + $0x18] ss:$8 sm:$0x7]  ;;  %v1109_v32 = vadd.f32 %v1096_v11, %v7827_v26  ;;  %v5766_v34 = vmul.f32 -1.442695, %v1108_v22  ;;  %v1246_v36 = vadd.f32 %v1232_v13, %v1172_v18  ;;  %782 = vst [vmem:[#allocation3 + $0xb8] sm:$0xff] %v756_v24  ;;  %v1231_v22 = vrot.slane %v1203_v9, %v7804_v33 }
 0x1d7   : > { %v1107_v38 = vadd.f32 %v1086_v4, %v7832_v31  ;;  %v5764_v39 = vmul.f32 -1.442695, %v1106_v28  ;;  %v1171_v41 = vrot.slane %v7832_v31, 1  ;;  %776 = vst [vmem:[#allocation3 + $0x88] sm:$0xff] %v748_v30  ;;  %v1173_v44 = vrot.slane %v7827_v26, 1 }
 0x1d8   : > { %6402 = vpow2.f32 %v5766_v34  ;;  %v5767_v42 = vmul.f32 -1.442695, %v1109_v32  ;;  %v1244_v43 = vadd.f32 %v1210_v6, %v1170_v29  ;;  %v5774_v58 = vmul.f32 -1.442695, %v1246_v36 }
 0x1d9   : > { %6404 = vpow2.f32 %v5764_v39  ;;  %v5765_v46 = vmul.f32 -1.442695, %v1107_v38  ;;  %v1245_v47 = vadd.f32 %v1224_v12, %v1171_v41  ;;  %v1247_v57 = vadd.f32 %v1234_v35, %v1173_v44 }
 0x1da   : > { %6406 = vpow2.f32 %v5767_v42  ;;  %v5772_v59 = vmul.f32 -1.442695, %v1244_v43  ;;  %v1235_v35 = vcombine.high %v1231_v22, %v1231_v22 }
 0x1db   : > { %6408 = vpow2.f32 %v5765_v46  ;;  %v5773_v61 = vmul.f32 -1.442695, %v1245_v47  ;;  %v7838_v0 = vld [vmem:[#allocation3 + $0x90] ss:$8 sm:$0x7] }
 0x1dc   : > { %6410 = vpow2.f32 %v5772_v59  ;;  %v5775_v62 = vmul.f32 -1.442695, %v1247_v57  ;;  %v7840_v1 = vld [vmem:[#allocation3 + $0x60] ss:$8 sm:$0x7]  ;;  %v1112_v63 = vadd.f32 %v1095_v37, %v7838_v0  ;;  %v1176_v29 = vrot.slane %v7838_v0, 1 }
 0x1dd   : > { %6412 = vpow2.f32 %v5773_v61  ;;  %v7843_v60 = vld [vmem:[#allocation3 + $0xa8] ss:$8 sm:$0x7]  ;;  %v1110_v2 = vadd.f32 %v1079_v17, %v7840_v1  ;;  %v1174_v4 = vrot.slane %v7840_v1, 1  ;;  %v1367_v61 = vrot.slane %v7820_v21, 2 }
 0x1de   : > { %6414 = vpow2.f32 %v5774_v58  ;;  %v7849_v6 = vld [vmem:[#allocation3 + $0x78] ss:$8 sm:$0x7]  ;;  %v1113_v7 = vadd.f32 %v1097_v45, %v7843_v60  ;;  %v5770_v8 = vmul.f32 -1.442695, %v1112_v63  ;;  %v1177_v38 = vrot.slane %v7843_v60, 1 }
 0x1df   : > { %6416 = vpow2.f32 %v5775_v62  ;;  %v1111_v10 = vadd.f32 %v1093_v27, %v7849_v6  ;;  %v5768_v11 = vmul.f32 -1.442695, %v1110_v2  ;;  %v1248_v13 = vadd.f32 %v1217_v5, %v1174_v4  ;;  %v7861_v37 = vld [vmem:[%s9414_s5] ss:$0 sm:$0xff] }
 0x1e0   : > { %6418 = vpow2.f32 %v5770_v8  ;;  %v5771_v12 = vmul.f32 -1.442695, %v1113_v7  ;;  %v1233_v27 = vcombine.high %v1217_v5, %v1217_v5  ;;  %v1175_v28 = vrot.slane %v7849_v6, 1 }
 0x1e1   : > { %6420 = vpow2.f32 %v5768_v11  ;;  %v5769_v14 = vmul.f32 -1.442695, %v1111_v10  ;;  %v5776_v17 = vmul.f32 -1.442695, %v1248_v13  ;;  %v1251_v63 = vadd.f32 %v1235_v35, %v1177_v38 }
 0x1e2   : > { %v6403_v15 = vpop.eup %6402  ;;  %6422 = vpow2.f32 %v5771_v12  ;;  %v1249_v45 = vadd.f32 %v1231_v22, %v1175_v28  ;;  %v1250_v46 = vadd.f32 %v1233_v27, %v1176_v29 }
 0x1e3   : > { %v6405_v19 = vpop.eup %6404  ;;  %v1140_v20 = vadd.f32 1.0, %v6403_v15  ;;  %6424 = vpow2.f32 %v5769_v14 }
 0x1e4   : > { %v6407_v18 = vpop.eup %6406  ;;  %v1138_v24 = vadd.f32 1.0, %v6405_v19  ;;  %6426 = vpow2.f32 %v5776_v17  ;;  %v5777_v12 = vmul.f32 -1.442695, %v1249_v45  ;;  %v5778_v13 = vmul.f32 -1.442695, %v1250_v46 }
 0x1e5   : > { %v6409_v23 = vpop.eup %6408  ;;  %v1141_v25 = vadd.f32 1.0, %v6407_v18  ;;  %v1369_v45 = vrot.slane %v7817_v16, 2 }
 0x1e6   : > { %v6411_v30 = vpop.eup %6410  ;;  %v1139_v32 = vadd.f32 1.0, %v6409_v23  ;;  %6428 = vrcp.f32 %v1138_v24 }
 0x1e7   : > { %v6413_v34 = vpop.eup %6412  ;;  %6430 = vrcp.f32 %v1140_v20  ;;  %v1276_v36 = vadd.f32 1.0, %v6411_v30  ;;  %v5779_v20 = vmul.f32 -1.442695, %v1251_v63 }
 0x1e8   : > { %v6415_v39 = vpop.eup %6414  ;;  %6432 = vrcp.f32 %v1139_v32  ;;  %v1277_v41 = vadd.f32 1.0, %v6413_v34  ;;  %v1368_v34 = vrot.slane %v7832_v31, 2 }
 0x1e9   : > { %v6417_v42 = vpop.eup %6416  ;;  %6434 = vrcp.f32 %v1141_v25  ;;  %v1278_v44 = vadd.f32 1.0, %v6415_v39  ;;  %v1042_v43 = vpop.f32.mrb[24].mxu1 }
 0x1ea   : > { %v6419_v47 = vpop.eup %6418  ;;  %6436 = vrcp.f32 %v1276_v36  ;;  %v1300_v57 = vadd.f32 %v7861_v37, %v1042_v43  ;;  %v6054_v59 = vpop.f32.mrb[25].mxu1  ;;  %v1279_v19 = vadd.f32 1.0, %v6417_v42  ;;  %v1423_v43 = vrot.slane %v7714_v40, %v7804_v33 }
 0x1eb   : > { %v6421_v58 = vpop.eup %6420  ;;  %6438 = vrcp.f32 %v1277_v41  ;;  %v1144_v62 = vadd.f32 1.0, %v6419_v47  ;;  %v1045_v2 = vpop.f32.mrb[26].mxu1  ;;  %v1370_v47 = vrot.slane %v7827_v26, 2  ;;  %v1373_v26 = vrot.slane %v7838_v0, 2 }
 0x1ec   : > { %v6423_v4 = vpop.eup %6422  ;;  %6440 = vrcp.f32 %v1278_v44  ;;  %v1142_v5 = vadd.f32 1.0, %v6421_v58  ;;  %v1302_v7 = vcombine.high %v1300_v57, %v1300_v57  ;;  %v1309_v8 = vrot.slane %v1300_v57, %v7804_v33  ;;  %v6055_v9 = vpop.f32.mrb[27].mxu1 }
 0x1ed   : > { %v6425_v10 = vpop.eup %6424  ;;  %v1145_v11 = vadd.f32 1.0, %v6423_v4  ;;  %6442 = vrcp.f32 %v1144_v62  ;;  %v1372_v0 = vrot.slane %v7849_v6, 2 }
 0x1ee   : > { %v6427_v14 = vpop.eup %6426  ;;  %v1143_v15 = vadd.f32 1.0, %v6425_v10  ;;  %6444 = vrcp.f32 %v1142_v5  ;;  %v1316_v21 = vrot.slane %v1302_v7, %v7804_v33  ;;  %v1317_v17 = vcombine.high %v1309_v8, %v1309_v8 }
 0x1ef   : > { %6446 = vrcp.f32 %v1145_v11  ;;  %v1325_v22 = vrot.slane %v1309_v8, %v7804_v33  ;;  %v1280_v28 = vadd.f32 1.0, %v6427_v14  ;;  %v1431_v5 = vcombine.high %v1423_v43, %v1423_v43 }
 0x1f0   : > { %v6429_v18 = vpop.eup %6428  ;;  %6448 = vrcp.f32 %v1143_v15  ;;  %v1318_v24 = vcombine.high %v1316_v21, %v1316_v21  ;;  %v1332_v23 = vrot.slane %v1316_v21, %v7804_v33  ;;  %v1339_v25 = vrot.slane %v1317_v17, %v7804_v33 }
 0x1f1   : > { %v6431_v27 = vpop.eup %6430  ;;  %6450 = vpow2.f32 %v5777_v12  ;;  %v1347_v29 = vcombine.high %v1325_v22, %v1325_v22  ;;  %v1359_v30 = vmul.f32 %v6429_v18, %v1325_v22  ;;  %v1371_v10 = vrot.slane %v7840_v1, 2 }
 0x1f2   : > { %v6433_v32 = vpop.eup %6432  ;;  %6452 = vpow2.f32 %v5778_v13  ;;  %v1346_v35 = vrot.slane %v1318_v24, %v7804_v33  ;;  %v1349_v36 = vcombine.high %v1339_v25, %v1339_v25  ;;  %v1348_v31 = vcombine.high %v1332_v23, %v1332_v23 }
 0x1f3   : > { %v6435_v38 = vpop.eup %6434  ;;  %6454 = vpow2.f32 %v5779_v20  ;;  %v1360_v39 = vmul.f32 %v6433_v32, %v1339_v25  ;;  %v1361_v41 = vmul.f32 %v6431_v27, %v1347_v29  ;;  %v1383_v42 = vadd.f32 %v1367_v61, %v1359_v30 }
 0x1f4   : > { %v7876_v44 = vpop.eup %6436  ;;  %6456 = vrcp.f32 %v1279_v19  ;;  %v1362_v57 = vmul.f32 %v6435_v38, %v1349_v36  ;;  %v1416_v61 = vcombine.high %v7714_v40, %v7714_v40  ;;  %v1350_v62 = vcombine.high %v1346_v35, %v1346_v35 }
 0x1f5   : > { %v7881_v46 = vpop.eup %6438  ;;  %6458 = vrcp.f32 %v1280_v28  ;;  %v1384_v59 = vadd.f32 %v1368_v34, %v1360_v39  ;;  %v1385_v63 = vadd.f32 %v1369_v45, %v1361_v41  ;;  %v1439_v15 = vrot.slane %v1423_v43, %v7804_v33 }
 0x1f6   : > { %v7885_v58 = vpop.eup %6440  ;;  %6460 = vtanh.f32 %v1383_v42  ;;  %v1386_v2 = vadd.f32 %v1370_v47, %v1362_v57  ;;  %v1430_v11 = vrot.slane %v1416_v61, %v7804_v33  ;;  %v1453_v1 = vrot.slane %v1431_v5, %v7804_v33 }
 0x1f7   : > { %v6443_v16 = vpop.eup %6442  ;;  %6462 = vtanh.f32 %v1384_v59  ;;  %v1374_v22 = vrot.slane %v7843_v60, 2  ;;  %v1492_v25 = vstv %s7893_s29  ;;  %v1461_v34 = vcombine.high %v1439_v15, %v1439_v15  ;;  %s4744_s29 = scalar_select %p9131_p0, 1, 0 }
 0x1f8   : > { %v6445_v4 = vpop.eup %6444  ;;  %v1365_v7 = vmul.f32 %v6443_v16, %v1348_v31  ;;  %6464 = vtanh.f32 %v1385_v63  ;;  %v1432_v28 = vcombine.high %v1430_v11, %v1430_v11  ;;  %v7902_v6 = vrot.slane %v1430_v11, %v7804_v33 }
 0x1f9   : > { %v6447_v8 = vpop.eup %6446  ;;  %v1363_v9 = vmul.f32 %v6445_v4, %v1332_v23  ;;  %6466 = vtanh.f32 %v1386_v2  ;;  %v1463_v36 = vcombine.high %v1453_v1, %v1453_v1  ;;  %v1400_v38 = vsub.f32 1.0, %v7881_v46 }
 0x1fa   : > { %v6449_v40 = vpop.eup %6448  ;;  %v1366_v12 = vmul.f32 %v6447_v8, %v1350_v62  ;;  %v1389_v13 = vadd.f32 %v1373_v26, %v1365_v7  ;;  %vm7906_vm1 = vcmp.eq.s32.totalorder %v1492_v25, 1  ;;  %v1401_v42 = vsub.f32 1.0, %v7885_v58 }
 0x1fb   : > { %v6451_v14 = vpop.eup %6450  ;;  %v1364_v21 = vmul.f32 %v6449_v40, %v1346_v35  ;;  %v1387_v17 = vadd.f32 %v1371_v10, %v1363_v9  ;;  %v1399_v35 = vsub.f32 1.0, %v7876_v44  ;;  %v1473_v43 = vmul.f32 %v7876_v44, %v1439_v15 }
 0x1fc   : > { %v6453_v19 = vpop.eup %6452  ;;  %v1281_v20 = vadd.f32 1.0, %v6451_v14  ;;  %6468 = vtanh.f32 %v1389_v13  ;;  %v1390_v30 = vadd.f32 %v1374_v22, %v1366_v12  ;;  %v1474_v57 = vmul.f32 %v7881_v46, %v1453_v1 }
 0x1fd   : > { %v6455_v18 = vpop.eup %6454  ;;  %v1282_v24 = vadd.f32 1.0, %v6453_v19  ;;  %v1388_v23 = vadd.f32 %v1372_v0, %v1364_v21  ;;  %6470 = vtanh.f32 %v1387_v17  ;;  %v1460_v62 = vrot.slane %v1432_v28, %v7804_v33 }
 0x1fe   : > { %v6457_v27 = vpop.eup %6456  ;;  %v1283_v29 = vadd.f32 1.0, %v6455_v18  ;;  %6472 = vrcp.f32 %v1281_v20  ;;  %v1475_v63 = vmul.f32 %v7885_v58, %v1461_v34  ;;  %v1462_v44 = vcombine.high %v7902_v6, %v7902_v6 }
 0x1ff   : > { %v6459_v32 = vpop.eup %6458  ;;  %6474 = vrcp.f32 %v1282_v24  ;;  %v1402_v47 = vsub.f32 1.0, %v6457_v27  ;;  %v1476_v4 = vmul.f32 %v6457_v27, %v1463_v36  ;;  %v1464_v12 = vcombine.high %v1460_v62, %v1460_v62 }
 0x200   : > { %v6461_v60 = vpop.eup %6460  ;;  %6476 = vrcp.f32 %v1283_v29  ;;  %v1403_v9 = vsub.f32 1.0, %v6459_v32  ;;  %v1477_v0 = vmul.f32 %v6459_v32, %v7902_v6 }
 0x201   : > { %v6463_v41 = vpop.eup %6462  ;;  %6478 = vtanh.f32 %v1388_v23  ;;  %v1407_v45 = vmul.f32 %v6461_v60, %v1399_v35 }
 0x202   : > { %v6465_v31 = vpop.eup %6464  ;;  %6480 = vtanh.f32 %v1390_v30  ;;  %v1408_v59 = vmul.f32 %v6463_v41, %v1400_v38 }
 0x203   : > { %v6467_v61 = vpop.eup %6466  ;;  %v1409_v16 = vmul.f32 %v6465_v31, %v1401_v42  ;;  %v1481_v2 = vadd.f32 %v1473_v43, %v1407_v45 }
 0x204   : > { %v1410_v5 = vmul.f32 %v6467_v61, %v1402_v47  ;;  %v1482_v7 = vadd.f32 %v1474_v57, %v1408_v59 }
 0x205   : > { %v1483_v26 = vadd.f32 %v1475_v63, %v1409_v16  ;;  %v7919_v8 = vsel %vm7906_vm1, %v1481_v2, %v1439_v15 }
 0x206   : > { %v6469_v46 = vpop.eup %6468  ;;  %v1484_v10 = vadd.f32 %v1476_v4, %v1410_v5  ;;  %v7923_v40 = vsel %vm7906_vm1, %v1482_v7, %v1453_v1  ;;  %1502 = vst [vmem:[#allocation4] sm:$0x1] %v7919_v8  ;;  %v1526_v58 = vpack.c.bf16 %v7919_v8, %v7919_v8 }
 0x207   : > { %v6471_v11 = vpop.eup %6470  ;;  %1503 = vst [vmem:[#allocation4 + $0x8] sm:$0x1] %v7923_v40  ;;  %v7931_v13 = vsel %vm7906_vm1, %v1483_v26, %v1461_v34  ;;  %v1527_v14 = vpack.c.bf16 %v7923_v40, %v7923_v40 }
 0x208   : > { %v6473_v15 = vpop.eup %6472  ;;  %v1411_v21 = vmul.f32 %v6471_v11, %v1403_v9  ;;  %v7938_v17 = vsel %vm7906_vm1, %v1484_v10, %v1463_v36  ;;  %1504 = vst [vmem:[#allocation4 + $0x10] sm:$0x1] %v7931_v13  ;;  %v1528_v19 = vpack.c.bf16 %v7931_v13, %v7931_v13  ;;  %v1542_v22 = vunpack.c.l.b16 %v1526_v58 }
 0x209   : > { %v6475_v1 = vpop.eup %6474  ;;  %1505 = vst [vmem:[#allocation4 + $0x18] sm:$0x1] %v7938_v17  ;;  %v1529_v20 = vpack.c.bf16 %v7938_v17, %v7938_v17  ;;  %v1543_v18 = vunpack.c.l.b16 %v1527_v14  ;;  %v1404_v23 = vsub.f32 1.0, %v6473_v15  ;;  %v1478_v30 = vmul.f32 %v6473_v15, %v1460_v62 }
 0x20a   : > { %v6477_v24 = vpop.eup %6476  ;;  %v1405_v25 = vsub.f32 1.0, %v6475_v1  ;;  %v1485_v27 = vadd.f32 %v1477_v0, %v1411_v21  ;;  %v1544_v28 = vunpack.c.l.b16 %v1528_v19  ;;  %v1479_v41 = vmul.f32 %v6475_v1, %v1462_v44 }
 0x20b   : > { %v6479_v29 = vpop.eup %6478  ;;  %v1406_v32 = vsub.f32 1.0, %v6477_v24  ;;  %v1545_v34 = vunpack.c.l.b16 %v1529_v20  ;;  %v1550_v35 = vrot.slane %v1543_v18, 7  ;;  %v1480_v45 = vmul.f32 %v6477_v24, %v1464_v12  ;;  %v7982_v20 = vld [vmem:[#allocation11] ss:$12 sps:$4 sm:$0xff]   ;;  %v7993_v18 = vld [vmem:[#allocation11 + $0x18] ss:$12 sps:$4 sm:$0xff]  }
 0x20c   : > { %v6481_v60 = vpop.eup %6480  ;;  %v1412_v36 = vmul.f32 %v6479_v29, %v1404_v23  ;;  %v1413_v38 = vmul.f32 %v6469_v46, %v1405_v25  ;;  %v7949_v42 = vsel %vm7906_vm1, %v1485_v27, %v7902_v6  ;;  %v1553_v61 = vrot.slane %v1544_v28, 6  ;;  %v7997_v24 = vld [vmem:[#allocation11 + $0x34] ss:$12 sps:$4 sm:$0xff]   ;;  %v8005_v23 = vld [vmem:[#allocation11 + $0x4c] ss:$12 sps:$4 sm:$0xff]  }
 0x20d   : > { %v1414_v43 = vmul.f32 %v6481_v60, %v1406_v32  ;;  %1506 = vst [vmem:[#allocation4 + $0x20] sm:$0x1] %v7949_v42  ;;  %v1530_v31 = vpack.c.bf16 %v7949_v42, %v7949_v42  ;;  %v1552_v47 = vsel %vm1551_vm2, %v1550_v35, %v1542_v22  ;;  %v1556_v2 = vrot.slane %v1545_v34, 5  ;;  %v7986_v22 = vld [vmem:[#allocation11 + $0x1c] ss:$12 sps:$4 sm:$0xff]  }
 0x20e   : > { %v1486_v57 = vadd.f32 %v1478_v30, %v1412_v36  ;;  %v1487_v59 = vadd.f32 %v1479_v41, %v1413_v38  ;;  %v1555_v5 = vsel %vm1554_vm3, %v1553_v61, %v1552_v47  ;;  %v8009_v25 = vld [vmem:[#allocation11 + $0x48] ss:$12 sps:$4 sm:$0xff]   ;;  %v8017_v27 = vld [vmem:[#allocation11 + $0x60] ss:$12 sps:$4 sm:$0xff]   ;;  %v8025_v28 = vld [vmem:[#allocation11 + $0x78] ss:$12 sps:$4 sm:$0xff]  }
 0x20f   : > { %v1488_v63 = vadd.f32 %v1480_v45, %v1414_v43  ;;  %v1546_v16 = vunpack.c.l.b16 %v1530_v31  ;;  %v1558_v10 = vsel %vm1557_vm4, %v1556_v2, %v1555_v5  ;;  %v8033_v29 = vld [vmem:[#allocation11 + $0x90] ss:$12 sps:$4 sm:$0xff]   ;;  %v8041_v30 = vld [vmem:[#allocation11 + $0xa8] ss:$12 sps:$4 sm:$0xff]  }
 0x210   : > { %v7957_v6 = vsel %vm7906_vm1, %v1486_v57, %v1460_v62  ;;  %v7961_v4 = vsel %vm7906_vm1, %v1487_v59, %v1462_v44  ;;  %v8052_v57 = vld [vmem:[#allocation3 + $0x1] ss:$8 sm:$0x7] }
 0x211   : > { %v7966_v7 = vsel %vm7906_vm1, %v1488_v63, %v1464_v12  ;;  %1507 = vst [vmem:[#allocation4 + $0x28] sm:$0x1] %v7957_v6  ;;  %1508 = vst [vmem:[#allocation4 + $0x30] sm:$0x1] %v7961_v4  ;;  %v1531_v26 = vpack.c.bf16 %v7957_v6, %v7957_v6  ;;  %v1532_v62 = vpack.c.bf16 %v7961_v4, %v7961_v4  ;;  %v1559_v46 = vrot.slane %v1546_v16, 4 }
 0x212   : > { %1509 = vst [vmem:[#allocation4 + $0x38] sm:$0x1] %v7966_v7  ;;  %v1533_v44 = vpack.c.bf16 %v7966_v7, %v7966_v7  ;;  %v8054_v59 = vld [vmem:[#allocation3 + $0x19] ss:$8 sm:$0x7] }
 0x213   : > { %v1547_v9 = vunpack.c.l.b16 %v1531_v26  ;;  %v1548_v39 = vunpack.c.l.b16 %v1532_v62  ;;  %v1561_v11 = vsel %vm1560_vm5, %v1559_v46, %v1558_v10  ;;  %v8058_v5 = vld [vmem:[#allocation3 + $0x31] ss:$8 sm:$0x7] }
 0x214   : > { %v1549_v58 = vunpack.c.l.b16 %v1533_v44  ;;  %v8060_v26 = vld [vmem:[#allocation3 + $0x49] ss:$8 sm:$0x7] }
 0x215   : > { %v1562_v12 = vrot.slane %v1547_v9, 3  ;;  %v1565_v14 = vrot.slane %v1548_v39, 2  ;;  %v8064_v44 = vld [vmem:[#allocation3 + $0x61] ss:$8 sm:$0x7] }
 0x216   : > { %v1568_v21 = vrot.slane %v1549_v58, 1  ;;  %v8066_v9 = vld [vmem:[#allocation3 + $0x79] ss:$8 sm:$0x7] }
 0x217   : > { %v1564_v15 = vsel %vm1563_vm6, %v1562_v12, %v1561_v11  ;;  %v8070_v12 = vld [vmem:[#allocation3 + $0x91] ss:$8 sm:$0x7] }
 0x218   : > { %v1567_v0 = vsel %vm1566_vm7, %v1565_v14, %v1564_v15 }
 0x219   : > { %v1570_v19 = vsel %vm1569_vm8, %v1568_v21, %v1567_v0 }
 0x21a   : > { %v1571_v1 = vpack.c.b16 %v1570_v19, %v1570_v19  ;;  %v8074_v19 = vld [vmem:[#allocation3 + $0xa9] ss:$8 sm:$0x7] }
 0x21c   : > { %1606 = vmatmul.mubr.bf16.vlgmr.msra.gmra.mrb[4].mxu0 %v1571_v1  ;;  %6073 = vmatmul.mubr.bf16.vlgmr.msra.gmra.mrb[28].mxu1 %v1571_v1 }
 0x21d   : > { %2115 = vmatpush1.bf16.msra.mxu0 %v7982_v20  ;;  %6077 = vmatpush3.bf16.msra.mxu1 %v7735_v48  ;;  %v8001_v48 = vld [vmem:[#allocation11 + $0x30] ss:$12 sps:$4 sm:$0xff]  }
 0x21e   : > { %2116 = vmatprep.subr.bf16.mxu0 %v7986_v22  ;;  %6078 = vmatprep.subr.bf16.mxu1 %v9426_v49 }
 0x21f   : > { %2146 = vmatprep.mubr.bf16.mxu0 %v9424_v3  ;;  %6092 = vmatprep.mubr.msk.bf16.mxu1 %vm7376_vm0, %v9426_v49 }
 0x221   : > { %2117 = vmatpush1.bf16.msra.mxu0 %v7993_v18  ;;  %6079 = vmatpush3.bf16.msra.mxu1 %v7741_v50  ;;  %v8013_v50 = vld [vmem:[#allocation11 + $0x64] ss:$12 sps:$4 sm:$0xff]  }
 0x222   : > { %2118 = vmatprep.subr.bf16.mxu0 %v7997_v24  ;;  %6080 = vmatprep.subr.bf16.mxu1 %v9426_v49 }
 0x225   : > { %2119 = vmatpush1.bf16.msra.mxu0 %v8001_v48  ;;  %6081 = vmatpush3.bf16.msra.mxu1 %v7747_v51  ;;  %v8021_v51 = vld [vmem:[#allocation11 + $0x7c] ss:$12 sps:$4 sm:$0xff]  }
 0x226   : > { %2120 = vmatprep.subr.bf16.mxu0 %v8005_v23  ;;  %6082 = vmatprep.subr.bf16.mxu1 %v9426_v49 }
 0x229   : > { %2121 = vmatpush1.bf16.msra.mxu0 %v8009_v25  ;;  %6083 = vmatpush3.bf16.msra.mxu1 %v7751_v52  ;;  %v8029_v52 = vld [vmem:[#allocation11 + $0x94] ss:$12 sps:$4 sm:$0xff]  }
 0x22a   : > { %2122 = vmatprep.subr.bf16.mxu0 %v8013_v50  ;;  %6084 = vmatprep.subr.bf16.mxu1 %v9426_v49 }
 0x22d   : > { %2123 = vmatpush1.bf16.msra.mxu0 %v8017_v27  ;;  %6085 = vmatpush3.bf16.msra.mxu1 %v7758_v53  ;;  %v8037_v53 = vld [vmem:[#allocation11 + $0xac] ss:$12 sps:$4 sm:$0xff]  }
 0x22e   : > { %2124 = vmatprep.subr.bf16.mxu0 %v8021_v51  ;;  %6086 = vmatprep.subr.bf16.mxu1 %v9426_v49 }
 0x231   : > { %2125 = vmatpush1.bf16.msra.mxu0 %v8025_v28  ;;  %6087 = vmatpush3.bf16.msra.mxu1 %v7762_v54  ;;  %v8045_v54 = vld [vmem:[#allocation11 + $0x4] ss:$12 sps:$4 sm:$0xff]  }
 0x232   : > { %2126 = vmatprep.subr.bf16.mxu0 %v8029_v52  ;;  %6088 = vmatprep.subr.bf16.mxu1 %v9426_v49  ;;  %9457 = vst [vmem:[#allocation23_spill] sm:$0xff] %v8045_v54 }
 0x235   : > { %2127 = vmatpush1.bf16.msra.mxu0 %v8033_v29  ;;  %6089 = vmatpush3.bf16.msra.mxu1 %v7766_v55 }
 0x236   : > { %2128 = vmatprep.subr.bf16.mxu0 %v8037_v53  ;;  %6090 = vmatprep.subr.bf16.mxu1 %v9426_v49 }
 0x239   : > { %2129 = vmatpush1.bf16.msra.mxu0 %v8041_v30  ;;  %6091 = vmatpush3.bf16.msra.mxu1 %v7770_v56 }
 0x23a   : > { %2655 = vmatprep.subr.bf16.mxu0 %v8045_v54  ;;  %6096 = vmatprep.subr.bf16.mxu1 %v9426_v49 }
 0x2ef   : > { %v1607_v32 = vpop.f32.mrb[4].mxu0  ;;  %v1648_v55 = vpop.f32.mrb[28].mxu1 }
 0x2f0   : > { %v1655_v34 = vcombine.high %v1607_v32, %v1607_v32  ;;  %v1662_v35 = vrot.slane %v1607_v32, %v7804_v33  ;;  %v1609_v60 = vpop.f32.mrb[5].mxu0  ;;  %v6074_v36 = vpop.f32.mrb[29].mxu1 }
 0x2f1   : > { %v1611_v38 = vpop.f32.mrb[6].mxu0  ;;  %v1651_v41 = vpop.f32.mrb[30].mxu1  ;;  %v1800_v46 = vrot.slane %v1609_v60, %v7804_v33  ;;  %v1793_v0 = vcombine.high %v1609_v60, %v1609_v60 }
 0x2f2   : > { %v1669_v43 = vrot.slane %v1655_v34, %v7804_v33  ;;  %v1670_v45 = vcombine.high %v1662_v35, %v1662_v35  ;;  %v1678_v56 = vrot.slane %v1662_v35, %v7804_v33  ;;  %v1612_v31 = vpop.f32.mrb[7].mxu0  ;;  %v6075_v47 = vpop.f32.mrb[31].mxu1 }
 0x2f3   : > { %v1816_v60 = vrot.slane %v1800_v46, %v7804_v33 }
 0x2f4   : > { %v1671_v61 = vcombine.high %v1669_v43, %v1669_v43  ;;  %v1685_v63 = vrot.slane %v1669_v43, %v7804_v33  ;;  %v1692_v16 = vrot.slane %v1670_v45, %v7804_v33  ;;  %v1700_v2 = vcombine.high %v1678_v56, %v1678_v56 }
 0x2f5   : > { %v1712_v62 = vadd.f32 %v1678_v56, %v8052_v57  ;;  %v1808_v56 = vcombine.high %v1800_v46, %v1800_v46  ;;  %v1906_v46 = vadd.f32 %v7861_v37, %v1648_v55  ;;  %v1781_v37 = vrot.slane %v8066_v9, 1 }
 0x2f6   : > { %v1699_v39 = vrot.slane %v1671_v61, %v7804_v33  ;;  %v1701_v10 = vcombine.high %v1685_v63, %v1685_v63  ;;  %v1702_v58 = vcombine.high %v1692_v16, %v1692_v16  ;;  %v1713_v11 = vadd.f32 %v1692_v16, %v8054_v59 }
 0x2f7   : > { %v1714_v14 = vadd.f32 %v1700_v2, %v8058_v5  ;;  %v1716_v15 = vadd.f32 %v1685_v63, %v8064_v44  ;;  %v5781_v21 = vmul.f32 -1.442695, %v1712_v62  ;;  %v1807_v61 = vrot.slane %v1793_v0, %v7804_v33 }
 0x2f8   : > { %v1703_v1 = vcombine.high %v1699_v39, %v1699_v39  ;;  %v1715_v32 = vadd.f32 %v1702_v58, %v8060_v26  ;;  %v1717_v34 = vadd.f32 %v1699_v39, %v8066_v9  ;;  %v1718_v35 = vadd.f32 %v1701_v10, %v8070_v12 }
 0x2f9   : > { %6482 = vpow2.f32 %v5781_v21  ;;  %v5782_v36 = vmul.f32 -1.442695, %v1713_v11  ;;  %v5783_v38 = vmul.f32 -1.442695, %v1714_v14  ;;  %v5785_v45 = vmul.f32 -1.442695, %v1716_v15 }
 0x2fa   : > { %v1719_v41 = vadd.f32 %v1703_v1, %v8074_v19  ;;  %v5784_v43 = vmul.f32 -1.442695, %v1715_v32  ;;  %v5786_v31 = vmul.f32 -1.442695, %v1717_v34  ;;  %v5787_v47 = vmul.f32 -1.442695, %v1718_v35 }
 0x2fb   : > { %6484 = vpow2.f32 %v5782_v36  ;;  %v1776_v16 = vrot.slane %v8052_v57, 1  ;;  %v1830_v2 = vrot.slane %v1808_v56, %v7804_v33  ;;  %v1777_v62 = vrot.slane %v8054_v59, 1 }
 0x2fc   : > { %6486 = vpow2.f32 %v5783_v38  ;;  %v5788_v63 = vmul.f32 -1.442695, %v1719_v41  ;;  %v1809_v10 = vcombine.high %v1807_v61, %v1807_v61  ;;  %v1778_v11 = vrot.slane %v8058_v5, 1 }
 0x2fd   : > { %6488 = vpow2.f32 %v5784_v43  ;;  %v1850_v39 = vadd.f32 %v1816_v60, %v1776_v16  ;;  %v1851_v58 = vadd.f32 %v1830_v2, %v1777_v62  ;;  %v1779_v14 = vrot.slane %v8060_v26, 1 }
 0x2fe   : > { %6490 = vpow2.f32 %v5785_v45  ;;  %v1823_v21 = vrot.slane %v1807_v61, %v7804_v33  ;;  %v1838_v0 = vcombine.high %v1816_v60, %v1816_v60  ;;  %v1780_v35 = vrot.slane %v8064_v44, 1 }
 0x2ff   : > { %6492 = vpow2.f32 %v5786_v31  ;;  %v5789_v1 = vmul.f32 -1.442695, %v1850_v39  ;;  %v5790_v32 = vmul.f32 -1.442695, %v1851_v58  ;;  %v1837_v36 = vrot.slane %v1809_v10, %v7804_v33 }
 0x300   : > { %6494 = vpow2.f32 %v5787_v47  ;;  %v1840_v38 = vcombine.high %v1830_v2, %v1830_v2  ;;  %v1908_v43 = vcombine.high %v1906_v46, %v1906_v46  ;;  %v1782_v55 = vrot.slane %v8070_v12, 1 }
 0x301   : > { %6496 = vpow2.f32 %v5788_v63  ;;  %v1915_v31 = vrot.slane %v1906_v46, %v7804_v33  ;;  %v1783_v60 = vrot.slane %v8074_v19, 1  ;;  %v1839_v63 = vcombine.high %v1823_v21, %v1823_v21 }
 0x302   : > { %6498 = vpow2.f32 %v5789_v1  ;;  %v1852_v16 = vadd.f32 %v1838_v0, %v1778_v11  ;;  %v1841_v39 = vcombine.high %v1837_v36, %v1837_v36  ;;  %v1853_v10 = vadd.f32 %v1840_v38, %v1779_v14 }
 0x303   : > { %v6483_v15 = vpop.eup %6482  ;;  %v1922_v1 = vrot.slane %v1908_v43, %v7804_v33  ;;  %v1923_v3 = vcombine.high %v1915_v31, %v1915_v31  ;;  %v1855_v49 = vadd.f32 %v1837_v36, %v1781_v37  ;;  %v1856_v11 = vadd.f32 %v1839_v63, %v1782_v55 }
 0x304   : > { %v1744_v34 = vadd.f32 1.0, %v6483_v15  ;;  %v5791_v0 = vmul.f32 -1.442695, %v1852_v16  ;;  %v5792_v14 = vmul.f32 -1.442695, %v1853_v10  ;;  %v1973_v55 = vrot.slane %v8052_v57, 2 }
 0x305   : > { %v6485_v41 = vpop.eup %6484  ;;  %v5795_v36 = vmul.f32 -1.442695, %v1856_v11  ;;  %v1974_v63 = vrot.slane %v8054_v59, 2 }
 0x306   : > { %v6487_v45 = vpop.eup %6486  ;;  %v1745_v56 = vadd.f32 1.0, %v6485_v41  ;;  %6500 = vrcp.f32 %v1744_v34  ;;  %v1854_v34 = vadd.f32 %v1823_v21, %v1780_v35  ;;  %v1931_v21 = vrot.slane %v1915_v31, %v7804_v33 }
 0x307   : > { %v6489_v47 = vpop.eup %6488  ;;  %v1746_v61 = vadd.f32 1.0, %v6487_v45  ;;  %6502 = vpow2.f32 %v5790_v32  ;;  %v5794_v35 = vmul.f32 -1.442695, %v1855_v49 }
 0x308   : > { %v6491_v2 = vpop.eup %6490  ;;  %v1747_v62 = vadd.f32 1.0, %v6489_v47  ;;  %6504 = vrcp.f32 %v1745_v56  ;;  %v1857_v56 = vadd.f32 %v1841_v39, %v1783_v60  ;;  %v5793_v38 = vmul.f32 -1.442695, %v1854_v34 }
 0x309   : > { %v6493_v58 = vpop.eup %6492  ;;  %v1748_v15 = vadd.f32 1.0, %v6491_v2  ;;  %6506 = vrcp.f32 %v1746_v61  ;;  %v1924_v47 = vcombine.high %v1922_v1, %v1922_v1  ;;  %v1945_v61 = vrot.slane %v1923_v3, %v7804_v33 }
 0x30a   : > { %v6495_v41 = vpop.eup %6494  ;;  %v1749_v46 = vadd.f32 1.0, %v6493_v58  ;;  %6508 = vrcp.f32 %v1747_v62  ;;  %v5796_v60 = vmul.f32 -1.442695, %v1857_v56  ;;  %v1938_v2 = vrot.slane %v1922_v1, %v7804_v33 }
 0x30b   : > { %v6497_v45 = vpop.eup %6496  ;;  %v1750_v54 = vadd.f32 1.0, %v6495_v41  ;;  %6510 = vrcp.f32 %v1748_v15  ;;  %v1952_v31 = vrot.slane %v1924_v47, %v7804_v33  ;;  %v1953_v3 = vcombine.high %v1931_v21, %v1931_v21 }
 0x30c   : > { %v1751_v32 = vadd.f32 1.0, %v6497_v45  ;;  %6512 = vrcp.f32 %v1749_v46  ;;  %v6499_v43 = vpop.eup %6498  ;;  %v1955_v58 = vcombine.high %v1945_v61, %v1945_v61  ;;  %v1976_v34 = vrot.slane %v8060_v26, 2 }
 0x30d   : > { %6514 = vrcp.f32 %v1750_v54  ;;  %v1975_v54 = vrot.slane %v8058_v5, 2  ;;  %v1882_v39 = vadd.f32 1.0, %v6499_v43  ;;  %v1977_v5 = vrot.slane %v8064_v44, 2 }
 0x30e   : > { %6516 = vrcp.f32 %v1751_v32  ;;  %v1978_v46 = vrot.slane %v8066_v9, 2  ;;  %v1954_v32 = vcombine.high %v1938_v2, %v1938_v2  ;;  %v1956_v47 = vcombine.high %v1952_v31, %v1952_v31 }
 0x30f   : > { %6518 = vpow2.f32 %v5791_v0 }
 0x310   : > { %v6501_v37 = vpop.eup %6500  ;;  %6520 = vpow2.f32 %v5792_v14 }
 0x311   : > { %v6503_v16 = vpop.eup %6502  ;;  %v1965_v62 = vmul.f32 %v6501_v37, %v1931_v21  ;;  %6522 = vpow2.f32 %v5793_v38 }
 0x312   : > { %v6505_v49 = vpop.eup %6504  ;;  %6524 = vpow2.f32 %v5794_v35  ;;  %v1979_v35 = vrot.slane %v8070_v12, 2 }
 0x313   : > { %v6507_v10 = vpop.eup %6506  ;;  %v1966_v57 = vmul.f32 %v6505_v49, %v1945_v61  ;;  %v1989_v15 = vadd.f32 %v1973_v55, %v1965_v62  ;;  %6526 = vpow2.f32 %v5795_v36  ;;  %v1980_v36 = vrot.slane %v8074_v19, 2 }
 0x314   : > { %v6509_v59 = vpop.eup %6508  ;;  %v1967_v1 = vmul.f32 %v6507_v10, %v1953_v3  ;;  %6528 = vpow2.f32 %v5796_v60 }
 0x315   : > { %v6511_v41 = vpop.eup %6510  ;;  %v1968_v45 = vmul.f32 %v6509_v59, %v1955_v58  ;;  %v1990_v11 = vadd.f32 %v1974_v63, %v1966_v57  ;;  %6530 = vtanh.f32 %v1989_v15 }
 0x316   : > { %v6513_v0 = vpop.eup %6512  ;;  %v1969_v56 = vmul.f32 %v6511_v41, %v1938_v2  ;;  %v1991_v14 = vadd.f32 %v1975_v54, %v1967_v1  ;;  %6532 = vrcp.f32 %v1882_v39  ;;  %v1883_v54 = vadd.f32 1.0, %v6503_v16 }
 0x317   : > { %v6515_v38 = vpop.eup %6514  ;;  %v1970_v21 = vmul.f32 %v6513_v0, %v1952_v31  ;;  %v1992_v26 = vadd.f32 %v1976_v34, %v1968_v45  ;;  %6534 = vtanh.f32 %v1990_v11 }
 0x318   : > { %v6517_v44 = vpop.eup %6516  ;;  %v1971_v43 = vmul.f32 %v6515_v38, %v1954_v32  ;;  %v1993_v61 = vadd.f32 %v1977_v5, %v1969_v56  ;;  %6536 = vtanh.f32 %v1991_v14  ;;  %v8115_v5 = vstv %s2039_s25  ;;  %s7378_s25 = smov [#allocation15]  }
 0x319   : > { %v6519_v9 = vpop.eup %6518  ;;  %v1972_v37 = vmul.f32 %v6517_v44, %v1956_v47  ;;  %v1994_v55 = vadd.f32 %v1978_v46, %v1970_v21  ;;  %6538 = vtanh.f32 %v1992_v26  ;;  %vm2041_vm9 = vcmp.eq.s32.totalorder %v8115_v5, 1 }
 0x31a   : > { %v6521_v63 = vpop.eup %6520  ;;  %v1995_v60 = vadd.f32 %v1979_v35, %v1971_v43  ;;  %6540 = vtanh.f32 %v1993_v61  ;;  %v1884_v62 = vadd.f32 1.0, %v6519_v9 }
 0x31b   : > { %v6523_v2 = vpop.eup %6522  ;;  %v1996_v12 = vadd.f32 %v1980_v36, %v1972_v37  ;;  %6542 = vtanh.f32 %v1994_v55  ;;  %v1885_v31 = vadd.f32 1.0, %v6521_v63 }
 0x31c   : > { %v6525_v49 = vpop.eup %6524  ;;  %6544 = vtanh.f32 %v1995_v60  ;;  %v1886_v3 = vadd.f32 1.0, %v6523_v2 }
 0x31d   : > { %v6527_v19 = vpop.eup %6526  ;;  %6546 = vtanh.f32 %v1996_v12  ;;  %v1887_v10 = vadd.f32 1.0, %v6525_v49 }
 0x31e   : > { %v6529_v39 = vpop.eup %6528  ;;  %6548 = vrcp.f32 %v1883_v54  ;;  %v1888_v57 = vadd.f32 1.0, %v6527_v19 }
 0x31f   : > { %v6531_v58 = vpop.eup %6530  ;;  %6550 = vrcp.f32 %v1884_v62  ;;  %v1889_v16 = vadd.f32 1.0, %v6529_v39 }
 0x320   : > { %v6533_v15 = vpop.eup %6532  ;;  %6552 = vrcp.f32 %v1885_v31 }
 0x321   : > { %v6535_v59 = vpop.eup %6534  ;;  %6554 = vrcp.f32 %v1886_v3  ;;  %v2005_v34 = vsub.f32 1.0, %v6533_v15  ;;  %v2021_v45 = vmul.f32 %v6533_v15, %v7919_v8 }
 0x322   : > { %v6537_v1 = vpop.eup %6536  ;;  %6556 = vrcp.f32 %v1887_v10 }
 0x323   : > { %v6539_v41 = vpop.eup %6538  ;;  %6558 = vrcp.f32 %v1888_v57  ;;  %v2013_v46 = vmul.f32 %v6531_v58, %v2005_v34 }
 0x324   : > { %v6541_v11 = vpop.eup %6540  ;;  %6560 = vrcp.f32 %v1889_v16 }
 0x325   : > { %v6543_v0 = vpop.eup %6542  ;;  %v2029_v32 = vadd.f32 %v2021_v45, %v2013_v46 }
 0x326   : > { %v6545_v56 = vpop.eup %6544 }
 0x327   : > { %v6547_v14 = vpop.eup %6546  ;;  %v8122_v38 = vsel %vm2041_vm9, %v2029_v32, %v7919_v8 }
 0x328   : > { %v6549_v47 = vpop.eup %6548  ;;  %2050 = vst [vmem:[#allocation4 + $0x1] sm:$0x1] %v8122_v38  ;;  %v2074_v21 = vpack.c.bf16 %v8122_v38, %v8122_v38 }
 0x329   : > { %v6551_v26 = vpop.eup %6550  ;;  %v2006_v44 = vsub.f32 1.0, %v6549_v47  ;;  %v2022_v61 = vmul.f32 %v6549_v47, %v7923_v40 }
 0x32a   : > { %v6553_v35 = vpop.eup %6552  ;;  %v2007_v43 = vsub.f32 1.0, %v6551_v26  ;;  %v2023_v55 = vmul.f32 %v6551_v26, %v7931_v13  ;;  %v2090_v63 = vunpack.c.l.b16 %v2074_v21 }
 0x32b   : > { %v6555_v9 = vpop.eup %6554  ;;  %v2008_v36 = vsub.f32 1.0, %v6553_v35  ;;  %v2014_v37 = vmul.f32 %v6535_v59, %v2006_v44  ;;  %v2024_v2 = vmul.f32 %v6553_v35, %v7938_v17 }
 0x32c   : > { %v6557_v8 = vpop.eup %6556  ;;  %v2009_v60 = vsub.f32 1.0, %v6555_v9  ;;  %v2015_v54 = vmul.f32 %v6537_v1, %v2007_v43  ;;  %v2025_v12 = vmul.f32 %v6555_v9, %v7949_v42 }
 0x32d   : > { %v6559_v62 = vpop.eup %6558  ;;  %v2010_v49 = vsub.f32 1.0, %v6557_v8  ;;  %v2016_v31 = vmul.f32 %v6539_v41, %v2008_v36  ;;  %v2026_v19 = vmul.f32 %v6557_v8, %v7957_v6  ;;  %v2030_v3 = vadd.f32 %v2022_v61, %v2014_v37 }
 0x32e   : > { %v6561_v39 = vpop.eup %6560  ;;  %v2011_v10 = vsub.f32 1.0, %v6559_v62  ;;  %v2017_v58 = vmul.f32 %v6541_v11, %v2009_v60  ;;  %v2027_v57 = vmul.f32 %v6559_v62, %v7961_v4  ;;  %v2031_v15 = vadd.f32 %v2023_v55, %v2015_v54 }
 0x32f   : > { %v2018_v16 = vmul.f32 %v6543_v0, %v2010_v49  ;;  %v2032_v59 = vadd.f32 %v2024_v2, %v2016_v31  ;;  %v8136_v34 = vsel %vm2041_vm9, %v2030_v3, %v7923_v40  ;;  %v2012_v1 = vsub.f32 1.0, %v6561_v39 }
 0x330   : > { %v2033_v46 = vadd.f32 %v2025_v12, %v2017_v58  ;;  %2051 = vst [vmem:[#allocation4 + $0x9] sm:$0x1] %v8136_v34  ;;  %v2019_v41 = vmul.f32 %v6545_v56, %v2011_v10  ;;  %v2028_v45 = vmul.f32 %v6561_v39, %v7966_v7  ;;  %v8143_v11 = vsel %vm2041_vm9, %v2031_v15, %v7931_v13 }
 0x331   : > { %v2020_v32 = vmul.f32 %v6547_v14, %v2012_v1  ;;  %v2034_v0 = vadd.f32 %v2026_v19, %v2018_v16  ;;  %v8148_v47 = vsel %vm2041_vm9, %v2032_v59, %v7938_v17  ;;  %2052 = vst [vmem:[#allocation4 + $0x11] sm:$0x1] %v8143_v11  ;;  %v2075_v40 = vpack.c.bf16 %v8136_v34, %v8136_v34  ;;  %v8207_v1 = vld [vmem:[#allocation11 + $0x20] ss:$12 sps:$4 sm:$0xff]  }
 0x332   : > { %v2035_v56 = vadd.f32 %v2027_v57, %v2019_v41  ;;  %v8156_v21 = vsel %vm2041_vm9, %v2033_v46, %v7949_v42  ;;  %2053 = vst [vmem:[#allocation4 + $0x19] sm:$0x1] %v8148_v47  ;;  %v2076_v13 = vpack.c.bf16 %v8143_v11, %v8143_v11  ;;  %v2077_v17 = vpack.c.bf16 %v8148_v47, %v8148_v47 }
 0x333   : > { %v2036_v14 = vadd.f32 %v2028_v45, %v2020_v32  ;;  %v8166_v26 = vsel %vm2041_vm9, %v2034_v0, %v7957_v6  ;;  %2054 = vst [vmem:[#allocation4 + $0x21] sm:$0x1] %v8156_v21  ;;  %v2078_v42 = vpack.c.bf16 %v8156_v21, %v8156_v21  ;;  %v2091_v44 = vunpack.c.l.b16 %v2075_v40  ;;  %v8253_v40 = vld [vmem:[#allocation3 + $0x2] ss:$8 sm:$0x7] }
 0x334   : > { %v8174_v35 = vsel %vm2041_vm9, %v2035_v56, %v7961_v4  ;;  %2055 = vst [vmem:[#allocation4 + $0x29] sm:$0x1] %v8166_v26  ;;  %v2079_v43 = vpack.c.bf16 %v8166_v26, %v8166_v26  ;;  %v2092_v61 = vunpack.c.l.b16 %v2076_v13  ;;  %v2093_v9 = vunpack.c.l.b16 %v2077_v17  ;;  %v8255_v56 = vld [vmem:[#allocation3 + $0x1a] ss:$8 sm:$0x7] }
 0x335   : > { %v8182_v6 = vsel %vm2041_vm9, %v2036_v14, %v7966_v7  ;;  %2056 = vst [vmem:[#allocation4 + $0x31] sm:$0x1] %v8174_v35  ;;  %v2080_v36 = vpack.c.bf16 %v8174_v35, %v8174_v35  ;;  %v2094_v37 = vunpack.c.l.b16 %v2078_v42  ;;  %v2098_v4 = vrot.slane %v2091_v44, 7  ;;  %v8259_v44 = vld [vmem:[#allocation3 + $0x32] ss:$8 sm:$0x7] }
 0x336   : > { %2057 = vst [vmem:[#allocation4 + $0x39] sm:$0x1] %v8182_v6  ;;  %v2081_v55 = vpack.c.bf16 %v8182_v6, %v8182_v6  ;;  %v2095_v8 = vunpack.c.l.b16 %v2079_v43  ;;  %v2100_v60 = vrot.slane %v2092_v61, 6  ;;  %v2102_v54 = vrot.slane %v2093_v9, 5 }
 0x337   : > { %v2096_v2 = vunpack.c.l.b16 %v2080_v36  ;;  %v2099_v5 = vsel %vm1551_vm2, %v2098_v4, %v2090_v63  ;;  %v2104_v62 = vrot.slane %v2094_v37, 4  ;;  %v8198_v63 = vld [vmem:[#allocation11 + $0x8] ss:$12 sps:$4 sm:$0xff]   ;;  %v9459_v16 = vmov 0.0  }
 0x338   : > { %v2097_v7 = vunpack.c.l.b16 %v2081_v55  ;;  %v2101_v12 = vsel %vm1554_vm3, %v2100_v60, %v2099_v5  ;;  %v2106_v31 = vrot.slane %v2095_v8, 3  ;;  %v9460_v59 = vmov 0   ;;  %v8261_v43 = vld [vmem:[#allocation3 + $0x4a] ss:$8 sm:$0x7] }
 0x339   : > { %v2103_v49 = vsel %vm1557_vm4, %v2102_v54, %v2101_v12  ;;  %v2108_v3 = vrot.slane %v2096_v2, 2  ;;  %v8265_v36 = vld [vmem:[#allocation3 + $0x62] ss:$8 sm:$0x7] }
 0x33a   : > { %v2105_v19 = vsel %vm1560_vm5, %v2104_v62, %v2103_v49  ;;  %v2110_v10 = vrot.slane %v2097_v7, 1  ;;  %v8267_v37 = vld [vmem:[#allocation3 + $0x7a] ss:$8 sm:$0x7] }
 0x33b   : > { %v2107_v39 = vsel %vm1563_vm6, %v2106_v31, %v2105_v19  ;;  %v8271_v54 = vld [vmem:[#allocation3 + $0x92] ss:$8 sm:$0x7] }
 0x33c   : > { %v2109_v58 = vsel %vm1566_vm7, %v2108_v3, %v2107_v39  ;;  %v8275_v62 = vld [vmem:[#allocation3 + $0xaa] ss:$8 sm:$0x7] }
 0x33d   : > { %v2111_v57 = vsel %vm1569_vm8, %v2110_v10, %v2109_v58 }
 0x33e   : > { %v2112_v15 = vpack.c.b16 %v2111_v57, %v2111_v57 }
 0x340   : > { %2147 = vmatmul.mubr.bf16.vlgmr.msra.gmra.mrb[8].mxu0 %v2112_v15  ;;  %6093 = vmatmul.mubr.bf16.vlgmr.msra.gmra.mrb[32].mxu1 %v2112_v15 }
 0x341   : > { %2656 = vmatpush1.bf16.msra.mxu0 %v7982_v20  ;;  %6097 = vmatpush3.bf16.msra.mxu1 %v8198_v63  ;;  %v8213_v20 = vld [vmem:[#allocation11 + $0x38] ss:$12 sps:$4 sm:$0xff]  }
 0x342   : > { %2657 = vmatprep.subr.bf16.mxu0 %v7986_v22  ;;  %6098 = vmatprep.subr.bf16.mxu1 %v9459_v16  ;;  %v8219_v22 = vld [vmem:[#allocation11 + $0x50] ss:$12 sps:$4 sm:$0xff]  }
 0x343   : > { %2687 = vmatprep.mubr.bf16.mxu0 %v9460_v59  ;;  %6112 = vmatprep.mubr.msk.bf16.mxu1 %vm7376_vm0, %v9459_v16 }
 0x345   : > { %2658 = vmatpush1.bf16.msra.mxu0 %v7993_v18  ;;  %6099 = vmatpush3.bf16.msra.mxu1 %v8207_v1  ;;  %v8225_v18 = vld [vmem:[#allocation11 + $0x68] ss:$12 sps:$4 sm:$0xff]  }
 0x346   : > { %2659 = vmatprep.subr.bf16.mxu0 %v7997_v24  ;;  %6100 = vmatprep.subr.bf16.mxu1 %v9459_v16  ;;  %v8231_v24 = vld [vmem:[#allocation11 + $0x80] ss:$12 sps:$4 sm:$0xff]  }
 0x349   : > { %2660 = vmatpush1.bf16.msra.mxu0 %v8001_v48  ;;  %6101 = vmatpush3.bf16.msra.mxu1 %v8213_v20  ;;  %v8237_v48 = vld [vmem:[#allocation11 + $0x98] ss:$12 sps:$4 sm:$0xff]  }
 0x34a   : > { %2661 = vmatprep.subr.bf16.mxu0 %v8005_v23  ;;  %6102 = vmatprep.subr.bf16.mxu1 %v9459_v16  ;;  %v8243_v23 = vld [vmem:[#allocation11 + $0xb0] ss:$12 sps:$4 sm:$0xff]  }
 0x34d   : > { %2662 = vmatpush1.bf16.msra.mxu0 %v8009_v25  ;;  %6103 = vmatpush3.bf16.msra.mxu1 %v8219_v22  ;;  %v9461_v25 = vld [vmem:[#allocation23_spill] sm:$0xff] }
 0x34e   : > { %2663 = vmatprep.subr.bf16.mxu0 %v8013_v50  ;;  %6104 = vmatprep.subr.bf16.mxu1 %v9459_v16 }
 0x351   : > { %2664 = vmatpush1.bf16.msra.mxu0 %v8017_v27  ;;  %6105 = vmatpush3.bf16.msra.mxu1 %v8225_v18 }
 0x352   : > { %2665 = vmatprep.subr.bf16.mxu0 %v8021_v51  ;;  %6106 = vmatprep.subr.bf16.mxu1 %v9459_v16 }
 0x355   : > { %2666 = vmatpush1.bf16.msra.mxu0 %v8025_v28  ;;  %6107 = vmatpush3.bf16.msra.mxu1 %v8231_v24 }
 0x356   : > { %2667 = vmatprep.subr.bf16.mxu0 %v8029_v52  ;;  %6108 = vmatprep.subr.bf16.mxu1 %v9459_v16 }
 0x359   : > { %2668 = vmatpush1.bf16.msra.mxu0 %v8033_v29  ;;  %6109 = vmatpush3.bf16.msra.mxu1 %v8237_v48 }
 0x35a   : > { %2669 = vmatprep.subr.bf16.mxu0 %v8037_v53  ;;  %6110 = vmatprep.subr.bf16.mxu1 %v9459_v16 }
 0x35d   : > { %2670 = vmatpush1.bf16.msra.mxu0 %v8041_v30  ;;  %6111 = vmatpush3.bf16.msra.mxu1 %v8243_v23 }
 0x35e   : > { %3196 = vmatprep.subr.bf16.mxu0 %v9461_v25  ;;  %6116 = vmatprep.subr.bf16.mxu1 %v9459_v16 }
 0x413   : > { %v2148_v50 = vpop.f32.mrb[8].mxu0  ;;  %v8248_v27 = vpop.f32.mrb[32].mxu1 }
 0x414   : > { %v2196_v51 = vcombine.high %v2148_v50, %v2148_v50  ;;  %v2203_v28 = vrot.slane %v2148_v50, %v7804_v33  ;;  %v2150_v52 = vpop.f32.mrb[9].mxu0  ;;  %v6094_v29 = vpop.f32.mrb[33].mxu1 }
 0x415   : > { %v2152_v53 = vpop.f32.mrb[10].mxu0  ;;  %v2192_v46 = vpop.f32.mrb[34].mxu1  ;;  %v2341_v9 = vrot.slane %v2150_v52, %v7804_v33  ;;  %v2334_v12 = vcombine.high %v2150_v52, %v2150_v52 }
 0x416   : > { %v2210_v30 = vrot.slane %v2196_v51, %v7804_v33  ;;  %v2211_v41 = vcombine.high %v2203_v28, %v2203_v28  ;;  %v2219_v45 = vrot.slane %v2203_v28, %v7804_v33  ;;  %v2153_v32 = vpop.f32.mrb[11].mxu0  ;;  %v6095_v0 = vpop.f32.mrb[35].mxu1  ;;  %v2317_v53 = vrot.slane %v8253_v40, 1 }
 0x417   : > { %v2349_v25 = vcombine.high %v2341_v9, %v2341_v9  ;;  %v2357_v51 = vrot.slane %v2341_v9, %v7804_v33  ;;  %v2348_v52 = vrot.slane %v2334_v12, %v7804_v33  ;;  %v8289_v32 = vld [vmem:[%s9414_s5] ss:$0 sm:$0xff] }
 0x418   : > { %v2212_v13 = vcombine.high %v2210_v30, %v2210_v30  ;;  %v2226_v17 = vrot.slane %v2210_v30, %v7804_v33  ;;  %v2233_v14 = vrot.slane %v2211_v41, %v7804_v33  ;;  %v2241_v42 = vcombine.high %v2219_v45, %v2219_v45 }
 0x419   : > { %v2253_v61 = vadd.f32 %v2219_v45, %v8253_v40  ;;  %v2371_v46 = vrot.slane %v2349_v25, %v7804_v33  ;;  %v2318_v30 = vrot.slane %v8255_v56, 1  ;;  %v2391_v41 = vadd.f32 %v2357_v51, %v2317_v53 }
 0x41a   : > { %v2240_v4 = vrot.slane %v2212_v13, %v7804_v33  ;;  %v2242_v55 = vcombine.high %v2226_v17, %v2226_v17  ;;  %v2243_v8 = vcombine.high %v2233_v14, %v2233_v14  ;;  %v2254_v60 = vadd.f32 %v2233_v14, %v8255_v56 }
 0x41b   : > { %v2255_v2 = vadd.f32 %v2241_v42, %v8259_v44  ;;  %v2257_v5 = vadd.f32 %v2226_v17, %v8265_v36  ;;  %v5797_v7 = vmul.f32 -1.442695, %v2253_v61  ;;  %v2350_v45 = vcombine.high %v2348_v52, %v2348_v52 }
 0x41c   : > { %v2244_v49 = vcombine.high %v2240_v4, %v2240_v4  ;;  %v2256_v31 = vadd.f32 %v2243_v8, %v8261_v43  ;;  %v2258_v19 = vadd.f32 %v2240_v4, %v8267_v37  ;;  %v2259_v3 = vadd.f32 %v2242_v55, %v8271_v54 }
 0x41d   : > { %6562 = vpow2.f32 %v5797_v7  ;;  %v5798_v39 = vmul.f32 -1.442695, %v2254_v60  ;;  %v5799_v10 = vmul.f32 -1.442695, %v2255_v2  ;;  %v5801_v15 = vmul.f32 -1.442695, %v2257_v5 }
 0x41e   : > { %v2260_v58 = vadd.f32 %v2244_v49, %v8275_v62  ;;  %v5800_v57 = vmul.f32 -1.442695, %v2256_v31  ;;  %v5802_v50 = vmul.f32 -1.442695, %v2258_v19  ;;  %v5803_v28 = vmul.f32 -1.442695, %v2259_v3 }
 0x41f   : > { %6564 = vpow2.f32 %v5798_v39  ;;  %v2447_v0 = vadd.f32 %v8289_v32, %v8248_v27  ;;  %v2392_v13 = vadd.f32 %v2371_v46, %v2318_v30  ;;  %v2319_v17 = vrot.slane %v8259_v44, 1 }
 0x420   : > { %6566 = vpow2.f32 %v5799_v10  ;;  %v5804_v29 = vmul.f32 -1.442695, %v2260_v58  ;;  %v2320_v14 = vrot.slane %v8261_v43, 1  ;;  %v2364_v61 = vrot.slane %v2348_v52, %v7804_v33 }
 0x421   : > { %6568 = vpow2.f32 %v5800_v57  ;;  %v2379_v9 = vcombine.high %v2357_v51, %v2357_v51  ;;  %v5805_v4 = vmul.f32 -1.442695, %v2391_v41  ;;  %v5806_v55 = vmul.f32 -1.442695, %v2392_v13 }
 0x422   : > { %6570 = vpow2.f32 %v5801_v15  ;;  %v2321_v60 = vrot.slane %v8265_v36, 1  ;;  %v2378_v2 = vrot.slane %v2350_v45, %v7804_v33  ;;  %v2381_v5 = vcombine.high %v2371_v46, %v2371_v46 }
 0x423   : > { %6572 = vpow2.f32 %v5802_v50  ;;  %v2449_v12 = vcombine.high %v2447_v0, %v2447_v0  ;;  %v2322_v27 = vrot.slane %v8267_v37, 1  ;;  %v2323_v49 = vrot.slane %v8271_v54, 1 }
 0x424   : > { %6574 = vpow2.f32 %v5803_v28  ;;  %v2456_v3 = vrot.slane %v2447_v0, %v7804_v33  ;;  %v2324_v39 = vrot.slane %v8275_v62, 1  ;;  %v2380_v57 = vcombine.high %v2364_v61, %v2364_v61 }
 0x425   : > { %6576 = vpow2.f32 %v5804_v29  ;;  %v2393_v15 = vadd.f32 %v2379_v9, %v2319_v17  ;;  %v2382_v51 = vcombine.high %v2378_v2, %v2378_v2  ;;  %v2394_v28 = vadd.f32 %v2381_v5, %v2320_v14 }
 0x426   : > { %6578 = vpow2.f32 %v5805_v4  ;;  %v2463_v53 = vrot.slane %v2449_v12, %v7804_v33  ;;  %v2395_v46 = vadd.f32 %v2364_v61, %v2321_v60  ;;  %v2464_v45 = vcombine.high %v2456_v3, %v2456_v3 }
 0x427   : > { %v6563_v42 = vpop.eup %6562  ;;  %v2396_v0 = vadd.f32 %v2378_v2, %v2322_v27  ;;  %v2397_v17 = vadd.f32 %v2380_v57, %v2323_v49  ;;  %v5807_v9 = vmul.f32 -1.442695, %v2393_v15  ;;  %v5808_v14 = vmul.f32 -1.442695, %v2394_v28 }
 0x428   : > { %v2285_v8 = vadd.f32 1.0, %v6563_v42  ;;  %v2465_v5 = vcombine.high %v2463_v53, %v2463_v53  ;;  %v2472_v61 = vrot.slane %v2456_v3, %v7804_v33  ;;  %v2486_v12 = vrot.slane %v2464_v45, %v7804_v33 }
 0x429   : > { %v6565_v7 = vpop.eup %6564  ;;  %v5810_v60 = vmul.f32 -1.442695, %v2396_v0  ;;  %v5811_v2 = vmul.f32 -1.442695, %v2397_v17  ;;  %v2514_v49 = vrot.slane %v8253_v40, 2 }
 0x42a   : > { %v6567_v31 = vpop.eup %6566  ;;  %v2286_v19 = vadd.f32 1.0, %v6565_v7  ;;  %6580 = vrcp.f32 %v2285_v8  ;;  %v5809_v8 = vmul.f32 -1.442695, %v2395_v46  ;;  %v2493_v15 = vrot.slane %v2465_v5, %v7804_v33 }
 0x42b   : > { %v6569_v10 = vpop.eup %6568  ;;  %v2287_v58 = vadd.f32 1.0, %v6567_v31  ;;  %6582 = vpow2.f32 %v5806_v55  ;;  %v2398_v55 = vadd.f32 %v2382_v51, %v2324_v39  ;;  %v2515_v31 = vrot.slane %v8255_v56, 2 }
 0x42c   : > { %v6571_v25 = vpop.eup %6570  ;;  %v2288_v50 = vadd.f32 1.0, %v6569_v10  ;;  %6584 = vrcp.f32 %v2286_v19  ;;  %v2516_v10 = vrot.slane %v8259_v44, 2  ;;  %v2496_v28 = vcombine.high %v2486_v12, %v2486_v12 }
 0x42d   : > { %v6573_v52 = vpop.eup %6572  ;;  %v2289_v29 = vadd.f32 1.0, %v6571_v25  ;;  %6586 = vrcp.f32 %v2287_v58  ;;  %v5812_v19 = vmul.f32 -1.442695, %v2398_v55  ;;  %v2479_v58 = vrot.slane %v2463_v53, %v7804_v33 }
 0x42e   : > { %v6575_v30 = vpop.eup %6574  ;;  %v2290_v41 = vadd.f32 1.0, %v6573_v52  ;;  %6588 = vrcp.f32 %v2288_v50  ;;  %v2494_v25 = vcombine.high %v2472_v61, %v2472_v61  ;;  %v2518_v44 = vrot.slane %v8265_v36, 2 }
 0x42f   : > { %v6577_v13 = vpop.eup %6576  ;;  %v2291_v42 = vadd.f32 1.0, %v6575_v30  ;;  %6590 = vrcp.f32 %v2289_v29  ;;  %v2517_v29 = vrot.slane %v8261_v43, 2  ;;  %v2519_v30 = vrot.slane %v8267_v37, 2 }
 0x430   : > { %v2292_v4 = vadd.f32 1.0, %v6577_v13  ;;  %6592 = vrcp.f32 %v2290_v41  ;;  %v6579_v7 = vpop.eup %6578  ;;  %v2495_v13 = vcombine.high %v2479_v58, %v2479_v58 }
 0x431   : > { %6594 = vrcp.f32 %v2291_v42  ;;  %v2423_v50 = vadd.f32 1.0, %v6579_v7 }
 0x432   : > { %6596 = vrcp.f32 %v2292_v4  ;;  %v2497_v4 = vcombine.high %v2493_v15, %v2493_v15 }
 0x433   : > { %6598 = vpow2.f32 %v5807_v9 }
 0x434   : > { %v6581_v27 = vpop.eup %6580  ;;  %6600 = vpow2.f32 %v5808_v14  ;;  %v2520_v14 = vrot.slane %v8271_v54, 2 }
 0x435   : > { %v6583_v39 = vpop.eup %6582  ;;  %v2506_v57 = vmul.f32 %v6581_v27, %v2472_v61  ;;  %6602 = vpow2.f32 %v5809_v8  ;;  %v2521_v61 = vrot.slane %v8275_v62, 2 }
 0x436   : > { %v6585_v3 = vpop.eup %6584  ;;  %6604 = vpow2.f32 %v5810_v60  ;;  %v2424_v27 = vadd.f32 1.0, %v6583_v39 }
 0x437   : > { %v6587_v51 = vpop.eup %6586  ;;  %v2507_v40 = vmul.f32 %v6585_v3, %v2486_v12  ;;  %v2530_v52 = vadd.f32 %v2514_v49, %v2506_v57  ;;  %6606 = vpow2.f32 %v5811_v2 }
 0x438   : > { %v6589_v56 = vpop.eup %6588  ;;  %v2508_v53 = vmul.f32 %v6587_v51, %v2494_v25  ;;  %6608 = vpow2.f32 %v5812_v19 }
 0x439   : > { %v6591_v46 = vpop.eup %6590  ;;  %v2509_v41 = vmul.f32 %v6589_v56, %v2496_v28  ;;  %v2531_v45 = vadd.f32 %v2515_v31, %v2507_v40  ;;  %6610 = vtanh.f32 %v2530_v52  ;;  %v8322_v40 = vstv %s2580_s15 }
 0x43a   : > { %v6593_v0 = vpop.eup %6592  ;;  %v2510_v42 = vmul.f32 %v6591_v46, %v2479_v58  ;;  %v2532_v17 = vadd.f32 %v2516_v10, %v2508_v53  ;;  %6612 = vrcp.f32 %v2423_v50  ;;  %vm2582_vm10 = vcmp.eq.s32.totalorder %v8322_v40, 1 }
 0x43b   : > { %v6595_v9 = vpop.eup %6594  ;;  %v2511_v55 = vmul.f32 %v6593_v0, %v2493_v15  ;;  %v2533_v43 = vadd.f32 %v2517_v29, %v2509_v41  ;;  %6614 = vtanh.f32 %v2531_v45 }
 0x43c   : > { %v6597_v36 = vpop.eup %6596  ;;  %v2512_v8 = vmul.f32 %v6595_v9, %v2495_v13  ;;  %v2534_v5 = vadd.f32 %v2518_v44, %v2510_v42  ;;  %6616 = vtanh.f32 %v2532_v17 }
 0x43d   : > { %v6599_v37 = vpop.eup %6598  ;;  %v2513_v60 = vmul.f32 %v6597_v36, %v2497_v4  ;;  %v2535_v7 = vadd.f32 %v2519_v30, %v2511_v55  ;;  %6618 = vtanh.f32 %v2533_v43 }
 0x43e   : > { %v6601_v12 = vpop.eup %6600  ;;  %v2536_v2 = vadd.f32 %v2520_v14, %v2512_v8  ;;  %6620 = vtanh.f32 %v2534_v5  ;;  %v2425_v31 = vadd.f32 1.0, %v6599_v37 }
 0x43f   : > { %v6603_v49 = vpop.eup %6602  ;;  %v2537_v54 = vadd.f32 %v2521_v61, %v2513_v60  ;;  %6622 = vtanh.f32 %v2535_v7  ;;  %v2426_v10 = vadd.f32 1.0, %v6601_v12 }
 0x440   : > { %v6605_v19 = vpop.eup %6604  ;;  %6624 = vtanh.f32 %v2536_v2  ;;  %v2427_v58 = vadd.f32 1.0, %v6603_v49 }
 0x441   : > { %v6607_v62 = vpop.eup %6606  ;;  %6626 = vtanh.f32 %v2537_v54  ;;  %v2428_v3 = vadd.f32 1.0, %v6605_v19 }
 0x442   : > { %v6609_v57 = vpop.eup %6608  ;;  %6628 = vrcp.f32 %v2424_v27  ;;  %v2429_v25 = vadd.f32 1.0, %v6607_v62 }
 0x443   : > { %v6611_v15 = vpop.eup %6610  ;;  %6630 = vrcp.f32 %v2425_v31  ;;  %v2430_v39 = vadd.f32 1.0, %v6609_v57 }
 0x444   : > { %v6613_v50 = vpop.eup %6612  ;;  %6632 = vrcp.f32 %v2426_v10 }
 0x445   : > { %v6615_v51 = vpop.eup %6614  ;;  %6634 = vrcp.f32 %v2427_v58  ;;  %v2546_v28 = vsub.f32 1.0, %v6613_v50  ;;  %v2562_v44 = vmul.f32 %v6613_v50, %v8122_v38 }
 0x446   : > { %v6617_v52 = vpop.eup %6616  ;;  %6636 = vrcp.f32 %v2428_v3 }
 0x447   : > { %v6619_v56 = vpop.eup %6618  ;;  %6638 = vrcp.f32 %v2429_v25  ;;  %v2554_v29 = vmul.f32 %v6611_v15, %v2546_v28 }
 0x448   : > { %v6621_v53 = vpop.eup %6620  ;;  %6640 = vrcp.f32 %v2430_v39 }
 0x449   : > { %v6623_v46 = vpop.eup %6622  ;;  %v2570_v30 = vadd.f32 %v2562_v44, %v2554_v29 }
 0x44a   : > { %v6625_v41 = vpop.eup %6624 }
 0x44b   : > { %v6627_v45 = vpop.eup %6626  ;;  %v8329_v0 = vsel %vm2582_vm10, %v2570_v30, %v8122_v38 }
 0x44c   : > { %v6629_v13 = vpop.eup %6628  ;;  %2591 = vst [vmem:[#allocation4 + $0x2] sm:$0x1] %v8329_v0  ;;  %v2615_v42 = vpack.c.bf16 %v8329_v0, %v8329_v0 }
 0x44d   : > { %v6631_v17 = vpop.eup %6630  ;;  %v2547_v9 = vsub.f32 1.0, %v6629_v13  ;;  %v2563_v43 = vmul.f32 %v6629_v13, %v8136_v34 }
 0x44e   : > { %v6633_v4 = vpop.eup %6632  ;;  %v2548_v55 = vsub.f32 1.0, %v6631_v17  ;;  %v2564_v5 = vmul.f32 %v6631_v17, %v8143_v11  ;;  %v2631_v37 = vunpack.c.l.b16 %v2615_v42 }
 0x44f   : > { %v6635_v36 = vpop.eup %6634  ;;  %v2549_v14 = vsub.f32 1.0, %v6633_v4  ;;  %v2555_v8 = vmul.f32 %v6615_v51, %v2547_v9  ;;  %v2565_v7 = vmul.f32 %v6633_v4, %v8148_v47 }
 0x450   : > { %v6637_v38 = vpop.eup %6636  ;;  %v2550_v61 = vsub.f32 1.0, %v6635_v36  ;;  %v2556_v60 = vmul.f32 %v6617_v52, %v2548_v55  ;;  %v2566_v12 = vmul.f32 %v6635_v36, %v8156_v21 }
 0x451   : > { %v6639_v2 = vpop.eup %6638  ;;  %v2551_v27 = vsub.f32 1.0, %v6637_v38  ;;  %v2557_v49 = vmul.f32 %v6619_v56, %v2549_v14  ;;  %v2567_v54 = vmul.f32 %v6637_v38, %v8166_v26  ;;  %v2571_v31 = vadd.f32 %v2563_v43, %v2555_v8 }
 0x452   : > { %v6641_v19 = vpop.eup %6640  ;;  %v2552_v10 = vsub.f32 1.0, %v6639_v2  ;;  %v2558_v62 = vmul.f32 %v6621_v53, %v2550_v61  ;;  %v2568_v58 = vmul.f32 %v6639_v2, %v8174_v35  ;;  %v2572_v57 = vadd.f32 %v2564_v5, %v2556_v60 }
 0x453   : > { %v2559_v3 = vmul.f32 %v6623_v46, %v2551_v27  ;;  %v2573_v15 = vadd.f32 %v2565_v7, %v2557_v49  ;;  %v8343_v25 = vsel %vm2582_vm10, %v2571_v31, %v8136_v34  ;;  %v2553_v50 = vsub.f32 1.0, %v6641_v19 }
 0x454   : > { %v2574_v39 = vadd.f32 %v2566_v12, %v2558_v62  ;;  %2592 = vst [vmem:[#allocation4 + $0xa] sm:$0x1] %v8343_v25  ;;  %v2560_v51 = vmul.f32 %v6625_v41, %v2552_v10  ;;  %v2569_v28 = vmul.f32 %v6641_v19, %v8182_v6  ;;  %v8350_v52 = vsel %vm2582_vm10, %v2572_v57, %v8143_v11  ;;  %v8408_v10 = vld [vmem:[#allocation11 + $0x1c] ss:$12 sps:$4 sm:$0xff]   ;;  %v8415_v62 = vld [vmem:[#allocation11 + $0x18] ss:$12 sps:$4 sm:$0xff]  }
 0x455   : > { %v2561_v56 = vmul.f32 %v6627_v45, %v2553_v50  ;;  %v2575_v29 = vadd.f32 %v2567_v54, %v2559_v3  ;;  %v8355_v44 = vsel %vm2582_vm10, %v2573_v15, %v8148_v47  ;;  %2593 = vst [vmem:[#allocation4 + $0x12] sm:$0x1] %v8350_v52  ;;  %v2616_v34 = vpack.c.bf16 %v8343_v25, %v8343_v25  ;;  %v8427_v57 = vld [vmem:[#allocation11 + $0x4c] ss:$12 sps:$4 sm:$0xff]   ;;  %v8431_v3 = vld [vmem:[#allocation11 + $0x48] ss:$12 sps:$4 sm:$0xff]  }
 0x456   : > { %v2576_v53 = vadd.f32 %v2568_v58, %v2560_v51  ;;  %v8363_v46 = vsel %vm2582_vm10, %v2574_v39, %v8156_v21  ;;  %2594 = vst [vmem:[#allocation4 + $0x1a] sm:$0x1] %v8355_v44  ;;  %v2617_v11 = vpack.c.bf16 %v8350_v52, %v8350_v52  ;;  %v2618_v47 = vpack.c.bf16 %v8355_v44, %v8355_v44  ;;  %v8419_v58 = vld [vmem:[#allocation11 + $0x34] ss:$12 sps:$4 sm:$0xff]   ;;  %v8447_v50 = vld [vmem:[#allocation11 + $0x78] ss:$12 sps:$4 sm:$0xff]  }
 0x457   : > { %v2577_v30 = vadd.f32 %v2569_v28, %v2561_v56  ;;  %v8373_v41 = vsel %vm2582_vm10, %v2575_v29, %v8166_v26  ;;  %2595 = vst [vmem:[#allocation4 + $0x22] sm:$0x1] %v8363_v46  ;;  %v2619_v21 = vpack.c.bf16 %v8363_v46, %v8363_v46  ;;  %v2632_v45 = vunpack.c.l.b16 %v2616_v34  ;;  %v8439_v15 = vld [vmem:[#allocation11 + $0x60] ss:$12 sps:$4 sm:$0xff]   ;;  %v8455_v39 = vld [vmem:[#allocation11 + $0x90] ss:$12 sps:$4 sm:$0xff]  }
 0x458   : > { %v8381_v13 = vsel %vm2582_vm10, %v2576_v53, %v8174_v35  ;;  %2596 = vst [vmem:[#allocation4 + $0x2a] sm:$0x1] %v8373_v41  ;;  %v2620_v42 = vpack.c.bf16 %v8373_v41, %v8373_v41  ;;  %v2633_v17 = vunpack.c.l.b16 %v2617_v11  ;;  %v2634_v9 = vunpack.c.l.b16 %v2618_v47  ;;  %v8463_v51 = vld [vmem:[#allocation11 + $0xa8] ss:$12 sps:$4 sm:$0xff]  }
 0x459   : > { %v8389_v26 = vsel %vm2582_vm10, %v2577_v30, %v8182_v6  ;;  %2597 = vst [vmem:[#allocation4 + $0x32] sm:$0x1] %v8381_v13  ;;  %v2621_v4 = vpack.c.bf16 %v8381_v13, %v8381_v13  ;;  %v2635_v55 = vunpack.c.l.b16 %v2619_v21  ;;  %v2639_v35 = vrot.slane %v2632_v45, 7  ;;  %9464 = vst [vmem:[#allocation24_spill] sm:$0xff] %v8463_v51 }
 0x45a   : > { %2598 = vst [vmem:[#allocation4 + $0x3a] sm:$0x1] %v8389_v26  ;;  %v2622_v43 = vpack.c.bf16 %v8389_v26, %v8389_v26  ;;  %v2636_v36 = vunpack.c.l.b16 %v2620_v42  ;;  %v2641_v14 = vrot.slane %v2633_v17, 6  ;;  %v2643_v8 = vrot.slane %v2634_v9, 5 }
 0x45b   : > { %v2637_v5 = vunpack.c.l.b16 %v2621_v4  ;;  %v2640_v40 = vsel %vm1551_vm2, %v2639_v35, %v2631_v37  ;;  %v2645_v61 = vrot.slane %v2635_v55, 4  ;;  %v8404_v37 = vld [vmem:[#allocation11] ss:$12 sps:$4 sm:$0xff]  }
 0x45c   : > { %v2638_v6 = vunpack.c.l.b16 %v2622_v43  ;;  %v2642_v38 = vsel %vm1554_vm3, %v2641_v14, %v2640_v40  ;;  %v2647_v7 = vrot.slane %v2636_v36, 3  ;;  %v8474_v17 = vld [vmem:[#allocation3 + $0x3] ss:$8 sm:$0x7] }
 0x45d   : > { %v2644_v60 = vsel %vm1557_vm4, %v2643_v8, %v2642_v38  ;;  %v2649_v2 = vrot.slane %v2637_v5, 2  ;;  %v8476_v9 = vld [vmem:[#allocation3 + $0x1b] ss:$8 sm:$0x7] }
 0x45e   : > { %v2646_v12 = vsel %vm1560_vm5, %v2645_v61, %v2644_v60  ;;  %v2651_v49 = vrot.slane %v2638_v6, 1  ;;  %v8480_v36 = vld [vmem:[#allocation3 + $0x33] ss:$8 sm:$0x7] }
 0x45f   : > { %v2648_v27 = vsel %vm1563_vm6, %v2647_v7, %v2646_v12  ;;  %v8482_v14 = vld [vmem:[#allocation3 + $0x4b] ss:$8 sm:$0x7] }
 0x460   : > { %v2650_v54 = vsel %vm1566_vm7, %v2649_v2, %v2648_v27  ;;  %v8486_v40 = vld [vmem:[#allocation3 + $0x63] ss:$8 sm:$0x7] }
 0x461   : > { %v2652_v31 = vsel %vm1569_vm8, %v2651_v49, %v2650_v54  ;;  %v8488_v6 = vld [vmem:[#allocation3 + $0x7b] ss:$8 sm:$0x7] }
 0x462   : > { %v2653_v19 = vpack.c.b16 %v2652_v31, %v2652_v31  ;;  %v8492_v12 = vld [vmem:[#allocation3 + $0x93] ss:$8 sm:$0x7] }
 0x463   : > { %v8496_v31 = vld [vmem:[#allocation3 + $0xab] ss:$8 sm:$0x7] }
 0x464   : > { %2688 = vmatmul.mubr.bf16.vlgmr.msra.gmra.mrb[12].mxu0 %v2653_v19  ;;  %6113 = vmatmul.mubr.bf16.vlgmr.msra.gmra.mrb[36].mxu1 %v2653_v19 }
 0x465   : > { %3197 = vmatpush1.bf16.msra.mxu0 %v8404_v37  ;;  %6117 = vmatpush3.bf16.msra.mxu1 %v8198_v63  ;;  %v8423_v63 = vld [vmem:[#allocation11 + $0x30] ss:$12 sps:$4 sm:$0xff]  }
 0x466   : > { %3198 = vmatprep.subr.bf16.mxu0 %v8408_v10  ;;  %6118 = vmatprep.subr.bf16.mxu1 %v9459_v16 }
 0x467   : > { %3228 = vmatprep.mubr.bf16.mxu0 %v9460_v59  ;;  %6132 = vmatprep.mubr.msk.bf16.mxu1 %vm7376_vm0, %v9459_v16 }
 0x469   : > { %3199 = vmatpush1.bf16.msra.mxu0 %v8415_v62  ;;  %6119 = vmatpush3.bf16.msra.mxu1 %v8207_v1  ;;  %v8435_v1 = vld [vmem:[#allocation11 + $0x64] ss:$12 sps:$4 sm:$0xff]  }
 0x46a   : > { %3200 = vmatprep.subr.bf16.mxu0 %v8419_v58  ;;  %6120 = vmatprep.subr.bf16.mxu1 %v9459_v16 }
 0x46d   : > { %3201 = vmatpush1.bf16.msra.mxu0 %v8423_v63  ;;  %6121 = vmatpush3.bf16.msra.mxu1 %v8213_v20  ;;  %v8443_v20 = vld [vmem:[#allocation11 + $0x7c] ss:$12 sps:$4 sm:$0xff]  }
 0x46e   : > { %3202 = vmatprep.subr.bf16.mxu0 %v8427_v57  ;;  %6122 = vmatprep.subr.bf16.mxu1 %v9459_v16 }
 0x471   : > { %3203 = vmatpush1.bf16.msra.mxu0 %v8431_v3  ;;  %6123 = vmatpush3.bf16.msra.mxu1 %v8219_v22  ;;  %v8451_v22 = vld [vmem:[#allocation11 + $0x94] ss:$12 sps:$4 sm:$0xff]  }
 0x472   : > { %3204 = vmatprep.subr.bf16.mxu0 %v8435_v1  ;;  %6124 = vmatprep.subr.bf16.mxu1 %v9459_v16 }
 0x475   : > { %3205 = vmatpush1.bf16.msra.mxu0 %v8439_v15  ;;  %6125 = vmatpush3.bf16.msra.mxu1 %v8225_v18  ;;  %v8459_v18 = vld [vmem:[#allocation11 + $0xac] ss:$12 sps:$4 sm:$0xff]  }
 0x476   : > { %3206 = vmatprep.subr.bf16.mxu0 %v8443_v20  ;;  %6126 = vmatprep.subr.bf16.mxu1 %v9459_v16  ;;  %9463 = vst [vmem:[#allocation23_spill] sm:$0xff] %v8459_v18 }
 0x479   : > { %3207 = vmatpush1.bf16.msra.mxu0 %v8447_v50  ;;  %6127 = vmatpush3.bf16.msra.mxu1 %v8231_v24  ;;  %v8467_v24 = vld [vmem:[#allocation11 + $0x4] ss:$12 sps:$4 sm:$0xff]  }
 0x47a   : > { %3208 = vmatprep.subr.bf16.mxu0 %v8451_v22  ;;  %6128 = vmatprep.subr.bf16.mxu1 %v9459_v16  ;;  %9465 = vst [vmem:[#allocation25_spill] sm:$0xff] %v8467_v24 }
 0x47d   : > { %3209 = vmatpush1.bf16.msra.mxu0 %v8455_v39  ;;  %6129 = vmatpush3.bf16.msra.mxu1 %v8237_v48 }
 0x47e   : > { %3210 = vmatprep.subr.bf16.mxu0 %v8459_v18  ;;  %6130 = vmatprep.subr.bf16.mxu1 %v9459_v16 }
 0x481   : > { %3211 = vmatpush1.bf16.msra.mxu0 %v8463_v51  ;;  %6131 = vmatpush3.bf16.msra.mxu1 %v8243_v23 }
 0x482   : > { %3737 = vmatprep.subr.bf16.mxu0 %v8467_v24  ;;  %6136 = vmatprep.subr.bf16.mxu1 %v9459_v16 }
 0x537   : > { %v2689_v28 = vpop.f32.mrb[12].mxu0  ;;  %v2730_v48 = vpop.f32.mrb[36].mxu1 }
 0x538   : > { %v2737_v56 = vcombine.high %v2689_v28, %v2689_v28  ;;  %v2744_v29 = vrot.slane %v2689_v28, %v7804_v33  ;;  %v2691_v34 = vpop.f32.mrb[13].mxu0  ;;  %v6114_v53 = vpop.f32.mrb[37].mxu1 }
 0x539   : > { %v2693_v11 = vpop.f32.mrb[14].mxu0  ;;  %v2733_v47 = vpop.f32.mrb[38].mxu1  ;;  %v2882_v5 = vrot.slane %v2691_v34, %v7804_v33  ;;  %v2875_v54 = vcombine.high %v2691_v34, %v2691_v34 }
 0x53a   : > { %v2751_v30 = vrot.slane %v2737_v56, %v7804_v33  ;;  %v2752_v21 = vcombine.high %v2744_v29, %v2744_v29  ;;  %v2760_v23 = vrot.slane %v2744_v29, %v7804_v33  ;;  %v2694_v45 = vpop.f32.mrb[15].mxu0  ;;  %v6115_v42 = vpop.f32.mrb[39].mxu1 }
 0x53b   : > { %v2898_v34 = vrot.slane %v2882_v5, %v7804_v33 }
 0x53c   : > { %v2753_v4 = vcombine.high %v2751_v30, %v2751_v30  ;;  %v2767_v55 = vrot.slane %v2751_v30, %v7804_v33  ;;  %v2774_v35 = vrot.slane %v2752_v21, %v7804_v33  ;;  %v2782_v43 = vcombine.high %v2760_v23, %v2760_v23 }
 0x53d   : > { %v2794_v8 = vadd.f32 %v2760_v23, %v8474_v17  ;;  %v2890_v23 = vcombine.high %v2882_v5, %v2882_v5  ;;  %v2988_v5 = vadd.f32 %v8289_v32, %v2730_v48  ;;  %v2863_v32 = vrot.slane %v8488_v6, 1 }
 0x53e   : > { %v2781_v38 = vrot.slane %v2753_v4, %v7804_v33  ;;  %v2783_v61 = vcombine.high %v2767_v55, %v2767_v55  ;;  %v2784_v60 = vcombine.high %v2774_v35, %v2774_v35  ;;  %v2795_v7 = vadd.f32 %v2774_v35, %v8476_v9 }
 0x53f   : > { %v2796_v2 = vadd.f32 %v2782_v43, %v8480_v36  ;;  %v2798_v27 = vadd.f32 %v2767_v55, %v8486_v40  ;;  %v5813_v49 = vmul.f32 -1.442695, %v2794_v8  ;;  %v2889_v4 = vrot.slane %v2875_v54, %v7804_v33 }
 0x540   : > { %v2785_v19 = vcombine.high %v2781_v38, %v2781_v38  ;;  %v2797_v28 = vadd.f32 %v2784_v60, %v8482_v14  ;;  %v2799_v56 = vadd.f32 %v2781_v38, %v8488_v6  ;;  %v2800_v29 = vadd.f32 %v2783_v61, %v8492_v12 }
 0x541   : > { %6642 = vpow2.f32 %v5813_v49  ;;  %v5814_v53 = vmul.f32 -1.442695, %v2795_v7  ;;  %v5815_v11 = vmul.f32 -1.442695, %v2796_v2  ;;  %v5817_v21 = vmul.f32 -1.442695, %v2798_v27 }
 0x542   : > { %v2801_v47 = vadd.f32 %v2785_v19, %v8496_v31  ;;  %v5816_v30 = vmul.f32 -1.442695, %v2797_v28  ;;  %v5818_v45 = vmul.f32 -1.442695, %v2799_v56  ;;  %v5819_v42 = vmul.f32 -1.442695, %v2800_v29 }
 0x543   : > { %6644 = vpow2.f32 %v5814_v53  ;;  %v2858_v35 = vrot.slane %v8474_v17, 1  ;;  %v2912_v43 = vrot.slane %v2890_v23, %v7804_v33  ;;  %v2859_v8 = vrot.slane %v8476_v9, 1 }
 0x544   : > { %6646 = vpow2.f32 %v5815_v11  ;;  %v5820_v55 = vmul.f32 -1.442695, %v2801_v47  ;;  %v2891_v61 = vcombine.high %v2889_v4, %v2889_v4  ;;  %v2860_v7 = vrot.slane %v8480_v36, 1 }
 0x545   : > { %6648 = vpow2.f32 %v5816_v30  ;;  %v2932_v38 = vadd.f32 %v2898_v34, %v2858_v35  ;;  %v2933_v60 = vadd.f32 %v2912_v43, %v2859_v8  ;;  %v2861_v2 = vrot.slane %v8482_v14, 1 }
 0x546   : > { %6650 = vpow2.f32 %v5817_v21  ;;  %v2905_v49 = vrot.slane %v2889_v4, %v7804_v33  ;;  %v2920_v54 = vcombine.high %v2898_v34, %v2898_v34  ;;  %v2862_v29 = vrot.slane %v8486_v40, 1 }
 0x547   : > { %6652 = vpow2.f32 %v5818_v45  ;;  %v5821_v19 = vmul.f32 -1.442695, %v2932_v38  ;;  %v5822_v28 = vmul.f32 -1.442695, %v2933_v60  ;;  %v2919_v53 = vrot.slane %v2891_v61, %v7804_v33 }
 0x548   : > { %6654 = vpow2.f32 %v5819_v42  ;;  %v2922_v11 = vcombine.high %v2912_v43, %v2912_v43  ;;  %v2990_v30 = vcombine.high %v2988_v5, %v2988_v5  ;;  %v2864_v48 = vrot.slane %v8492_v12, 1 }
 0x549   : > { %6656 = vpow2.f32 %v5820_v55  ;;  %v2997_v45 = vrot.slane %v2988_v5, %v7804_v33  ;;  %v2865_v34 = vrot.slane %v8496_v31, 1  ;;  %v2921_v55 = vcombine.high %v2905_v49, %v2905_v49 }
 0x54a   : > { %6658 = vpow2.f32 %v5821_v19  ;;  %v2934_v35 = vadd.f32 %v2920_v54, %v2860_v7  ;;  %v2923_v38 = vcombine.high %v2919_v53, %v2919_v53  ;;  %v2935_v61 = vadd.f32 %v2922_v11, %v2861_v2 }
 0x54b   : > { %v6643_v27 = vpop.eup %6642  ;;  %v3004_v19 = vrot.slane %v2990_v30, %v7804_v33  ;;  %v3005_v24 = vcombine.high %v2997_v45, %v2997_v45  ;;  %v2937_v51 = vadd.f32 %v2919_v53, %v2863_v32  ;;  %v2938_v7 = vadd.f32 %v2921_v55, %v2864_v48 }
 0x54c   : > { %v2826_v56 = vadd.f32 1.0, %v6643_v27  ;;  %v5823_v54 = vmul.f32 -1.442695, %v2934_v35  ;;  %v5824_v2 = vmul.f32 -1.442695, %v2935_v61  ;;  %v3055_v48 = vrot.slane %v8474_v17, 2 }
 0x54d   : > { %v6645_v47 = vpop.eup %6644  ;;  %v5827_v53 = vmul.f32 -1.442695, %v2938_v7  ;;  %v3056_v55 = vrot.slane %v8476_v9, 2 }
 0x54e   : > { %v6647_v21 = vpop.eup %6646  ;;  %v2827_v23 = vadd.f32 1.0, %v6645_v47  ;;  %6660 = vrcp.f32 %v2826_v56  ;;  %v2936_v56 = vadd.f32 %v2905_v49, %v2862_v29  ;;  %v3013_v49 = vrot.slane %v2997_v45, %v7804_v33 }
 0x54f   : > { %v6649_v42 = vpop.eup %6648  ;;  %v2828_v4 = vadd.f32 1.0, %v6647_v21  ;;  %6662 = vpow2.f32 %v5822_v28  ;;  %v5826_v29 = vmul.f32 -1.442695, %v2937_v51 }
 0x550   : > { %v6651_v43 = vpop.eup %6650  ;;  %v2829_v8 = vadd.f32 1.0, %v6649_v42  ;;  %6664 = vrcp.f32 %v2827_v23  ;;  %v2939_v23 = vadd.f32 %v2923_v38, %v2865_v34  ;;  %v5825_v11 = vmul.f32 -1.442695, %v2936_v56 }
 0x551   : > { %v6653_v60 = vpop.eup %6652  ;;  %v2830_v27 = vadd.f32 1.0, %v6651_v43  ;;  %6666 = vrcp.f32 %v2828_v4  ;;  %v3006_v42 = vcombine.high %v3004_v19, %v3004_v19  ;;  %v3027_v4 = vrot.slane %v3005_v24, %v7804_v33 }
 0x552   : > { %v6655_v47 = vpop.eup %6654  ;;  %v2831_v5 = vadd.f32 1.0, %v6653_v60  ;;  %6668 = vrcp.f32 %v2829_v8  ;;  %v5828_v34 = vmul.f32 -1.442695, %v2939_v23  ;;  %v3020_v43 = vrot.slane %v3004_v19, %v7804_v33 }
 0x553   : > { %v6657_v21 = vpop.eup %6656  ;;  %v2832_v18 = vadd.f32 1.0, %v6655_v47  ;;  %6670 = vrcp.f32 %v2830_v27  ;;  %v3034_v45 = vrot.slane %v3006_v42, %v7804_v33  ;;  %v3035_v24 = vcombine.high %v3013_v49, %v3013_v49 }
 0x554   : > { %v2833_v28 = vadd.f32 1.0, %v6657_v21  ;;  %6672 = vrcp.f32 %v2831_v5  ;;  %v6659_v30 = vpop.eup %6658  ;;  %v3037_v60 = vcombine.high %v3027_v4, %v3027_v4  ;;  %v3058_v56 = vrot.slane %v8482_v14, 2 }
 0x555   : > { %6674 = vrcp.f32 %v2832_v18  ;;  %v3057_v18 = vrot.slane %v8480_v36, 2  ;;  %v2964_v38 = vadd.f32 1.0, %v6659_v30  ;;  %v3059_v36 = vrot.slane %v8486_v40, 2 }
 0x556   : > { %6676 = vrcp.f32 %v2833_v28  ;;  %v3060_v5 = vrot.slane %v8488_v6, 2  ;;  %v3036_v28 = vcombine.high %v3020_v43, %v3020_v43  ;;  %v3038_v42 = vcombine.high %v3034_v45, %v3034_v45 }
 0x557   : > { %6678 = vpow2.f32 %v5823_v54 }
 0x558   : > { %v6661_v32 = vpop.eup %6660  ;;  %6680 = vpow2.f32 %v5824_v2 }
 0x559   : > { %v6663_v35 = vpop.eup %6662  ;;  %v3047_v8 = vmul.f32 %v6661_v32, %v3013_v49  ;;  %6682 = vpow2.f32 %v5825_v11 }
 0x55a   : > { %v6665_v51 = vpop.eup %6664  ;;  %6684 = vpow2.f32 %v5826_v29  ;;  %v3061_v29 = vrot.slane %v8492_v12, 2 }
 0x55b   : > { %v6667_v61 = vpop.eup %6666  ;;  %v3048_v17 = vmul.f32 %v6665_v51, %v3027_v4  ;;  %v3071_v27 = vadd.f32 %v3055_v48, %v3047_v8  ;;  %6686 = vpow2.f32 %v5827_v53  ;;  %v3062_v53 = vrot.slane %v8496_v31, 2 }
 0x55c   : > { %v6669_v9 = vpop.eup %6668  ;;  %v3049_v19 = vmul.f32 %v6667_v61, %v3035_v24  ;;  %6688 = vpow2.f32 %v5828_v34 }
 0x55d   : > { %v6671_v47 = vpop.eup %6670  ;;  %v3050_v21 = vmul.f32 %v6669_v9, %v3037_v60  ;;  %v3072_v7 = vadd.f32 %v3056_v55, %v3048_v17  ;;  %6690 = vtanh.f32 %v3071_v27 }
 0x55e   : > { %v6673_v54 = vpop.eup %6672  ;;  %v3051_v23 = vmul.f32 %v6671_v47, %v3020_v43  ;;  %v3073_v2 = vadd.f32 %v3057_v18, %v3049_v19  ;;  %6692 = vrcp.f32 %v2964_v38  ;;  %v2965_v18 = vadd.f32 1.0, %v6663_v35 }
 0x55f   : > { %v6675_v11 = vpop.eup %6674  ;;  %v3052_v49 = vmul.f32 %v6673_v54, %v3034_v45  ;;  %v3074_v14 = vadd.f32 %v3058_v56, %v3050_v21  ;;  %6694 = vtanh.f32 %v3072_v7 }
 0x560   : > { %v6677_v40 = vpop.eup %6676  ;;  %v3053_v30 = vmul.f32 %v6675_v11, %v3036_v28  ;;  %v3075_v4 = vadd.f32 %v3059_v36, %v3051_v23  ;;  %6696 = vtanh.f32 %v3073_v2  ;;  %v8537_v36 = vstv %s3121_s22 }
 0x561   : > { %v6679_v6 = vpop.eup %6678  ;;  %v3054_v32 = vmul.f32 %v6677_v40, %v3038_v42  ;;  %v3076_v48 = vadd.f32 %v3060_v5, %v3052_v49  ;;  %6698 = vtanh.f32 %v3074_v14  ;;  %vm3123_vm11 = vcmp.eq.s32.totalorder %v8537_v36, 1 }
 0x562   : > { %v6681_v55 = vpop.eup %6680  ;;  %v3077_v34 = vadd.f32 %v3061_v29, %v3053_v30  ;;  %6700 = vtanh.f32 %v3075_v4  ;;  %v2966_v8 = vadd.f32 1.0, %v6679_v6 }
 0x563   : > { %v6683_v43 = vpop.eup %6682  ;;  %v3078_v12 = vadd.f32 %v3062_v53, %v3054_v32  ;;  %6702 = vtanh.f32 %v3076_v48  ;;  %v2967_v45 = vadd.f32 1.0, %v6681_v55 }
 0x564   : > { %v6685_v51 = vpop.eup %6684  ;;  %6704 = vtanh.f32 %v3077_v34  ;;  %v2968_v24 = vadd.f32 1.0, %v6683_v43 }
 0x565   : > { %v6687_v31 = vpop.eup %6686  ;;  %6706 = vtanh.f32 %v3078_v12  ;;  %v2969_v61 = vadd.f32 1.0, %v6685_v51 }
 0x566   : > { %v6689_v38 = vpop.eup %6688  ;;  %6708 = vrcp.f32 %v2965_v18  ;;  %v2970_v17 = vadd.f32 1.0, %v6687_v31 }
 0x567   : > { %v6691_v60 = vpop.eup %6690  ;;  %6710 = vrcp.f32 %v2966_v8  ;;  %v2971_v35 = vadd.f32 1.0, %v6689_v38 }
 0x568   : > { %v6693_v27 = vpop.eup %6692  ;;  %6712 = vrcp.f32 %v2967_v45 }
 0x569   : > { %v6695_v9 = vpop.eup %6694  ;;  %6714 = vrcp.f32 %v2968_v24  ;;  %v3087_v56 = vsub.f32 1.0, %v6693_v27  ;;  %v3103_v21 = vmul.f32 %v6693_v27, %v8329_v0 }
 0x56a   : > { %v6697_v19 = vpop.eup %6696  ;;  %6716 = vrcp.f32 %v2969_v61 }
 0x56b   : > { %v6699_v47 = vpop.eup %6698  ;;  %6718 = vrcp.f32 %v2970_v17  ;;  %v3095_v5 = vmul.f32 %v6691_v60, %v3087_v56 }
 0x56c   : > { %v6701_v7 = vpop.eup %6700  ;;  %6720 = vrcp.f32 %v2971_v35 }
 0x56d   : > { %v6703_v54 = vpop.eup %6702  ;;  %v3111_v28 = vadd.f32 %v3103_v21, %v3095_v5 }
 0x56e   : > { %v6705_v23 = vpop.eup %6704 }
 0x56f   : > { %v6707_v2 = vpop.eup %6706  ;;  %v8544_v11 = vsel %vm3123_vm11, %v3111_v28, %v8329_v0 }
 0x570   : > { %v6709_v42 = vpop.eup %6708  ;;  %3132 = vst [vmem:[#allocation4 + $0x3] sm:$0x1] %v8544_v11  ;;  %v3156_v49 = vpack.c.bf16 %v8544_v11, %v8544_v11 }
 0x571   : > { %v6711_v14 = vpop.eup %6710  ;;  %v3088_v40 = vsub.f32 1.0, %v6709_v42  ;;  %v3104_v4 = vmul.f32 %v6709_v42, %v8343_v25 }
 0x572   : > { %v6713_v29 = vpop.eup %6712  ;;  %v3089_v30 = vsub.f32 1.0, %v6711_v14  ;;  %v3105_v48 = vmul.f32 %v6711_v14, %v8350_v52  ;;  %v3172_v55 = vunpack.c.l.b16 %v3156_v49 }
 0x573   : > { %v6715_v6 = vpop.eup %6714  ;;  %v3090_v53 = vsub.f32 1.0, %v6713_v29  ;;  %v3096_v32 = vmul.f32 %v6695_v9, %v3088_v40  ;;  %v3106_v43 = vmul.f32 %v6713_v29, %v8355_v44 }
 0x574   : > { %v6717_v0 = vpop.eup %6716  ;;  %v3091_v34 = vsub.f32 1.0, %v6715_v6  ;;  %v3097_v18 = vmul.f32 %v6697_v19, %v3089_v30  ;;  %v3107_v12 = vmul.f32 %v6715_v6, %v8363_v46 }
 0x575   : > { %v6719_v8 = vpop.eup %6718  ;;  %v3092_v51 = vsub.f32 1.0, %v6717_v0  ;;  %v3098_v45 = vmul.f32 %v6699_v47, %v3090_v53  ;;  %v3108_v31 = vmul.f32 %v6717_v0, %v8373_v41  ;;  %v3112_v24 = vadd.f32 %v3104_v4, %v3096_v32 }
 0x576   : > { %v6721_v38 = vpop.eup %6720  ;;  %v3093_v61 = vsub.f32 1.0, %v6719_v8  ;;  %v3099_v60 = vmul.f32 %v6701_v7, %v3091_v34  ;;  %v3109_v17 = vmul.f32 %v6719_v8, %v8381_v13  ;;  %v3113_v27 = vadd.f32 %v3105_v48, %v3097_v18 }
 0x577   : > { %v3100_v35 = vmul.f32 %v6703_v54, %v3092_v51  ;;  %v3114_v9 = vadd.f32 %v3106_v43, %v3098_v45  ;;  %v8558_v56 = vsel %vm3123_vm11, %v3112_v24, %v8343_v25  ;;  %v3094_v19 = vsub.f32 1.0, %v6721_v38 }
 0x578   : > { %v3115_v5 = vadd.f32 %v3107_v12, %v3099_v60  ;;  %3133 = vst [vmem:[#allocation4 + $0xb] sm:$0x1] %v8558_v56  ;;  %v3101_v47 = vmul.f32 %v6705_v23, %v3093_v61  ;;  %v3110_v21 = vmul.f32 %v6721_v38, %v8389_v26  ;;  %v8565_v7 = vsel %vm3123_vm11, %v3113_v27, %v8350_v52 }
 0x579   : > { %v3102_v28 = vmul.f32 %v6707_v2, %v3094_v19  ;;  %v3116_v54 = vadd.f32 %v3108_v31, %v3100_v35  ;;  %v8570_v42 = vsel %vm3123_vm11, %v3114_v9, %v8355_v44  ;;  %3134 = vst [vmem:[#allocation4 + $0x13] sm:$0x1] %v8565_v7  ;;  %v3157_v25 = vpack.c.bf16 %v8558_v56, %v8558_v56  ;;  %v8629_v35 = vld [vmem:[#allocation11 + $0x20] ss:$12 sps:$4 sm:$0xff]  }
 0x57a   : > { %v3117_v23 = vadd.f32 %v3109_v17, %v3101_v47  ;;  %v8578_v49 = vsel %vm3123_vm11, %v3115_v5, %v8363_v46  ;;  %3135 = vst [vmem:[#allocation4 + $0x1b] sm:$0x1] %v8570_v42  ;;  %v3158_v52 = vpack.c.bf16 %v8565_v7, %v8565_v7  ;;  %v3159_v44 = vpack.c.bf16 %v8570_v42, %v8570_v42 }
 0x57b   : > { %v3118_v2 = vadd.f32 %v3110_v21, %v3102_v28  ;;  %v8588_v14 = vsel %vm3123_vm11, %v3116_v54, %v8373_v41  ;;  %3136 = vst [vmem:[#allocation4 + $0x23] sm:$0x1] %v8578_v49  ;;  %v3160_v46 = vpack.c.bf16 %v8578_v49, %v8578_v49  ;;  %v3173_v40 = vunpack.c.l.b16 %v3157_v25 }
 0x57c   : > { %v8596_v29 = vsel %vm3123_vm11, %v3117_v23, %v8381_v13  ;;  %3137 = vst [vmem:[#allocation4 + $0x2b] sm:$0x1] %v8588_v14  ;;  %v3161_v30 = vpack.c.bf16 %v8588_v14, %v8588_v14  ;;  %v3174_v4 = vunpack.c.l.b16 %v3158_v52  ;;  %v3175_v6 = vunpack.c.l.b16 %v3159_v44  ;;  %v8675_v52 = vld [vmem:[#allocation3 + $0x4] ss:$8 sm:$0x7] }
 0x57d   : > { %v8604_v41 = vsel %vm3123_vm11, %v3118_v2, %v8389_v26  ;;  %3138 = vst [vmem:[#allocation4 + $0x33] sm:$0x1] %v8596_v29  ;;  %v3162_v53 = vpack.c.bf16 %v8596_v29, %v8596_v29  ;;  %v3176_v32 = vunpack.c.l.b16 %v3160_v46  ;;  %v3180_v13 = vrot.slane %v3173_v40, 7  ;;  %v8677_v44 = vld [vmem:[#allocation3 + $0x1c] ss:$8 sm:$0x7] }
 0x57e   : > { %3139 = vst [vmem:[#allocation4 + $0x3b] sm:$0x1] %v8604_v41  ;;  %v3163_v48 = vpack.c.bf16 %v8604_v41, %v8604_v41  ;;  %v3177_v0 = vunpack.c.l.b16 %v3161_v30  ;;  %v3182_v34 = vrot.slane %v3174_v4, 6  ;;  %v3184_v18 = vrot.slane %v3175_v6, 5 }
 0x57f   : > { %v3178_v43 = vunpack.c.l.b16 %v3162_v53  ;;  %v3181_v36 = vsel %vm1551_vm2, %v3180_v13, %v3172_v55  ;;  %v3186_v8 = vrot.slane %v3176_v32, 4  ;;  %v8620_v55 = vld [vmem:[#allocation11 + $0x8] ss:$12 sps:$4 sm:$0xff]   ;;  %v8687_v13 = vld [vmem:[#allocation3 + $0x64] ss:$8 sm:$0x7] }
 0x580   : > { %v3179_v26 = vunpack.c.l.b16 %v3163_v48  ;;  %v3183_v12 = vsel %vm1554_vm3, %v3182_v34, %v3181_v36  ;;  %v3188_v45 = vrot.slane %v3177_v0, 3  ;;  %v8681_v4 = vld [vmem:[#allocation3 + $0x34] ss:$8 sm:$0x7] }
 0x581   : > { %v3185_v51 = vsel %vm1557_vm4, %v3184_v18, %v3183_v12  ;;  %v3190_v24 = vrot.slane %v3178_v43, 2  ;;  %v8683_v6 = vld [vmem:[#allocation3 + $0x4c] ss:$8 sm:$0x7] }
 0x582   : > { %v3187_v31 = vsel %vm1560_vm5, %v3186_v8, %v3185_v51  ;;  %v3192_v61 = vrot.slane %v3179_v26, 1  ;;  %v8689_v48 = vld [vmem:[#allocation3 + $0x7c] ss:$8 sm:$0x7] }
 0x583   : > { %v3189_v38 = vsel %vm1563_vm6, %v3188_v45, %v3187_v31  ;;  %v8693_v36 = vld [vmem:[#allocation3 + $0x94] ss:$8 sm:$0x7] }
 0x584   : > { %v3191_v60 = vsel %vm1566_vm7, %v3190_v24, %v3189_v38  ;;  %v8697_v45 = vld [vmem:[#allocation3 + $0xac] ss:$8 sm:$0x7] }
 0x585   : > { %v3193_v17 = vsel %vm1569_vm8, %v3192_v61, %v3191_v60 }
 0x586   : > { %v3194_v27 = vpack.c.b16 %v3193_v17, %v3193_v17 }
 0x588   : > { %3229 = vmatmul.mubr.bf16.vlgmr.msra.gmra.mrb[16].mxu0 %v3194_v27  ;;  %6133 = vmatmul.mubr.bf16.vlgmr.msra.gmra.mrb[40].mxu1 %v3194_v27 }
 0x589   : > { %3738 = vmatpush1.bf16.msra.mxu0 %v8404_v37  ;;  %6137 = vmatpush3.bf16.msra.mxu1 %v8620_v55  ;;  %v8635_v37 = vld [vmem:[#allocation11 + $0x38] ss:$12 sps:$4 sm:$0xff]  }
 0x58a   : > { %3739 = vmatprep.subr.bf16.mxu0 %v8408_v10  ;;  %6138 = vmatprep.subr.bf16.mxu1 %v9459_v16  ;;  %v8641_v10 = vld [vmem:[#allocation11 + $0x50] ss:$12 sps:$4 sm:$0xff]  }
 0x58b   : > { %3769 = vmatprep.mubr.bf16.mxu0 %v9460_v59  ;;  %6152 = vmatprep.mubr.msk.bf16.mxu1 %vm7376_vm0, %v9459_v16 }
 0x58d   : > { %3740 = vmatpush1.bf16.msra.mxu0 %v8415_v62  ;;  %6139 = vmatpush3.bf16.msra.mxu1 %v8629_v35  ;;  %v8647_v62 = vld [vmem:[#allocation11 + $0x68] ss:$12 sps:$4 sm:$0xff]  }
 0x58e   : > { %3741 = vmatprep.subr.bf16.mxu0 %v8419_v58  ;;  %6140 = vmatprep.subr.bf16.mxu1 %v9459_v16  ;;  %v8653_v58 = vld [vmem:[#allocation11 + $0x80] ss:$12 sps:$4 sm:$0xff]  }
 0x591   : > { %3742 = vmatpush1.bf16.msra.mxu0 %v8423_v63  ;;  %6141 = vmatpush3.bf16.msra.mxu1 %v8635_v37  ;;  %v8659_v63 = vld [vmem:[#allocation11 + $0x98] ss:$12 sps:$4 sm:$0xff]  }
 0x592   : > { %3743 = vmatprep.subr.bf16.mxu0 %v8427_v57  ;;  %6142 = vmatprep.subr.bf16.mxu1 %v9459_v16  ;;  %v9467_v57 = vld [vmem:[#allocation23_spill] sm:$0xff] }
 0x595   : > { %3744 = vmatpush1.bf16.msra.mxu0 %v8431_v3  ;;  %6143 = vmatpush3.bf16.msra.mxu1 %v8641_v10  ;;  %v9468_v3 = vld [vmem:[#allocation24_spill] sm:$0xff] }
 0x596   : > { %3745 = vmatprep.subr.bf16.mxu0 %v8435_v1  ;;  %6144 = vmatprep.subr.bf16.mxu1 %v9459_v16  ;;  %v8665_v1 = vld [vmem:[#allocation11 + $0xb0] ss:$12 sps:$4 sm:$0xff]  }
 0x599   : > { %3746 = vmatpush1.bf16.msra.mxu0 %v8439_v15  ;;  %6145 = vmatpush3.bf16.msra.mxu1 %v8647_v62  ;;  %v9469_v15 = vld [vmem:[#allocation25_spill] sm:$0xff] }
 0x59a   : > { %3747 = vmatprep.subr.bf16.mxu0 %v8443_v20  ;;  %6146 = vmatprep.subr.bf16.mxu1 %v9459_v16 }
 0x59d   : > { %3748 = vmatpush1.bf16.msra.mxu0 %v8447_v50  ;;  %6147 = vmatpush3.bf16.msra.mxu1 %v8653_v58 }
 0x59e   : > { %3749 = vmatprep.subr.bf16.mxu0 %v8451_v22  ;;  %6148 = vmatprep.subr.bf16.mxu1 %v9459_v16 }
 0x5a1   : > { %3750 = vmatpush1.bf16.msra.mxu0 %v8455_v39  ;;  %6149 = vmatpush3.bf16.msra.mxu1 %v8659_v63 }
 0x5a2   : > { %3751 = vmatprep.subr.bf16.mxu0 %v9467_v57  ;;  %6150 = vmatprep.subr.bf16.mxu1 %v9459_v16 }
 0x5a5   : > { %3752 = vmatpush1.bf16.msra.mxu0 %v9468_v3  ;;  %6151 = vmatpush3.bf16.msra.mxu1 %v8665_v1 }
 0x5a6   : > { %4278 = vmatprep.subr.bf16.mxu0 %v9469_v15  ;;  %6156 = vmatprep.subr.bf16.mxu1 %v9459_v16 }
 0x65b   : > { %v3230_v20 = vpop.f32.mrb[16].mxu0  ;;  %v8670_v50 = vpop.f32.mrb[40].mxu1 }
 0x65c   : > { %v3278_v22 = vcombine.high %v3230_v20, %v3230_v20  ;;  %v3285_v39 = vrot.slane %v3230_v20, %v7804_v33  ;;  %v3232_v9 = vpop.f32.mrb[17].mxu0  ;;  %v6134_v19 = vpop.f32.mrb[41].mxu1 }
 0x65d   : > { %v3234_v5 = vpop.f32.mrb[18].mxu0  ;;  %v3274_v47 = vpop.f32.mrb[42].mxu1  ;;  %v3423_v32 = vrot.slane %v3232_v9, %v7804_v33  ;;  %v3416_v51 = vcombine.high %v3232_v9, %v3232_v9 }
 0x65e   : > { %v3292_v21 = vrot.slane %v3278_v22, %v7804_v33  ;;  %v3293_v28 = vcombine.high %v3285_v39, %v3285_v39  ;;  %v3301_v54 = vrot.slane %v3285_v39, %v7804_v33  ;;  %v3235_v25 = vpop.f32.mrb[19].mxu0  ;;  %v6135_v23 = vpop.f32.mrb[43].mxu1  ;;  %v3399_v5 = vrot.slane %v8675_v52, 1 }
 0x65f   : > { %v3431_v15 = vcombine.high %v3423_v32, %v3423_v32  ;;  %v3439_v22 = vrot.slane %v3423_v32, %v7804_v33  ;;  %v3430_v9 = vrot.slane %v3416_v51, %v7804_v33  ;;  %v8711_v25 = vld [vmem:[%s9414_s5] ss:$0 sm:$0xff] }
 0x660   : > { %v3294_v2 = vcombine.high %v3292_v21, %v3292_v21  ;;  %v3308_v46 = vrot.slane %v3292_v21, %v7804_v33  ;;  %v3315_v40 = vrot.slane %v3293_v28, %v7804_v33  ;;  %v3323_v30 = vcombine.high %v3301_v54, %v3301_v54 }
 0x661   : > { %v3335_v53 = vadd.f32 %v3301_v54, %v8675_v52  ;;  %v3453_v47 = vrot.slane %v3431_v15, %v7804_v33  ;;  %v3400_v21 = vrot.slane %v8677_v44, 1  ;;  %v3473_v28 = vadd.f32 %v3439_v22, %v3399_v5 }
 0x662   : > { %v3322_v0 = vrot.slane %v3294_v2, %v7804_v33  ;;  %v3324_v34 = vcombine.high %v3308_v46, %v3308_v46  ;;  %v3325_v18 = vcombine.high %v3315_v40, %v3315_v40  ;;  %v3336_v43 = vadd.f32 %v3315_v40, %v8677_v44 }
 0x663   : > { %v3337_v26 = vadd.f32 %v3323_v30, %v8681_v4  ;;  %v3339_v12 = vadd.f32 %v3308_v46, %v8687_v13  ;;  %v5829_v8 = vmul.f32 -1.442695, %v3335_v53  ;;  %v3432_v54 = vcombine.high %v3430_v9, %v3430_v9 }
 0x664   : > { %v3326_v31 = vcombine.high %v3322_v0, %v3322_v0  ;;  %v3338_v24 = vadd.f32 %v3325_v18, %v8683_v6  ;;  %v3340_v38 = vadd.f32 %v3322_v0, %v8689_v48  ;;  %v3341_v61 = vadd.f32 %v3324_v34, %v8693_v36 }
 0x665   : > { %6722 = vpow2.f32 %v5829_v8  ;;  %v5830_v60 = vmul.f32 -1.442695, %v3336_v43  ;;  %v5831_v17 = vmul.f32 -1.442695, %v3337_v26  ;;  %v5833_v3 = vmul.f32 -1.442695, %v3339_v12 }
 0x666   : > { %v3342_v27 = vadd.f32 %v3326_v31, %v8697_v45  ;;  %v5832_v57 = vmul.f32 -1.442695, %v3338_v24  ;;  %v5834_v20 = vmul.f32 -1.442695, %v3340_v38  ;;  %v5835_v39 = vmul.f32 -1.442695, %v3341_v61 }
 0x667   : > { %6724 = vpow2.f32 %v5830_v60  ;;  %v3529_v23 = vadd.f32 %v8711_v25, %v8670_v50  ;;  %v3474_v2 = vadd.f32 %v3453_v47, %v3400_v21  ;;  %v3401_v46 = vrot.slane %v8681_v4, 1 }
 0x668   : > { %6726 = vpow2.f32 %v5831_v17  ;;  %v5836_v19 = vmul.f32 -1.442695, %v3342_v27  ;;  %v3402_v40 = vrot.slane %v8683_v6, 1  ;;  %v3446_v53 = vrot.slane %v3430_v9, %v7804_v33 }
 0x669   : > { %6728 = vpow2.f32 %v5832_v57  ;;  %v3461_v32 = vcombine.high %v3439_v22, %v3439_v22  ;;  %v5837_v0 = vmul.f32 -1.442695, %v3473_v28  ;;  %v5838_v34 = vmul.f32 -1.442695, %v3474_v2 }
 0x66a   : > { %6730 = vpow2.f32 %v5833_v3  ;;  %v3403_v43 = vrot.slane %v8687_v13, 1  ;;  %v3460_v26 = vrot.slane %v3432_v54, %v7804_v33  ;;  %v3463_v12 = vcombine.high %v3453_v47, %v3453_v47 }
 0x66b   : > { %6732 = vpow2.f32 %v5834_v20  ;;  %v3531_v51 = vcombine.high %v3529_v23, %v3529_v23  ;;  %v3404_v50 = vrot.slane %v8689_v48, 1  ;;  %v3405_v31 = vrot.slane %v8693_v36, 1 }
 0x66c   : > { %6734 = vpow2.f32 %v5835_v39  ;;  %v3538_v61 = vrot.slane %v3529_v23, %v7804_v33  ;;  %v3406_v60 = vrot.slane %v8697_v45, 1  ;;  %v3462_v57 = vcombine.high %v3446_v53, %v3446_v53 }
 0x66d   : > { %6736 = vpow2.f32 %v5836_v19  ;;  %v3475_v3 = vadd.f32 %v3461_v32, %v3401_v46  ;;  %v3464_v22 = vcombine.high %v3460_v26, %v3460_v26  ;;  %v3476_v39 = vadd.f32 %v3463_v12, %v3402_v40 }
 0x66e   : > { %6738 = vpow2.f32 %v5837_v0  ;;  %v3545_v5 = vrot.slane %v3531_v51, %v7804_v33  ;;  %v3477_v47 = vadd.f32 %v3446_v53, %v3403_v43  ;;  %v3546_v54 = vcombine.high %v3538_v61, %v3538_v61 }
 0x66f   : > { %v6723_v30 = vpop.eup %6722  ;;  %v3478_v23 = vadd.f32 %v3460_v26, %v3404_v50  ;;  %v3479_v46 = vadd.f32 %v3462_v57, %v3405_v31  ;;  %v5839_v32 = vmul.f32 -1.442695, %v3475_v3  ;;  %v5840_v40 = vmul.f32 -1.442695, %v3476_v39 }
 0x670   : > { %v3367_v18 = vadd.f32 1.0, %v6723_v30  ;;  %v3547_v12 = vcombine.high %v3545_v5, %v3545_v5  ;;  %v3554_v53 = vrot.slane %v3538_v61, %v7804_v33  ;;  %v3568_v51 = vrot.slane %v3546_v54, %v7804_v33 }
 0x671   : > { %v6725_v8 = vpop.eup %6724  ;;  %v5842_v43 = vmul.f32 -1.442695, %v3478_v23  ;;  %v5843_v26 = vmul.f32 -1.442695, %v3479_v46  ;;  %v3596_v31 = vrot.slane %v8675_v52, 2 }
 0x672   : > { %v6727_v24 = vpop.eup %6726  ;;  %v3368_v38 = vadd.f32 1.0, %v6725_v8  ;;  %6740 = vrcp.f32 %v3367_v18  ;;  %v5841_v18 = vmul.f32 -1.442695, %v3477_v47  ;;  %v3575_v3 = vrot.slane %v3547_v12, %v7804_v33 }
 0x673   : > { %v6729_v17 = vpop.eup %6728  ;;  %v3369_v27 = vadd.f32 1.0, %v6727_v24  ;;  %6742 = vpow2.f32 %v5838_v34  ;;  %v3480_v34 = vadd.f32 %v3464_v22, %v3406_v60  ;;  %v3597_v24 = vrot.slane %v8677_v44, 2 }
 0x674   : > { %v6731_v15 = vpop.eup %6730  ;;  %v3370_v20 = vadd.f32 1.0, %v6729_v17  ;;  %6744 = vrcp.f32 %v3368_v38  ;;  %v3598_v17 = vrot.slane %v8681_v4, 2  ;;  %v3578_v39 = vcombine.high %v3568_v51, %v3568_v51 }
 0x675   : > { %v6733_v9 = vpop.eup %6732  ;;  %v3371_v19 = vadd.f32 1.0, %v6731_v15  ;;  %6746 = vrcp.f32 %v3369_v27  ;;  %v5844_v38 = vmul.f32 -1.442695, %v3480_v34  ;;  %v3561_v27 = vrot.slane %v3545_v5, %v7804_v33 }
 0x676   : > { %v6735_v21 = vpop.eup %6734  ;;  %v3372_v28 = vadd.f32 1.0, %v6733_v9  ;;  %6748 = vrcp.f32 %v3370_v20  ;;  %v3576_v15 = vcombine.high %v3554_v53, %v3554_v53  ;;  %v3600_v4 = vrot.slane %v8687_v13, 2 }
 0x677   : > { %v6737_v2 = vpop.eup %6736  ;;  %v3373_v30 = vadd.f32 1.0, %v6735_v21  ;;  %6750 = vrcp.f32 %v3371_v19  ;;  %v3599_v19 = vrot.slane %v8683_v6, 2  ;;  %v3601_v21 = vrot.slane %v8689_v48, 2 }
 0x678   : > { %v3374_v0 = vadd.f32 1.0, %v6737_v2  ;;  %6752 = vrcp.f32 %v3372_v28  ;;  %v6739_v8 = vpop.eup %6738  ;;  %v3577_v2 = vcombine.high %v3561_v27, %v3561_v27 }
 0x679   : > { %6754 = vrcp.f32 %v3373_v30  ;;  %v3505_v20 = vadd.f32 1.0, %v6739_v8 }
 0x67a   : > { %6756 = vrcp.f32 %v3374_v0  ;;  %v3579_v0 = vcombine.high %v3575_v3, %v3575_v3 }
 0x67b   : > { %6758 = vpow2.f32 %v5839_v32 }
 0x67c   : > { %v6741_v50 = vpop.eup %6740  ;;  %6760 = vpow2.f32 %v5840_v40  ;;  %v3602_v40 = vrot.slane %v8693_v36, 2 }
 0x67d   : > { %v6743_v60 = vpop.eup %6742  ;;  %v3588_v57 = vmul.f32 %v6741_v50, %v3554_v53  ;;  %6762 = vpow2.f32 %v5841_v18  ;;  %v3603_v53 = vrot.slane %v8697_v45, 2 }
 0x67e   : > { %v6745_v61 = vpop.eup %6744  ;;  %6764 = vpow2.f32 %v5842_v43  ;;  %v3506_v50 = vadd.f32 1.0, %v6743_v60 }
 0x67f   : > { %v6747_v22 = vpop.eup %6746  ;;  %v3589_v52 = vmul.f32 %v6745_v61, %v3568_v51  ;;  %v3612_v9 = vadd.f32 %v3596_v31, %v3588_v57  ;;  %6766 = vpow2.f32 %v5843_v26 }
 0x680   : > { %v6749_v44 = vpop.eup %6748  ;;  %v3590_v5 = vmul.f32 %v6747_v22, %v3576_v15  ;;  %6768 = vpow2.f32 %v5844_v38 }
 0x681   : > { %v6751_v47 = vpop.eup %6750  ;;  %v3591_v28 = vmul.f32 %v6749_v44, %v3578_v39  ;;  %v3613_v54 = vadd.f32 %v3597_v24, %v3589_v52  ;;  %6770 = vtanh.f32 %v3612_v9  ;;  %v8744_v52 = vstv %s3662_s14  ;;  %s5575_s14 = sshll.u32 %s7378_s25, 4  ;;  %s5576_s14 = int_to_ptr.vmem [resolvable:$true] %s5575_s14 }
 0x682   : > { %v6753_v23 = vpop.eup %6752  ;;  %v3592_v30 = vmul.f32 %v6751_v47, %v3561_v27  ;;  %v3614_v46 = vadd.f32 %v3598_v17, %v3590_v5  ;;  %6772 = vrcp.f32 %v3505_v20  ;;  %vm3664_vm12 = vcmp.eq.s32.totalorder %v8744_v52, 1  ;;  %s7259_s21 = scalar_lea.vmem %s5576_s14, 128  ;;  %p7266_p1 = scmp.lt.s32.totalorder %s5576_s14, %s5576_s14 }
 0x683   : > { %v6755_v32 = vpop.eup %6754  ;;  %v3593_v34 = vmul.f32 %v6753_v23, %v3575_v3  ;;  %v3615_v6 = vadd.f32 %v3599_v19, %v3591_v28  ;;  %6774 = vtanh.f32 %v3613_v54  ;;  %p7260_p11 = scmp.ne.s32.totalorder %s5576_s14, %s7259_s21  ;;  %p7267_p6 = scmp.lt.s32.totalorder %s7259_s21, %s7259_s21 }
 0x684   : > { %v6757_v13 = vpop.eup %6756  ;;  %v3594_v18 = vmul.f32 %v6755_v32, %v3577_v2  ;;  %v3616_v12 = vadd.f32 %v3600_v4, %v3592_v30  ;;  %6776 = vtanh.f32 %v3614_v46 }
 0x685   : > { %v6759_v48 = vpop.eup %6758  ;;  %v3595_v43 = vmul.f32 %v6757_v13, %v3579_v0  ;;  %v3617_v8 = vadd.f32 %v3601_v21, %v3593_v34  ;;  %6778 = vtanh.f32 %v3615_v6  ;;  %p7261_p12 = pnand %p7260_p11, %p9478_p8  ;;  %p7268_p9 = por %p7267_p6, %p7266_p1 }
 0x686   : > { %v6761_v51 = vpop.eup %6760  ;;  %v3618_v26 = vadd.f32 %v3602_v40, %v3594_v18  ;;  %6780 = vtanh.f32 %v3616_v12  ;;  %v3507_v24 = vadd.f32 1.0, %v6759_v48 }
 0x687   : > { %v6763_v31 = vpop.eup %6762  ;;  %v3619_v36 = vadd.f32 %v3603_v53, %v3595_v43  ;;  %6782 = vtanh.f32 %v3617_v8  ;;  %v3508_v17 = vadd.f32 1.0, %v6761_v51  ;;  %p7262_p2 = pneg %p7261_p12 }
 0x688   : > { %v6765_v38 = vpop.eup %6764  ;;  %6784 = vtanh.f32 %v3618_v26  ;;  %v3509_v27 = vadd.f32 1.0, %v6763_v31 }
 0x689   : > { %v6767_v45 = vpop.eup %6766  ;;  %6786 = vtanh.f32 %v3619_v36  ;;  %v3510_v61 = vadd.f32 1.0, %v6765_v38  ;;  %p7269_p3 = pnand %p7268_p9, %p7262_p2 }
 0x68a   : > { %v6769_v57 = vpop.eup %6768  ;;  %6788 = vrcp.f32 %v3506_v50  ;;  %v3511_v15 = vadd.f32 1.0, %v6767_v45 }
 0x68b   : > { %v6771_v3 = vpop.eup %6770  ;;  %6790 = vrcp.f32 %v3507_v24  ;;  %v3512_v60 = vadd.f32 1.0, %v6769_v57 }
 0x68c   : > { %v6773_v20 = vpop.eup %6772  ;;  %6792 = vrcp.f32 %v3508_v17 }
 0x68d   : > { %v6775_v22 = vpop.eup %6774  ;;  %6794 = vrcp.f32 %v3509_v27  ;;  %v3628_v39 = vsub.f32 1.0, %v6773_v20  ;;  %v3644_v4 = vmul.f32 %v6773_v20, %v8544_v11 }
 0x68e   : > { %v6777_v9 = vpop.eup %6776  ;;  %6796 = vrcp.f32 %v3510_v61 }
 0x68f   : > { %v6779_v44 = vpop.eup %6778  ;;  %6798 = vrcp.f32 %v3511_v15  ;;  %v3636_v19 = vmul.f32 %v6771_v3, %v3628_v39 }
 0x690   : > { %v6781_v5 = vpop.eup %6780  ;;  %6800 = vrcp.f32 %v3512_v60 }
 0x691   : > { %v6783_v47 = vpop.eup %6782  ;;  %v3652_v21 = vadd.f32 %v3644_v4, %v3636_v19 }
 0x692   : > { %v6785_v28 = vpop.eup %6784 }
 0x693   : > { %v6787_v54 = vpop.eup %6786  ;;  %v8751_v23 = vsel %vm3664_vm12, %v3652_v21, %v8544_v11 }
 0x694   : > { %v6789_v2 = vpop.eup %6788  ;;  %3673 = vst [vmem:[#allocation4 + $0x4] sm:$0x1] %v8751_v23  ;;  %v3697_v30 = vpack.c.bf16 %v8751_v23, %v8751_v23 }
 0x695   : > { %v6791_v46 = vpop.eup %6790  ;;  %v3629_v32 = vsub.f32 1.0, %v6789_v2  ;;  %v3645_v6 = vmul.f32 %v6789_v2, %v8558_v56 }
 0x696   : > { %v6793_v0 = vpop.eup %6792  ;;  %v3630_v34 = vsub.f32 1.0, %v6791_v46  ;;  %v3646_v12 = vmul.f32 %v6791_v46, %v8565_v7  ;;  %v3713_v48 = vunpack.c.l.b16 %v3697_v30 }
 0x697   : > { %v6795_v13 = vpop.eup %6794  ;;  %v3631_v40 = vsub.f32 1.0, %v6793_v0  ;;  %v3637_v18 = vmul.f32 %v6775_v22, %v3629_v32  ;;  %v3647_v8 = vmul.f32 %v6793_v0, %v8570_v42 }
 0x698   : > { %v6797_v11 = vpop.eup %6796  ;;  %v3632_v53 = vsub.f32 1.0, %v6795_v13  ;;  %v3638_v43 = vmul.f32 %v6777_v9, %v3630_v34  ;;  %v3648_v51 = vmul.f32 %v6795_v13, %v8578_v49 }
 0x699   : > { %v6799_v26 = vpop.eup %6798  ;;  %v3633_v50 = vsub.f32 1.0, %v6797_v11  ;;  %v3639_v31 = vmul.f32 %v6779_v44, %v3631_v40  ;;  %v3649_v36 = vmul.f32 %v6797_v11, %v8588_v14  ;;  %v3653_v24 = vadd.f32 %v3645_v6, %v3637_v18 }
 0x69a   : > { %v6801_v38 = vpop.eup %6800  ;;  %v3634_v17 = vsub.f32 1.0, %v6799_v26  ;;  %v3640_v45 = vmul.f32 %v6781_v5, %v3632_v53  ;;  %v3650_v27 = vmul.f32 %v6799_v26, %v8596_v29  ;;  %v3654_v57 = vadd.f32 %v3646_v12, %v3638_v43 }
 0x69b   : > { %v3641_v61 = vmul.f32 %v6783_v47, %v3633_v50  ;;  %v3655_v3 = vadd.f32 %v3647_v8, %v3639_v31  ;;  %v8765_v15 = vsel %vm3664_vm12, %v3653_v24, %v8558_v56  ;;  %v3635_v20 = vsub.f32 1.0, %v6801_v38 }
 0x69c   : > { %v3656_v60 = vadd.f32 %v3648_v51, %v3640_v45  ;;  %3674 = vst [vmem:[#allocation4 + $0xc] sm:$0x1] %v8765_v15  ;;  %v3642_v22 = vmul.f32 %v6785_v28, %v3634_v17  ;;  %v3651_v39 = vmul.f32 %v6801_v38, %v8604_v41  ;;  %v8772_v9 = vsel %vm3664_vm12, %v3654_v57, %v8565_v7  ;;  %v8830_v17 = vld [vmem:[#allocation11 + $0x1c] ss:$12 sps:$4 sm:$0xff]   ;;  %v8837_v45 = vld [vmem:[#allocation11 + $0x18] ss:$12 sps:$4 sm:$0xff]  }
 0x69d   : > { %v3643_v44 = vmul.f32 %v6787_v54, %v3635_v20  ;;  %v3657_v19 = vadd.f32 %v3649_v36, %v3641_v61  ;;  %v8777_v4 = vsel %vm3664_vm12, %v3655_v3, %v8570_v42  ;;  %3675 = vst [vmem:[#allocation4 + $0x14] sm:$0x1] %v8772_v9  ;;  %v3698_v56 = vpack.c.bf16 %v8765_v15, %v8765_v15  ;;  %v8849_v57 = vld [vmem:[#allocation11 + $0x4c] ss:$12 sps:$4 sm:$0xff]   ;;  %v8853_v61 = vld [vmem:[#allocation11 + $0x48] ss:$12 sps:$4 sm:$0xff]  }
 0x69e   : > { %v3658_v5 = vadd.f32 %v3650_v27, %v3642_v22  ;;  %v8785_v47 = vsel %vm3664_vm12, %v3656_v60, %v8578_v49  ;;  %3676 = vst [vmem:[#allocation4 + $0x1c] sm:$0x1] %v8777_v4  ;;  %v3699_v7 = vpack.c.bf16 %v8772_v9, %v8772_v9  ;;  %v3700_v42 = vpack.c.bf16 %v8777_v4, %v8777_v4  ;;  %v8841_v27 = vld [vmem:[#allocation11 + $0x34] ss:$12 sps:$4 sm:$0xff]   ;;  %v8869_v20 = vld [vmem:[#allocation11 + $0x78] ss:$12 sps:$4 sm:$0xff]  }
 0x69f   : > { %v3659_v21 = vadd.f32 %v3651_v39, %v3643_v44  ;;  %v8795_v28 = vsel %vm3664_vm12, %v3657_v19, %v8588_v14  ;;  %3677 = vst [vmem:[#allocation4 + $0x24] sm:$0x1] %v8785_v47  ;;  %v3701_v49 = vpack.c.bf16 %v8785_v47, %v8785_v47  ;;  %v3714_v54 = vunpack.c.l.b16 %v3698_v56  ;;  %v8861_v3 = vld [vmem:[#allocation11 + $0x60] ss:$12 sps:$4 sm:$0xff]   ;;  %v8877_v60 = vld [vmem:[#allocation11 + $0x90] ss:$12 sps:$4 sm:$0xff]  }
 0x6a0   : > { %v8803_v2 = vsel %vm3664_vm12, %v3658_v5, %v8596_v29  ;;  %3678 = vst [vmem:[#allocation4 + $0x2c] sm:$0x1] %v8795_v28  ;;  %v3702_v30 = vpack.c.bf16 %v8795_v28, %v8795_v28  ;;  %v3715_v46 = vunpack.c.l.b16 %v3699_v7  ;;  %v3716_v32 = vunpack.c.l.b16 %v3700_v42  ;;  %v8885_v22 = vld [vmem:[#allocation11 + $0xa8] ss:$12 sps:$4 sm:$0xff]  }
 0x6a1   : > { %v8811_v14 = vsel %vm3664_vm12, %v3659_v21, %v8604_v41  ;;  %3679 = vst [vmem:[#allocation4 + $0x34] sm:$0x1] %v8803_v2  ;;  %v3703_v0 = vpack.c.bf16 %v8803_v2, %v8803_v2  ;;  %v3717_v34 = vunpack.c.l.b16 %v3701_v49  ;;  %v3721_v29 = vrot.slane %v3714_v54, 7  ;;  %9472 = vst [vmem:[#allocation24_spill] sm:$0xff] %v8885_v22 }
 0x6a2   : > { %3680 = vst [vmem:[#allocation4 + $0x3c] sm:$0x1] %v8811_v14  ;;  %v3704_v6 = vpack.c.bf16 %v8811_v14, %v8811_v14  ;;  %v3718_v13 = vunpack.c.l.b16 %v3702_v30  ;;  %v3723_v40 = vrot.slane %v3715_v46, 6  ;;  %v3725_v18 = vrot.slane %v3716_v32, 5 }
 0x6a3   : > { %v3719_v12 = vunpack.c.l.b16 %v3703_v0  ;;  %v3722_v52 = vsel %vm1551_vm2, %v3721_v29, %v3713_v48  ;;  %v3727_v53 = vrot.slane %v3717_v34, 4  ;;  %v8826_v48 = vld [vmem:[#allocation11] ss:$12 sps:$4 sm:$0xff]   ;;  %v8895_v32 = vld [vmem:[#allocation3 + $0x1d] ss:$8 sm:$0x7] }
 0x6a4   : > { %v3720_v41 = vunpack.c.l.b16 %v3704_v6  ;;  %v3724_v11 = vsel %vm1554_vm3, %v3723_v40, %v3722_v52  ;;  %v3729_v8 = vrot.slane %v3718_v13, 3  ;;  %v8893_v46 = vld [vmem:[#allocation3 + $0x5] ss:$8 sm:$0x7] }
 0x6a5   : > { %v3726_v43 = vsel %vm1557_vm4, %v3725_v18, %v3724_v11  ;;  %v3731_v26 = vrot.slane %v3719_v12, 2  ;;  %v8899_v13 = vld [vmem:[#allocation3 + $0x35] ss:$8 sm:$0x7] }
 0x6a6   : > { %v3728_v51 = vsel %vm1560_vm5, %v3727_v53, %v3726_v43  ;;  %v3733_v31 = vrot.slane %v3720_v41, 1  ;;  %v8901_v40 = vld [vmem:[#allocation3 + $0x4d] ss:$8 sm:$0x7] }
 0x6a7   : > { %v3730_v50 = vsel %vm1563_vm6, %v3729_v8, %v3728_v51  ;;  %v8905_v52 = vld [vmem:[#allocation3 + $0x65] ss:$8 sm:$0x7] }
 0x6a8   : > { %v3732_v36 = vsel %vm1566_vm7, %v3731_v26, %v3730_v50  ;;  %v8907_v41 = vld [vmem:[#allocation3 + $0x7d] ss:$8 sm:$0x7] }
 0x6a9   : > { %v3734_v24 = vsel %vm1569_vm8, %v3733_v31, %v3732_v36  ;;  %v8911_v51 = vld [vmem:[#allocation3 + $0x95] ss:$8 sm:$0x7] }
 0x6aa   : > { %v3735_v38 = vpack.c.b16 %v3734_v24, %v3734_v24  ;;  %v8915_v24 = vld [vmem:[#allocation3 + $0xad] ss:$8 sm:$0x7] }
 0x6ac   : > { %3770 = vmatmul.mubr.bf16.vlgmr.msra.gmra.mrb[20].mxu0 %v3735_v38  ;;  %6153 = vmatmul.mubr.bf16.vlgmr.msra.gmra.mrb[44].mxu1 %v3735_v38 }
 0x6ad   : > { %4279 = vmatpush1.bf16.msra.mxu0 %v8826_v48  ;;  %6157 = vmatpush3.bf16.msra.mxu1 %v8620_v55  ;;  %v8845_v55 = vld [vmem:[#allocation11 + $0x30] ss:$12 sps:$4 sm:$0xff]  }
 0x6ae   : > { %4280 = vmatprep.subr.bf16.mxu0 %v8830_v17  ;;  %6158 = vmatprep.subr.bf16.mxu1 %v9459_v16 }
 0x6af   : > { %4310 = vmatprep.mubr.bf16.mxu0 %v9460_v59  ;;  %6172 = vmatprep.mubr.msk.bf16.mxu1 %vm7376_vm0, %v9459_v16 }
 0x6b1   : > { %4281 = vmatpush1.bf16.msra.mxu0 %v8837_v45  ;;  %6159 = vmatpush3.bf16.msra.mxu1 %v8629_v35  ;;  %v8857_v35 = vld [vmem:[#allocation11 + $0x64] ss:$12 sps:$4 sm:$0xff]  }
 0x6b2   : > { %4282 = vmatprep.subr.bf16.mxu0 %v8841_v27  ;;  %6160 = vmatprep.subr.bf16.mxu1 %v9459_v16 }
 0x6b5   : > { %4283 = vmatpush1.bf16.msra.mxu0 %v8845_v55  ;;  %6161 = vmatpush3.bf16.msra.mxu1 %v8635_v37  ;;  %v8865_v37 = vld [vmem:[#allocation11 + $0x7c] ss:$12 sps:$4 sm:$0xff]  }
 0x6b6   : > { %4284 = vmatprep.subr.bf16.mxu0 %v8849_v57  ;;  %6162 = vmatprep.subr.bf16.mxu1 %v9459_v16 }
 0x6b9   : > { %4285 = vmatpush1.bf16.msra.mxu0 %v8853_v61  ;;  %6163 = vmatpush3.bf16.msra.mxu1 %v8641_v10  ;;  %v8873_v10 = vld [vmem:[#allocation11 + $0x94] ss:$12 sps:$4 sm:$0xff]  }
 0x6ba   : > { %4286 = vmatprep.subr.bf16.mxu0 %v8857_v35  ;;  %6164 = vmatprep.subr.bf16.mxu1 %v9459_v16 }
 0x6bd   : > { %4287 = vmatpush1.bf16.msra.mxu0 %v8861_v3  ;;  %6165 = vmatpush3.bf16.msra.mxu1 %v8647_v62  ;;  %v8881_v62 = vld [vmem:[#allocation11 + $0xac] ss:$12 sps:$4 sm:$0xff]  }
 0x6be   : > { %4288 = vmatprep.subr.bf16.mxu0 %v8865_v37  ;;  %6166 = vmatprep.subr.bf16.mxu1 %v9459_v16  ;;  %9471 = vst [vmem:[#allocation23_spill] sm:$0xff] %v8881_v62 }
 0x6c1   : > { %4289 = vmatpush1.bf16.msra.mxu0 %v8869_v20  ;;  %6167 = vmatpush3.bf16.msra.mxu1 %v8653_v58  ;;  %v7107_v58 = vld [vmem:[#allocation11 + $0x4] ss:$12 sps:$4 sm:$0xff]  }
 0x6c2   : > { %4290 = vmatprep.subr.bf16.mxu0 %v8873_v10  ;;  %6168 = vmatprep.subr.bf16.mxu1 %v9459_v16 }
 0x6c5   : > { %4291 = vmatpush1.bf16.msra.mxu0 %v8877_v60  ;;  %6169 = vmatpush3.bf16.msra.mxu1 %v8659_v63 }
 0x6c6   : > { %4292 = vmatprep.subr.bf16.mxu0 %v8881_v62  ;;  %6170 = vmatprep.subr.bf16.mxu1 %v9459_v16 }
 0x6c9   : > { %4293 = vmatpush1.bf16.msra.mxu0 %v8885_v22  ;;  %6171 = vmatpush3.bf16.msra.mxu1 %v8665_v1 }
 0x6ca   : > { %4819 = vmatprep.subr.bf16.mxu0 %v7107_v58  ;;  %6176 = vmatprep.subr.bf16.mxu1 %v9459_v16 }
 0x77f   : > { %v3771_v39 = vpop.f32.mrb[20].mxu0  ;;  %v3812_v44 = vpop.f32.mrb[44].mxu1 }
 0x780   : > { %v3819_v19 = vcombine.high %v3771_v39, %v3771_v39  ;;  %v3826_v63 = vrot.slane %v3771_v39, %v7804_v33  ;;  %v3773_v56 = vpop.f32.mrb[21].mxu0  ;;  %v6154_v5 = vpop.f32.mrb[45].mxu1 }
 0x781   : > { %v3775_v7 = vpop.f32.mrb[22].mxu0  ;;  %v3815_v42 = vpop.f32.mrb[46].mxu1  ;;  %v3964_v12 = vrot.slane %v3773_v56, %v7804_v33  ;;  %v3957_v36 = vcombine.high %v3773_v56, %v3773_v56 }
 0x782   : > { %v3833_v21 = vrot.slane %v3819_v19, %v7804_v33  ;;  %v3834_v49 = vcombine.high %v3826_v63, %v3826_v63  ;;  %v3842_v54 = vrot.slane %v3826_v63, %v7804_v33  ;;  %v3776_v30 = vpop.f32.mrb[23].mxu0  ;;  %v6155_v1 = vpop.f32.mrb[47].mxu1 }
 0x783   : > { %v3980_v56 = vrot.slane %v3964_v12, %v7804_v33  ;;  %v3971_v1 = vrot.slane %v3957_v36, %v7804_v33 }
 0x784   : > { %v3835_v0 = vcombine.high %v3833_v21, %v3833_v21  ;;  %v3849_v34 = vrot.slane %v3833_v21, %v7804_v33  ;;  %v3856_v29 = vrot.slane %v3834_v49, %v7804_v33  ;;  %v3864_v6 = vcombine.high %v3842_v54, %v3842_v54 }
 0x785   : > { %v3876_v18 = vadd.f32 %v3842_v54, %v8893_v46  ;;  %v3972_v49 = vcombine.high %v3964_v12, %v3964_v12  ;;  %v4070_v12 = vadd.f32 %v8711_v25, %v3812_v44  ;;  %v3945_v25 = vrot.slane %v8907_v41, 1 }
 0x786   : > { %v3863_v11 = vrot.slane %v3835_v0, %v7804_v33  ;;  %v3865_v53 = vcombine.high %v3849_v34, %v3849_v34  ;;  %v3866_v43 = vcombine.high %v3856_v29, %v3856_v29  ;;  %v3877_v8 = vadd.f32 %v3856_v29, %v8895_v32 }
 0x787   : > { %v3878_v26 = vadd.f32 %v3864_v6, %v8899_v13  ;;  %v3880_v50 = vadd.f32 %v3849_v34, %v8905_v52  ;;  %v5845_v31 = vmul.f32 -1.442695, %v3876_v18  ;;  %v3940_v34 = vrot.slane %v8893_v46, 1 }
 0x788   : > { %v3867_v38 = vcombine.high %v3863_v11, %v3863_v11  ;;  %v3879_v58 = vadd.f32 %v3866_v43, %v8901_v40  ;;  %v3881_v39 = vadd.f32 %v3863_v11, %v8907_v41  ;;  %v3882_v19 = vadd.f32 %v3865_v53, %v8911_v51 }
 0x789   : > { %6802 = vpow2.f32 %v5845_v31  ;;  %v5846_v63 = vmul.f32 -1.442695, %v3877_v8  ;;  %v5847_v5 = vmul.f32 -1.442695, %v3878_v26  ;;  %v5849_v21 = vmul.f32 -1.442695, %v3880_v50 }
 0x78a   : > { %v3883_v7 = vadd.f32 %v3867_v38, %v8915_v24  ;;  %v5848_v42 = vmul.f32 -1.442695, %v3879_v58  ;;  %v5850_v54 = vmul.f32 -1.442695, %v3881_v39  ;;  %v5851_v30 = vmul.f32 -1.442695, %v3882_v19 }
 0x78b   : > { %6804 = vpow2.f32 %v5846_v63  ;;  %v3994_v29 = vrot.slane %v3972_v49, %v7804_v33  ;;  %v3941_v6 = vrot.slane %v8895_v32, 1  ;;  %v4014_v18 = vadd.f32 %v3980_v56, %v3940_v34 }
 0x78c   : > { %6806 = vpow2.f32 %v5847_v5  ;;  %v5852_v0 = vmul.f32 -1.442695, %v3883_v7  ;;  %v3973_v11 = vcombine.high %v3971_v1, %v3971_v1  ;;  %v3942_v43 = vrot.slane %v8899_v13, 1 }
 0x78d   : > { %6808 = vpow2.f32 %v5848_v42  ;;  %v4015_v53 = vadd.f32 %v3994_v29, %v3941_v6  ;;  %v3943_v8 = vrot.slane %v8901_v40, 1  ;;  %v3987_v50 = vrot.slane %v3971_v1, %v7804_v33 }
 0x78e   : > { %6810 = vpow2.f32 %v5849_v21  ;;  %v4002_v31 = vcombine.high %v3980_v56, %v3980_v56  ;;  %v5853_v36 = vmul.f32 -1.442695, %v4014_v18  ;;  %v3944_v39 = vrot.slane %v8905_v52, 1 }
 0x78f   : > { %6812 = vpow2.f32 %v5850_v54  ;;  %v5854_v38 = vmul.f32 -1.442695, %v4015_v53  ;;  %v4001_v19 = vrot.slane %v3973_v11, %v7804_v33  ;;  %v4004_v63 = vcombine.high %v3994_v29, %v3994_v29 }
 0x790   : > { %6814 = vpow2.f32 %v5851_v30  ;;  %v4072_v7 = vcombine.high %v4070_v12, %v4070_v12  ;;  %v3946_v44 = vrot.slane %v8911_v51, 1  ;;  %v4079_v49 = vrot.slane %v4070_v12, %v7804_v33 }
 0x791   : > { %6816 = vpow2.f32 %v5852_v0  ;;  %v3947_v54 = vrot.slane %v8915_v24, 1  ;;  %v4003_v1 = vcombine.high %v3987_v50, %v3987_v50  ;;  %v4016_v0 = vadd.f32 %v4002_v31, %v3942_v43 }
 0x792   : > { %6818 = vpow2.f32 %v5853_v36  ;;  %v4005_v6 = vcombine.high %v4001_v19, %v4001_v19  ;;  %v4017_v18 = vadd.f32 %v4004_v63, %v3943_v8  ;;  %v4018_v36 = vadd.f32 %v3987_v50, %v3944_v39 }
 0x793   : > { %v6803_v26 = vpop.eup %6802  ;;  %v4019_v22 = vadd.f32 %v4001_v19, %v3945_v25  ;;  %v4020_v43 = vadd.f32 %v4003_v1, %v3946_v44  ;;  %v5855_v31 = vmul.f32 -1.442695, %v4016_v0  ;;  %v4095_v50 = vrot.slane %v4079_v49, %v7804_v33 }
 0x794   : > { %v3908_v58 = vadd.f32 1.0, %v6803_v26  ;;  %v4086_v26 = vrot.slane %v4072_v7, %v7804_v33  ;;  %v5856_v8 = vmul.f32 -1.442695, %v4017_v18  ;;  %v5857_v63 = vmul.f32 -1.442695, %v4018_v36 }
 0x795   : > { %v6805_v5 = vpop.eup %6804  ;;  %v5858_v39 = vmul.f32 -1.442695, %v4019_v22  ;;  %v5859_v19 = vmul.f32 -1.442695, %v4020_v43  ;;  %v4137_v44 = vrot.slane %v8893_v46, 2  ;;  %v4138_v1 = vrot.slane %v8895_v32, 2 }
 0x796   : > { %v6807_v42 = vpop.eup %6806  ;;  %v3909_v21 = vadd.f32 1.0, %v6805_v5  ;;  %6820 = vrcp.f32 %v3908_v58  ;;  %v4087_v5 = vcombine.high %v4079_v49, %v4079_v49 }
 0x797   : > { %v6809_v56 = vpop.eup %6808  ;;  %v3910_v30 = vadd.f32 1.0, %v6807_v42  ;;  %6822 = vpow2.f32 %v5854_v38 }
 0x798   : > { %v6811_v34 = vpop.eup %6810  ;;  %v3911_v29 = vadd.f32 1.0, %v6809_v56  ;;  %6824 = vrcp.f32 %v3909_v21  ;;  %v4021_v21 = vadd.f32 %v4005_v6, %v3947_v54  ;;  %v4088_v56 = vcombine.high %v4086_v26, %v4086_v26 }
 0x799   : > { %v6813_v11 = vpop.eup %6812  ;;  %v3912_v53 = vadd.f32 1.0, %v6811_v34  ;;  %6826 = vrcp.f32 %v3910_v30  ;;  %v4109_v30 = vrot.slane %v4087_v5, %v7804_v33  ;;  %v4102_v34 = vrot.slane %v4086_v26, %v7804_v33 }
 0x79a   : > { %v6815_v58 = vpop.eup %6814  ;;  %v3913_v12 = vadd.f32 1.0, %v6813_v11  ;;  %6828 = vrcp.f32 %v3911_v29  ;;  %v5860_v54 = vmul.f32 -1.442695, %v4021_v21  ;;  %v4116_v49 = vrot.slane %v4088_v56, %v7804_v33 }
 0x79b   : > { %v6817_v42 = vpop.eup %6816  ;;  %v3914_v62 = vadd.f32 1.0, %v6815_v58  ;;  %6830 = vrcp.f32 %v3912_v53  ;;  %v4117_v6 = vcombine.high %v4095_v50, %v4095_v50  ;;  %v4119_v53 = vcombine.high %v4109_v30, %v4109_v30 }
 0x79c   : > { %v3915_v38 = vadd.f32 1.0, %v6817_v42  ;;  %6832 = vrcp.f32 %v3913_v12  ;;  %v6819_v7 = vpop.eup %6818  ;;  %v4140_v58 = vrot.slane %v8901_v40, 2  ;;  %v4142_v5 = vrot.slane %v8907_v41, 2 }
 0x79d   : > { %6834 = vrcp.f32 %v3914_v62  ;;  %v4139_v62 = vrot.slane %v8899_v13, 2  ;;  %v4046_v18 = vadd.f32 1.0, %v6819_v7  ;;  %v4141_v13 = vrot.slane %v8905_v52, 2 }
 0x79e   : > { %6836 = vrcp.f32 %v3915_v38  ;;  %v4118_v38 = vcombine.high %v4102_v34, %v4102_v34  ;;  %v4120_v56 = vcombine.high %v4116_v49, %v4116_v49 }
 0x79f   : > { %6838 = vpow2.f32 %v5855_v31 }
 0x7a0   : > { %v6821_v25 = vpop.eup %6820  ;;  %6840 = vpow2.f32 %v5856_v8 }
 0x7a1   : > { %v6823_v0 = vpop.eup %6822  ;;  %v4129_v29 = vmul.f32 %v6821_v25, %v4095_v50  ;;  %6842 = vpow2.f32 %v5857_v63 }
 0x7a2   : > { %v6825_v22 = vpop.eup %6824  ;;  %6844 = vpow2.f32 %v5858_v39  ;;  %v4143_v39 = vrot.slane %v8911_v51, 2 }
 0x7a3   : > { %v6827_v11 = vpop.eup %6826  ;;  %v4130_v46 = vmul.f32 %v6825_v22, %v4109_v30  ;;  %v4153_v36 = vadd.f32 %v4137_v44, %v4129_v29  ;;  %6846 = vpow2.f32 %v5859_v19  ;;  %v4144_v19 = vrot.slane %v8915_v24, 2 }
 0x7a4   : > { %v6829_v32 = vpop.eup %6828  ;;  %v4131_v26 = vmul.f32 %v6827_v11, %v4117_v6  ;;  %6848 = vpow2.f32 %v5860_v54 }
 0x7a5   : > { %v6831_v12 = vpop.eup %6830  ;;  %v4132_v42 = vmul.f32 %v6829_v32, %v4119_v53  ;;  %v4154_v43 = vadd.f32 %v4138_v1, %v4130_v46  ;;  %6850 = vtanh.f32 %v4153_v36 }
 0x7a6   : > { %v6833_v31 = vpop.eup %6832  ;;  %v4133_v21 = vmul.f32 %v6831_v12, %v4102_v34  ;;  %v4155_v8 = vadd.f32 %v4139_v62, %v4131_v26  ;;  %6852 = vrcp.f32 %v4046_v18  ;;  %v4047_v62 = vadd.f32 1.0, %v6823_v0 }
 0x7a7   : > { %v6835_v63 = vpop.eup %6834  ;;  %v4134_v50 = vmul.f32 %v6833_v31, %v4116_v49  ;;  %v4156_v40 = vadd.f32 %v4140_v58, %v4132_v42  ;;  %6854 = vtanh.f32 %v4154_v43 }
 0x7a8   : > { %v6837_v52 = vpop.eup %6836  ;;  %v4135_v7 = vmul.f32 %v6835_v63, %v4118_v38  ;;  %v4157_v30 = vadd.f32 %v4141_v13, %v4133_v21  ;;  %6856 = vtanh.f32 %v4155_v8  ;;  %v8956_v13 = vstv %s4203_s17 }
 0x7a9   : > { %v6839_v41 = vpop.eup %6838  ;;  %v4136_v25 = vmul.f32 %v6837_v52, %v4120_v56  ;;  %v4158_v44 = vadd.f32 %v4142_v5, %v4134_v50  ;;  %6858 = vtanh.f32 %v4156_v40  ;;  %vm4205_vm13 = vcmp.eq.s32.totalorder %v8956_v13, 1 }
 0x7aa   : > { %v6841_v1 = vpop.eup %6840  ;;  %v4159_v54 = vadd.f32 %v4143_v39, %v4135_v7  ;;  %6860 = vtanh.f32 %v4157_v30  ;;  %v4048_v29 = vadd.f32 1.0, %v6839_v41 }
 0x7ab   : > { %v6843_v34 = vpop.eup %6842  ;;  %v4160_v51 = vadd.f32 %v4144_v19, %v4136_v25  ;;  %6862 = vtanh.f32 %v4158_v44  ;;  %v4049_v49 = vadd.f32 1.0, %v6841_v1 }
 0x7ac   : > { %v6845_v22 = vpop.eup %6844  ;;  %6864 = vtanh.f32 %v4159_v54  ;;  %v4050_v6 = vadd.f32 1.0, %v6843_v34 }
 0x7ad   : > { %v6847_v24 = vpop.eup %6846  ;;  %6866 = vtanh.f32 %v4160_v51  ;;  %v4051_v11 = vadd.f32 1.0, %v6845_v22 }
 0x7ae   : > { %v6849_v18 = vpop.eup %6848  ;;  %6868 = vrcp.f32 %v4047_v62  ;;  %v4052_v46 = vadd.f32 1.0, %v6847_v24 }
 0x7af   : > { %v6851_v53 = vpop.eup %6850  ;;  %6870 = vrcp.f32 %v4048_v29  ;;  %v4053_v0 = vadd.f32 1.0, %v6849_v18 }
 0x7b0   : > { %v6853_v36 = vpop.eup %6852  ;;  %6872 = vrcp.f32 %v4049_v49 }
 0x7b1   : > { %v6855_v32 = vpop.eup %6854  ;;  %6874 = vrcp.f32 %v4050_v6  ;;  %v4169_v58 = vsub.f32 1.0, %v6853_v36  ;;  %v4185_v42 = vmul.f32 %v6853_v36, %v8751_v23 }
 0x7b2   : > { %v6857_v26 = vpop.eup %6856  ;;  %6876 = vrcp.f32 %v4051_v11 }
 0x7b3   : > { %v6859_v12 = vpop.eup %6858  ;;  %6878 = vrcp.f32 %v4052_v46  ;;  %v4177_v5 = vmul.f32 %v6851_v53, %v4169_v58 }
 0x7b4   : > { %v6861_v43 = vpop.eup %6860  ;;  %6880 = vrcp.f32 %v4053_v0 }
 0x7b5   : > { %v6863_v31 = vpop.eup %6862  ;;  %v4193_v38 = vadd.f32 %v4185_v42, %v4177_v5 }
 0x7b6   : > { %v6865_v21 = vpop.eup %6864 }
 0x7b7   : > { %v6867_v8 = vpop.eup %6866  ;;  %v8963_v63 = vsel %vm4205_vm13, %v4193_v38, %v8751_v23 }
 0x7b8   : > { %v6869_v56 = vpop.eup %6868  ;;  %4214 = vst [vmem:[#allocation4 + $0x5] sm:$0x1] %v8963_v63  ;;  %v4238_v50 = vpack.c.bf16 %v8963_v63, %v8963_v63 }
 0x7b9   : > { %v6871_v40 = vpop.eup %6870  ;;  %v4170_v52 = vsub.f32 1.0, %v6869_v56  ;;  %v4186_v30 = vmul.f32 %v6869_v56, %v8765_v15 }
 0x7ba   : > { %v6873_v39 = vpop.eup %6872  ;;  %v4171_v7 = vsub.f32 1.0, %v6871_v40  ;;  %v4187_v44 = vmul.f32 %v6871_v40, %v8772_v9  ;;  %v4254_v1 = vunpack.c.l.b16 %v4238_v50 }
 0x7bb   : > { %v6875_v41 = vpop.eup %6874  ;;  %v4172_v19 = vsub.f32 1.0, %v6873_v39  ;;  %v4178_v25 = vmul.f32 %v6855_v32, %v4170_v52  ;;  %v4188_v34 = vmul.f32 %v6873_v39, %v8777_v4 }
 0x7bc   : > { %v6877_v23 = vpop.eup %6876  ;;  %v4173_v54 = vsub.f32 1.0, %v6875_v41  ;;  %v4179_v62 = vmul.f32 %v6857_v26, %v4171_v7  ;;  %v4189_v51 = vmul.f32 %v6875_v41, %v8785_v47 }
 0x7bd   : > { %v6879_v29 = vpop.eup %6878  ;;  %v4174_v22 = vsub.f32 1.0, %v6877_v23  ;;  %v4180_v49 = vmul.f32 %v6859_v12, %v4172_v19  ;;  %v4190_v24 = vmul.f32 %v6877_v23, %v8795_v28  ;;  %v4194_v6 = vadd.f32 %v4186_v30, %v4178_v25 }
 0x7be   : > { %v6881_v18 = vpop.eup %6880  ;;  %v4175_v11 = vsub.f32 1.0, %v6879_v29  ;;  %v4181_v53 = vmul.f32 %v6861_v43, %v4173_v54  ;;  %v4191_v46 = vmul.f32 %v6879_v29, %v8803_v2  ;;  %v4195_v36 = vadd.f32 %v4187_v44, %v4179_v62 }
 0x7bf   : > { %v4182_v0 = vmul.f32 %v6863_v31, %v4174_v22  ;;  %v4196_v32 = vadd.f32 %v4188_v34, %v4180_v49  ;;  %v8977_v58 = vsel %vm4205_vm13, %v4194_v6, %v8765_v15  ;;  %v4176_v26 = vsub.f32 1.0, %v6881_v18 }
 0x7c0   : > { %v4197_v5 = vadd.f32 %v4189_v51, %v4181_v53  ;;  %4215 = vst [vmem:[#allocation4 + $0xd] sm:$0x1] %v8977_v58  ;;  %v4183_v12 = vmul.f32 %v6865_v21, %v4175_v11  ;;  %v4192_v42 = vmul.f32 %v6881_v18, %v8811_v14  ;;  %v8984_v43 = vsel %vm4205_vm13, %v4195_v36, %v8772_v9 }
 0x7c1   : > { %v4184_v38 = vmul.f32 %v6867_v8, %v4176_v26  ;;  %v4198_v31 = vadd.f32 %v4190_v24, %v4182_v0  ;;  %v8989_v56 = vsel %vm4205_vm13, %v4196_v32, %v8777_v4  ;;  %4216 = vst [vmem:[#allocation4 + $0x15] sm:$0x1] %v8984_v43  ;;  %v4239_v15 = vpack.c.bf16 %v8977_v58, %v8977_v58  ;;  %v7109_v0 = vld [vmem:[#allocation11 + $0x20] ss:$12 sps:$4 sm:$0xff]  }
 0x7c2   : > { %v4199_v21 = vadd.f32 %v4191_v46, %v4183_v12  ;;  %v8997_v50 = vsel %vm4205_vm13, %v4197_v5, %v8785_v47  ;;  %4217 = vst [vmem:[#allocation4 + $0x1d] sm:$0x1] %v8989_v56  ;;  %v4240_v9 = vpack.c.bf16 %v8984_v43, %v8984_v43  ;;  %v4241_v4 = vpack.c.bf16 %v8989_v56, %v8989_v56 }
 0x7c3   : > { %v4200_v8 = vadd.f32 %v4192_v42, %v4184_v38  ;;  %v9007_v40 = vsel %vm4205_vm13, %v4198_v31, %v8795_v28  ;;  %4218 = vst [vmem:[#allocation4 + $0x25] sm:$0x1] %v8997_v50  ;;  %v4242_v47 = vpack.c.bf16 %v8997_v50, %v8997_v50  ;;  %v4255_v52 = vunpack.c.l.b16 %v4239_v15  ;;  %v9068_v31 = vld [vmem:[#allocation3 + $0x6] ss:$8 sm:$0x7] }
 0x7c4   : > { %v9015_v39 = vsel %vm4205_vm13, %v4199_v21, %v8803_v2  ;;  %4219 = vst [vmem:[#allocation4 + $0x2d] sm:$0x1] %v9007_v40  ;;  %v4243_v7 = vpack.c.bf16 %v9007_v40, %v9007_v40  ;;  %v4256_v30 = vunpack.c.l.b16 %v4240_v9  ;;  %v4257_v41 = vunpack.c.l.b16 %v4241_v4  ;;  %v9070_v15 = vld [vmem:[#allocation3 + $0x1e] ss:$8 sm:$0x7] }
 0x7c5   : > { %v9023_v28 = vsel %vm4205_vm13, %v4200_v8, %v8811_v14  ;;  %4220 = vst [vmem:[#allocation4 + $0x35] sm:$0x1] %v9015_v39  ;;  %v4244_v19 = vpack.c.bf16 %v9015_v39, %v9015_v39  ;;  %v4258_v25 = vunpack.c.l.b16 %v4242_v47  ;;  %v4262_v2 = vrot.slane %v4255_v52, 7  ;;  %v9074_v47 = vld [vmem:[#allocation3 + $0x36] ss:$8 sm:$0x7] }
 0x7c6   : > { %4221 = vst [vmem:[#allocation4 + $0x3d] sm:$0x1] %v9023_v28  ;;  %v4245_v44 = vpack.c.bf16 %v9023_v28, %v9023_v28  ;;  %v4259_v23 = vunpack.c.l.b16 %v4243_v7  ;;  %v4264_v54 = vrot.slane %v4256_v30, 6  ;;  %v4266_v62 = vrot.slane %v4257_v41, 5 }
 0x7c7   : > { %v4260_v34 = vunpack.c.l.b16 %v4244_v19  ;;  %v4263_v13 = vsel %vm1551_vm2, %v4262_v2, %v4254_v1  ;;  %v4268_v29 = vrot.slane %v4258_v25, 4  ;;  %v7108_v1 = vld [vmem:[#allocation11 + $0x8] ss:$12 sps:$4 sm:$0xff]   ;;  %v9080_v41 = vld [vmem:[#allocation3 + $0x66] ss:$8 sm:$0x7] }
 0x7c8   : > { %v4261_v14 = vunpack.c.l.b16 %v4245_v44  ;;  %v4265_v51 = vsel %vm1554_vm3, %v4264_v54, %v4263_v13  ;;  %v4270_v49 = vrot.slane %v4259_v23, 3  ;;  %v9076_v52 = vld [vmem:[#allocation3 + $0x4e] ss:$8 sm:$0x7] }
 0x7c9   : > { %v4267_v22 = vsel %vm1557_vm4, %v4266_v62, %v4265_v51  ;;  %v4272_v6 = vrot.slane %v4260_v34, 2  ;;  %v9082_v19 = vld [vmem:[#allocation3 + $0x7e] ss:$8 sm:$0x7] }
 0x7ca   : > { %v4269_v24 = vsel %vm1560_vm5, %v4268_v29, %v4267_v22  ;;  %v4274_v11 = vrot.slane %v4261_v14, 1  ;;  %v9086_v54 = vld [vmem:[#allocation3 + $0x96] ss:$8 sm:$0x7] }
 0x7cb   : > { %v4271_v18 = vsel %vm1563_vm6, %v4270_v49, %v4269_v24  ;;  %v9090_v51 = vld [vmem:[#allocation3 + $0xae] ss:$8 sm:$0x7] }
 0x7cc   : > { %v4273_v53 = vsel %vm1566_vm7, %v4272_v6, %v4271_v18 }
 0x7cd   : > { %v4275_v46 = vsel %vm1569_vm8, %v4274_v11, %v4273_v53 }
 0x7ce   : > { %v4276_v36 = vpack.c.b16 %v4275_v46, %v4275_v46 }
 0x7d0   : > { %4311 = vmatmul.mubr.bf16.vlgmr.msra.gmra.mrb[24].mxu0 %v4276_v36  ;;  %6173 = vmatmul.mubr.bf16.vlgmr.msra.gmra.mrb[48].mxu1 %v4276_v36 }
 0x7d1   : > { %4820 = vmatpush1.bf16.msra.mxu0 %v8826_v48  ;;  %6177 = vmatpush3.bf16.msra.mxu1 %v7108_v1  ;;  %v7110_v48 = vld [vmem:[#allocation11 + $0x38] ss:$12 sps:$4 sm:$0xff]  }
 0x7d2   : > { %4821 = vmatprep.subr.bf16.mxu0 %v8830_v17  ;;  %6178 = vmatprep.subr.bf16.mxu1 %v9459_v16  ;;  %v7112_v17 = vld [vmem:[#allocation11 + $0x68] ss:$12 sps:$4 sm:$0xff]  }
 0x7d3   : > { %4851 = vmatprep.mubr.bf16.mxu0 %v9460_v59  ;;  %6192 = vmatprep.mubr.msk.bf16.mxu1 %vm7376_vm0, %v9459_v16  ;;  %v7111_v59 = vld [vmem:[#allocation11 + $0x50] ss:$12 sps:$4 sm:$0xff]  }
 0x7d5   : > { %4822 = vmatpush1.bf16.msra.mxu0 %v8837_v45  ;;  %6179 = vmatpush3.bf16.msra.mxu1 %v7109_v0  ;;  %v7113_v45 = vld [vmem:[#allocation11 + $0x80] ss:$12 sps:$4 sm:$0xff]  }
 0x7d6   : > { %4823 = vmatprep.subr.bf16.mxu0 %v8841_v27  ;;  %6180 = vmatprep.subr.bf16.mxu1 %v9459_v16  ;;  %v7114_v27 = vld [vmem:[#allocation11 + $0x98] ss:$12 sps:$4 sm:$0xff]  }
 0x7d9   : > { %4824 = vmatpush1.bf16.msra.mxu0 %v8845_v55  ;;  %6181 = vmatpush3.bf16.msra.mxu1 %v7110_v48  ;;  %v9474_v55 = vld [vmem:[#allocation23_spill] sm:$0xff] }
 0x7da   : > { %4825 = vmatprep.subr.bf16.mxu0 %v8849_v57  ;;  %6182 = vmatprep.subr.bf16.mxu1 %v9459_v16  ;;  %v9475_v57 = vld [vmem:[#allocation24_spill] sm:$0xff] }
 0x7dd   : > { %4826 = vmatpush1.bf16.msra.mxu0 %v8853_v61  ;;  %6183 = vmatpush3.bf16.msra.mxu1 %v7111_v59  ;;  %v7115_v61 = vld [vmem:[#allocation11 + $0xb0] ss:$12 sps:$4 sm:$0xff]  }
 0x7de   : > { %4827 = vmatprep.subr.bf16.mxu0 %v8857_v35  ;;  %6184 = vmatprep.subr.bf16.mxu1 %v9459_v16 }
 0x7e1   : > { %4828 = vmatpush1.bf16.msra.mxu0 %v8861_v3  ;;  %6185 = vmatpush3.bf16.msra.mxu1 %v7112_v17 }
 0x7e2   : > { %4829 = vmatprep.subr.bf16.mxu0 %v8865_v37  ;;  %6186 = vmatprep.subr.bf16.mxu1 %v9459_v16 }
 0x7e5   : > { %4830 = vmatpush1.bf16.msra.mxu0 %v8869_v20  ;;  %6187 = vmatpush3.bf16.msra.mxu1 %v7113_v45  ;;  %v4481_v45 = vrot.slane %v9068_v31, 1 }
 0x7e6   : > { %4831 = vmatprep.subr.bf16.mxu0 %v8873_v10  ;;  %6188 = vmatprep.subr.bf16.mxu1 %v9459_v16 }
 0x7e9   : > { %4832 = vmatpush1.bf16.msra.mxu0 %v8877_v60  ;;  %6189 = vmatpush3.bf16.msra.mxu1 %v7114_v27 }
 0x7ea   : > { %4833 = vmatprep.subr.bf16.mxu0 %v9474_v55  ;;  %6190 = vmatprep.subr.bf16.mxu1 %v9459_v16  ;;  %v4482_v55 = vrot.slane %v9070_v15, 1 }
 0x7ed   : > { %4834 = vmatpush1.bf16.msra.mxu0 %v9475_v57  ;;  %6191 = vmatpush3.bf16.msra.mxu1 %v7115_v61 }
 0x8a3   : > { %v4312_v35 = vpop.f32.mrb[24].mxu0  ;;  %v9063_v3 = vpop.f32.mrb[48].mxu1 }
 0x8a4   : > { %v4360_v37 = vcombine.high %v4312_v35, %v4312_v35  ;;  %v4367_v20 = vrot.slane %v4312_v35, %v7804_v33  ;;  %v4314_v10 = vpop.f32.mrb[25].mxu0  ;;  %v6174_v32 = vpop.f32.mrb[49].mxu1  ;;  %v9104_v35 = vld [vmem:[%s9414_s5] ss:$0 sm:$0xff] }
 0x8a5   : > { %v4316_v26 = vpop.f32.mrb[26].mxu0  ;;  %v4356_v60 = vpop.f32.mrb[50].mxu1  ;;  %v4505_v30 = vrot.slane %v4314_v10, %v7804_v33  ;;  %v4498_v14 = vcombine.high %v4314_v10, %v4314_v10  ;;  %v4483_v10 = vrot.slane %v9074_v47, 1  ;;  %v4484_v32 = vrot.slane %v9076_v52, 1 }
 0x8a6   : > { %v4374_v5 = vrot.slane %v4360_v37, %v7804_v33  ;;  %v4375_v12 = vcombine.high %v4367_v20, %v4367_v20  ;;  %v4383_v42 = vrot.slane %v4367_v20, %v7804_v33  ;;  %v4317_v16 = vpop.f32.mrb[27].mxu0  ;;  %v6175_v38 = vpop.f32.mrb[51].mxu1  ;;  %v4611_v37 = vadd.f32 %v9104_v35, %v9063_v3 }
 0x8a7   : > { %v4513_v36 = vcombine.high %v4505_v30, %v4505_v30  ;;  %v4521_v0 = vrot.slane %v4505_v30, %v7804_v33  ;;  %v4512_v59 = vrot.slane %v4498_v14, %v7804_v33  ;;  %v4485_v38 = vrot.slane %v9080_v41, 1 }
 0x8a8   : > { %v4376_v21 = vcombine.high %v4374_v5, %v4374_v5  ;;  %v4390_v9 = vrot.slane %v4374_v5, %v7804_v33  ;;  %v4397_v4 = vrot.slane %v4375_v12, %v7804_v33  ;;  %v4405_v8 = vcombine.high %v4383_v42, %v4383_v42 }
 0x8a9   : > { %v4417_v7 = vadd.f32 %v4383_v42, %v9068_v31  ;;  %v4535_v27 = vrot.slane %v4513_v36, %v7804_v33  ;;  %v4555_v57 = vadd.f32 %v4521_v0, %v4481_v45  ;;  %v4514_v61 = vcombine.high %v4512_v59, %v4512_v59 }
 0x8aa   : > { %v4404_v25 = vrot.slane %v4376_v21, %v7804_v33  ;;  %v4406_v2 = vcombine.high %v4390_v9, %v4390_v9  ;;  %v4407_v44 = vcombine.high %v4397_v4, %v4397_v4  ;;  %v4418_v23 = vadd.f32 %v4397_v4, %v9070_v15 }
 0x8ab   : > { %v4419_v62 = vadd.f32 %v4405_v8, %v9074_v47  ;;  %v4421_v34 = vadd.f32 %v4390_v9, %v9080_v41  ;;  %v5861_v13 = vmul.f32 -1.442695, %v4417_v7  ;;  %v4556_v20 = vadd.f32 %v4535_v27, %v4482_v55 }
 0x8ac   : > { %v4408_v29 = vcombine.high %v4404_v25, %v4404_v25  ;;  %v4420_v22 = vadd.f32 %v4407_v44, %v9076_v52  ;;  %v4422_v49 = vadd.f32 %v4404_v25, %v9082_v19  ;;  %v4423_v24 = vadd.f32 %v4406_v2, %v9086_v54 }
 0x8ad   : > { %6882 = vpow2.f32 %v5861_v13  ;;  %v5862_v6 = vmul.f32 -1.442695, %v4418_v23  ;;  %v5863_v18 = vmul.f32 -1.442695, %v4419_v62  ;;  %v5865_v46 = vmul.f32 -1.442695, %v4421_v34 }
 0x8ae   : > { %v4424_v11 = vadd.f32 %v4408_v29, %v9090_v51  ;;  %v5864_v53 = vmul.f32 -1.442695, %v4420_v22  ;;  %v5866_v1 = vmul.f32 -1.442695, %v4422_v49  ;;  %v5867_v48 = vmul.f32 -1.442695, %v4423_v24 }
 0x8af   : > { %6884 = vpow2.f32 %v5862_v6  ;;  %v4528_v60 = vrot.slane %v4512_v59, %v7804_v33  ;;  %v4543_v5 = vcombine.high %v4521_v0, %v4521_v0  ;;  %v5869_v12 = vmul.f32 -1.442695, %v4555_v57 }
 0x8b0   : > { %6886 = vpow2.f32 %v5863_v18  ;;  %v5868_v17 = vmul.f32 -1.442695, %v4424_v11  ;;  %v5870_v42 = vmul.f32 -1.442695, %v4556_v20  ;;  %v4542_v21 = vrot.slane %v4514_v61, %v7804_v33 }
 0x8b1   : > { %6888 = vpow2.f32 %v5864_v53  ;;  %v4545_v9 = vcombine.high %v4535_v27, %v4535_v27  ;;  %v4613_v8 = vcombine.high %v4611_v37, %v4611_v37  ;;  %v4486_v3 = vrot.slane %v9082_v19, 1 }
 0x8b2   : > { %6890 = vpow2.f32 %v5865_v46  ;;  %v4487_v7 = vrot.slane %v9086_v54, 1  ;;  %v4620_v2 = vrot.slane %v4611_v37, %v7804_v33  ;;  %v4488_v44 = vrot.slane %v9090_v51, 1 }
 0x8b3   : > { %6892 = vpow2.f32 %v5866_v1  ;;  %v4544_v34 = vcombine.high %v4528_v60, %v4528_v60  ;;  %v4557_v13 = vadd.f32 %v4543_v5, %v4483_v10  ;;  %v4546_v22 = vcombine.high %v4542_v21, %v4542_v21 }
 0x8b4   : > { %6894 = vpow2.f32 %v5867_v48  ;;  %v4558_v49 = vadd.f32 %v4545_v9, %v4484_v32  ;;  %v4627_v18 = vrot.slane %v4613_v8, %v7804_v33  ;;  %v4559_v11 = vadd.f32 %v4528_v60, %v4485_v38 }
 0x8b5   : > { %6896 = vpow2.f32 %v5868_v17  ;;  %v4628_v36 = vcombine.high %v4620_v2, %v4620_v2  ;;  %v4560_v1 = vadd.f32 %v4542_v21, %v4486_v3  ;;  %v4561_v59 = vadd.f32 %v4544_v34, %v4487_v7 }
 0x8b6   : > { %6898 = vpow2.f32 %v5869_v12  ;;  %v5871_v17 = vmul.f32 -1.442695, %v4557_v13  ;;  %v4562_v27 = vadd.f32 %v4546_v22, %v4488_v44  ;;  %v5872_v55 = vmul.f32 -1.442695, %v4558_v49 }
 0x8b7   : > { %v6883_v26 = vpop.eup %6882  ;;  %v5873_v57 = vmul.f32 -1.442695, %v4559_v11  ;;  %v4629_v61 = vcombine.high %v4627_v18, %v4627_v18  ;;  %v4636_v37 = vrot.slane %v4620_v2, %v7804_v33  ;;  %v5874_v20 = vmul.f32 -1.442695, %v4560_v1 }
 0x8b8   : > { %v4449_v16 = vadd.f32 1.0, %v6883_v26  ;;  %v4650_v32 = vrot.slane %v4628_v36, %v7804_v33  ;;  %v5875_v26 = vmul.f32 -1.442695, %v4561_v59  ;;  %v4678_v5 = vrot.slane %v9068_v31, 2 }
 0x8b9   : > { %v6885_v4 = vpop.eup %6884  ;;  %v4679_v12 = vrot.slane %v9070_v15, 2  ;;  %v4680_v38 = vrot.slane %v9074_v47, 2  ;;  %v4643_v21 = vrot.slane %v4627_v18, %v7804_v33  ;;  %v4657_v8 = vrot.slane %v4629_v61, %v7804_v33 }
 0x8ba   : > { %v6887_v30 = vpop.eup %6886  ;;  %v4450_v25 = vadd.f32 1.0, %v6885_v4  ;;  %6900 = vrcp.f32 %v4449_v16  ;;  %v4658_v3 = vcombine.high %v4636_v37, %v4636_v37  ;;  %v4681_v44 = vrot.slane %v9076_v52, 2 }
 0x8bb   : > { %v6889_v23 = vpop.eup %6888  ;;  %v4451_v62 = vadd.f32 1.0, %v6887_v30  ;;  %6902 = vpow2.f32 %v5870_v42  ;;  %v5876_v42 = vmul.f32 -1.442695, %v4562_v27  ;;  %v4682_v47 = vrot.slane %v9080_v41, 2 }
 0x8bc   : > { %v6891_v14 = vpop.eup %6890  ;;  %v4452_v29 = vadd.f32 1.0, %v6889_v23  ;;  %6904 = vrcp.f32 %v4450_v25  ;;  %v4660_v25 = vcombine.high %v4650_v32, %v4650_v32  ;;  %v4683_v34 = vrot.slane %v9082_v19, 2 }
 0x8bd   : > { %v6893_v24 = vpop.eup %6892  ;;  %v4453_v6 = vadd.f32 1.0, %v6891_v14  ;;  %6906 = vrcp.f32 %v4451_v62  ;;  %v4659_v22 = vcombine.high %v4643_v21, %v4643_v21  ;;  %v4661_v18 = vcombine.high %v4657_v8, %v4657_v8 }
 0x8be   : > { %v6895_v53 = vpop.eup %6894  ;;  %v4454_v46 = vadd.f32 1.0, %v6893_v24  ;;  %6908 = vrcp.f32 %v4452_v29  ;;  %v4685_v1 = vrot.slane %v9090_v51, 2 }
 0x8bf   : > { %v6897_v0 = vpop.eup %6896  ;;  %v4455_v48 = vadd.f32 1.0, %v6895_v53  ;;  %6910 = vrcp.f32 %v4453_v6  ;;  %v4684_v53 = vrot.slane %v9086_v54, 2 }
 0x8c0   : > { %v4456_v45 = vadd.f32 1.0, %v6897_v0  ;;  %6912 = vrcp.f32 %v4454_v46  ;;  %v6899_v10 = vpop.eup %6898 }
 0x8c1   : > { %6914 = vrcp.f32 %v4455_v48  ;;  %v4587_v7 = vadd.f32 1.0, %v6899_v10 }
 0x8c2   : > { %6916 = vrcp.f32 %v4456_v45 }
 0x8c3   : > { %6918 = vpow2.f32 %v5871_v17 }
 0x8c4   : > { %v6901_v60 = vpop.eup %6900  ;;  %6920 = vpow2.f32 %v5872_v55 }
 0x8c5   : > { %v6903_v16 = vpop.eup %6902  ;;  %v4670_v9 = vmul.f32 %v6901_v60, %v4636_v37  ;;  %6922 = vpow2.f32 %v5873_v57 }
 0x8c6   : > { %v6905_v4 = vpop.eup %6904  ;;  %6924 = vpow2.f32 %v5874_v20  ;;  %v4588_v45 = vadd.f32 1.0, %v6903_v16  ;;  %v9137_v16 = vstv %s4744_s29 }
 0x8c7   : > { %v6907_v30 = vpop.eup %6906  ;;  %v4671_v31 = vmul.f32 %v6905_v4, %v4650_v32  ;;  %v4694_v2 = vadd.f32 %v4678_v5, %v4670_v9  ;;  %6926 = vpow2.f32 %v5875_v26  ;;  %vm4746_vm14 = vcmp.eq.s32.totalorder %v9137_v16, 1 }
 0x8c8   : > { %v6909_v15 = vpop.eup %6908  ;;  %v4672_v23 = vmul.f32 %v6907_v30, %v4658_v3  ;;  %6928 = vpow2.f32 %v5876_v42 }
 0x8c9   : > { %v6911_v62 = vpop.eup %6910  ;;  %v4673_v13 = vmul.f32 %v6909_v15, %v4660_v25  ;;  %v4695_v14 = vadd.f32 %v4679_v12, %v4671_v31  ;;  %6930 = vtanh.f32 %v4694_v2 }
 0x8ca   : > { %v6913_v29 = vpop.eup %6912  ;;  %v4674_v49 = vmul.f32 %v6911_v62, %v4643_v21  ;;  %v4696_v24 = vadd.f32 %v4680_v38, %v4672_v23  ;;  %6932 = vrcp.f32 %v4587_v7 }
 0x8cb   : > { %v6915_v6 = vpop.eup %6914  ;;  %v4675_v11 = vmul.f32 %v6913_v29, %v4657_v8  ;;  %v4697_v52 = vadd.f32 %v4681_v44, %v4673_v13  ;;  %6934 = vtanh.f32 %v4695_v14 }
 0x8cc   : > { %v6917_v41 = vpop.eup %6916  ;;  %v4676_v46 = vmul.f32 %v6915_v6, %v4659_v22  ;;  %v4698_v36 = vadd.f32 %v4682_v47, %v4674_v49  ;;  %6936 = vtanh.f32 %v4696_v24 }
 0x8cd   : > { %v6919_v19 = vpop.eup %6918  ;;  %v4677_v0 = vmul.f32 %v6917_v41, %v4661_v18  ;;  %v4699_v48 = vadd.f32 %v4683_v34, %v4675_v11  ;;  %6938 = vtanh.f32 %v4697_v52 }
 0x8ce   : > { %v6921_v59 = vpop.eup %6920  ;;  %v4700_v17 = vadd.f32 %v4684_v53, %v4676_v46  ;;  %6940 = vtanh.f32 %v4698_v36  ;;  %v4589_v55 = vadd.f32 1.0, %v6919_v19 }
 0x8cf   : > { %v6923_v27 = vpop.eup %6922  ;;  %v4701_v54 = vadd.f32 %v4685_v1, %v4677_v0  ;;  %6942 = vtanh.f32 %v4699_v48  ;;  %v4590_v61 = vadd.f32 1.0, %v6921_v59 }
 0x8d0   : > { %v6925_v57 = vpop.eup %6924  ;;  %6944 = vtanh.f32 %v4700_v17  ;;  %v4591_v37 = vadd.f32 1.0, %v6923_v27 }
 0x8d1   : > { %v6927_v51 = vpop.eup %6926  ;;  %6946 = vtanh.f32 %v4701_v54  ;;  %v4592_v10 = vadd.f32 1.0, %v6925_v57 }
 0x8d2   : > { %v6929_v20 = vpop.eup %6928  ;;  %6948 = vrcp.f32 %v4588_v45  ;;  %v4593_v26 = vadd.f32 1.0, %v6927_v51 }
 0x8d3   : > { %v6931_v32 = vpop.eup %6930  ;;  %6950 = vrcp.f32 %v4589_v55  ;;  %v4594_v5 = vadd.f32 1.0, %v6929_v20 }
 0x8d4   : > { %v6933_v60 = vpop.eup %6932  ;;  %6952 = vrcp.f32 %v4590_v61 }
 0x8d5   : > { %v6935_v12 = vpop.eup %6934  ;;  %6954 = vrcp.f32 %v4591_v37  ;;  %v4710_v42 = vsub.f32 1.0, %v6933_v60  ;;  %v4726_v4 = vmul.f32 %v6933_v60, %v8963_v63 }
 0x8d6   : > { %v6937_v38 = vpop.eup %6936  ;;  %6956 = vrcp.f32 %v4592_v10 }
 0x8d7   : > { %v6939_v21 = vpop.eup %6938  ;;  %6958 = vrcp.f32 %v4593_v26  ;;  %v4718_v9 = vmul.f32 %v6931_v32, %v4710_v42 }
 0x8d8   : > { %v6941_v8 = vpop.eup %6940  ;;  %6960 = vrcp.f32 %v4594_v5 }
 0x8d9   : > { %v6943_v3 = vpop.eup %6942  ;;  %v4734_v7 = vadd.f32 %v4726_v4, %v4718_v9 }
 0x8da   : > { %v6945_v30 = vpop.eup %6944 }
 0x8db   : > { %v6947_v25 = vpop.eup %6946  ;;  %v9144_v31 = vsel %vm4746_vm14, %v4734_v7, %v8963_v63 }
 0x8dc   : > { %v6949_v2 = vpop.eup %6948  ;;  %4755 = vst [vmem:[#allocation4 + $0x6] sm:$0x1] %v9144_v31  ;;  %v4779_v15 = vpack.c.bf16 %v9144_v31, %v9144_v31 }
 0x8dd   : > { %v6951_v44 = vpop.eup %6950  ;;  %v4711_v47 = vsub.f32 1.0, %v6949_v2  ;;  %v4727_v34 = vmul.f32 %v6949_v2, %v8977_v58 }
 0x8de   : > { %v6953_v23 = vpop.eup %6952  ;;  %v4712_v62 = vsub.f32 1.0, %v6951_v44  ;;  %v4728_v22 = vmul.f32 %v6951_v44, %v8984_v43  ;;  %v4795_v49 = vunpack.c.l.b16 %v4779_v15 }
 0x8df   : > { %v6955_v13 = vpop.eup %6954  ;;  %v4713_v14 = vsub.f32 1.0, %v6953_v23  ;;  %v4719_v29 = vmul.f32 %v6935_v12, %v4711_v47  ;;  %v4729_v18 = vmul.f32 %v6953_v23, %v8989_v56 }
 0x8e0   : > { %v6957_v63 = vpop.eup %6956  ;;  %v4714_v24 = vsub.f32 1.0, %v6955_v13  ;;  %v4720_v6 = vmul.f32 %v6937_v38, %v4712_v62  ;;  %v4730_v11 = vmul.f32 %v6955_v13, %v8997_v50 }
 0x8e1   : > { %v6959_v52 = vpop.eup %6958  ;;  %v4715_v41 = vsub.f32 1.0, %v6957_v63  ;;  %v4721_v53 = vmul.f32 %v6939_v21, %v4713_v14  ;;  %v4731_v46 = vmul.f32 %v6957_v63, %v9007_v40  ;;  %v4735_v36 = vadd.f32 %v4727_v34, %v4719_v29 }
 0x8e2   : > { %v6961_v19 = vpop.eup %6960  ;;  %v4716_v1 = vsub.f32 1.0, %v6959_v52  ;;  %v4722_v0 = vmul.f32 %v6941_v8, %v4714_v24  ;;  %v4732_v48 = vmul.f32 %v6959_v52, %v9015_v39  ;;  %v4736_v59 = vadd.f32 %v4728_v22, %v4720_v6  ;;  %v6395_v24 = vld [vmem:[#allocation13 + $0x8] sm:$0xff]   ;;  %v6396_v6 = vld [vmem:[#allocation13 + $0x10] sm:$0xff]  }
 0x8e3   : > { %v4723_v17 = vmul.f32 %v6943_v3, %v4715_v41  ;;  %v4737_v45 = vadd.f32 %v4729_v18, %v4721_v53  ;;  %v9158_v27 = vsel %vm4746_vm14, %v4735_v36, %v8977_v58  ;;  %v4717_v54 = vsub.f32 1.0, %v6961_v19  ;;  %v6397_v18 = vld [vmem:[#allocation13 + $0x18] sm:$0xff]   ;;  %v6399_v52 = vld [vmem:[#allocation13 + $0x28] sm:$0xff]   ;;  %v6400_v41 = vld [vmem:[#allocation13 + $0x30] sm:$0xff]  }
 0x8e4   : > { %v4738_v55 = vadd.f32 %v4730_v11, %v4722_v0  ;;  %4756 = vst [vmem:[#allocation4 + $0xe] sm:$0x1] %v9158_v27  ;;  %v4724_v57 = vmul.f32 %v6945_v30, %v4716_v1  ;;  %v4733_v61 = vmul.f32 %v6961_v19, %v9023_v28  ;;  %v9165_v51 = vsel %vm4746_vm14, %v4736_v59, %v8984_v43  ;;  %v6398_v11 = vld [vmem:[#allocation13 + $0x20] sm:$0xff]   ;;  %v6401_v53 = vld [vmem:[#allocation13 + $0x38] sm:$0xff]  }
 0x8e5   : > { %v4725_v37 = vmul.f32 %v6947_v25, %v4717_v54  ;;  %v4739_v20 = vadd.f32 %v4731_v46, %v4723_v17  ;;  %v9170_v10 = vsel %vm4746_vm14, %v4737_v45, %v8989_v56  ;;  %4757 = vst [vmem:[#allocation4 + $0x16] sm:$0x1] %v9165_v51  ;;  %v4780_v58 = vpack.c.bf16 %v9158_v27, %v9158_v27 }
 0x8e6   : > { %v4740_v32 = vadd.f32 %v4732_v48, %v4724_v57  ;;  %v9178_v26 = vsel %vm4746_vm14, %v4738_v55, %v8997_v50  ;;  %4758 = vst [vmem:[#allocation4 + $0x1e] sm:$0x1] %v9170_v10  ;;  %v4781_v43 = vpack.c.bf16 %v9165_v51, %v9165_v51  ;;  %v4782_v56 = vpack.c.bf16 %v9170_v10, %v9170_v10 }
 0x8e7   : > { %v4741_v60 = vadd.f32 %v4733_v61, %v4725_v37  ;;  %v9188_v5 = vsel %vm4746_vm14, %v4739_v20, %v9007_v40  ;;  %4759 = vst [vmem:[#allocation4 + $0x26] sm:$0x1] %v9178_v26  ;;  %v4783_v50 = vpack.c.bf16 %v9178_v26, %v9178_v26  ;;  %v4796_v12 = vunpack.c.l.b16 %v4780_v58  ;;  %v9222_v37 = vld [vmem:[#allocation3 + $0x7] ss:$8 sm:$0x7] }
 0x8e8   : > { %v9196_v42 = vsel %vm4746_vm14, %v4740_v32, %v9015_v39  ;;  %4760 = vst [vmem:[#allocation4 + $0x2e] sm:$0x1] %v9188_v5  ;;  %v4784_v38 = vpack.c.bf16 %v9188_v5, %v9188_v5  ;;  %v4797_v21 = vunpack.c.l.b16 %v4781_v43  ;;  %v4798_v9 = vunpack.c.l.b16 %v4782_v56  ;;  %v9224_v20 = vld [vmem:[#allocation3 + $0x1f] ss:$8 sm:$0x7] }
 0x8e9   : > { %v9204_v40 = vsel %vm4746_vm14, %v4741_v60, %v9023_v28  ;;  %4761 = vst [vmem:[#allocation4 + $0x36] sm:$0x1] %v9196_v42  ;;  %v4785_v4 = vpack.c.bf16 %v9196_v42, %v9196_v42  ;;  %v4799_v8 = vunpack.c.l.b16 %v4783_v50  ;;  %v4803_v39 = vrot.slane %v4796_v12, 7  ;;  %v9228_v60 = vld [vmem:[#allocation3 + $0x37] ss:$8 sm:$0x7] }
 0x8ea   : > { %4762 = vst [vmem:[#allocation4 + $0x3e] sm:$0x1] %v9204_v40  ;;  %v4786_v3 = vpack.c.bf16 %v9204_v40, %v9204_v40  ;;  %v4800_v7 = vunpack.c.l.b16 %v4784_v38  ;;  %v4805_v30 = vrot.slane %v4797_v21, 6  ;;  %v4807_v25 = vrot.slane %v4798_v9, 5 }
 0x8eb   : > { %v4801_v2 = vunpack.c.l.b16 %v4785_v4  ;;  %v4804_v16 = vsel %vm1551_vm2, %v4803_v39, %v4795_v49  ;;  %v4809_v44 = vrot.slane %v4799_v8, 4  ;;  %v6394_v49 = vld [vmem:[#allocation13] sm:$0xff]  }
 0x8ec   : > { %v4802_v28 = vunpack.c.l.b16 %v4786_v3  ;;  %v4806_v15 = vsel %vm1554_vm3, %v4805_v30, %v4804_v16  ;;  %v4811_v23 = vrot.slane %v4800_v7, 3  ;;  %6196 = vmatprep.subr.bf16.mxu0 %v6394_v49  ;;  %v9230_v50 = vld [vmem:[#allocation3 + $0x4f] ss:$8 sm:$0x7] }
 0x8ed   : > { %v4808_v47 = vsel %vm1557_vm4, %v4807_v25, %v4806_v15  ;;  %v4813_v34 = vrot.slane %v4801_v2, 2  ;;  %v9234_v21 = vld [vmem:[#allocation3 + $0x67] ss:$8 sm:$0x7] }
 0x8ee   : > { %v4810_v62 = vsel %vm1560_vm5, %v4809_v44, %v4808_v47  ;;  %v4815_v14 = vrot.slane %v4802_v28, 1  ;;  %v9236_v9 = vld [vmem:[#allocation3 + $0x7f] ss:$8 sm:$0x7] }
 0x8ef   : > { %v4812_v13 = vsel %vm1563_vm6, %v4811_v23, %v4810_v62  ;;  %v9240_v7 = vld [vmem:[#allocation3 + $0x97] ss:$8 sm:$0x7] }
 0x8f0   : > { %v4814_v29 = vsel %vm1566_vm7, %v4813_v34, %v4812_v13  ;;  %v9244_v28 = vld [vmem:[#allocation3 + $0xaf] ss:$8 sm:$0x7] }
 0x8f1   : > { %v4816_v22 = vsel %vm1569_vm8, %v4815_v14, %v4814_v29 }
 0x8f2   : > { %v4817_v63 = vpack.c.b16 %v4816_v22, %v4816_v22 }
 0x8f4   : > { %4852 = vmatmul.mubr.bf16.vlgmr.msra.gmra.mrb[28].mxu0 %v4817_v63  ;;  %6193 = vmatmul.mubr.bf16.vlgmr.msra.gmra.mrb[52].mxu1 %v4817_v63 }
 0x8f5   : > { %6197 = vmatpush3.bf16.msra.mxu0 %v6394_v49 }
 0x8f6   : > { %6198 = vmatprep.subr.bf16.mxu0 %v6395_v24 }
 0x8f9   : > { %6199 = vmatpush3.bf16.msra.mxu0 %v6395_v24 }
 0x8fa   : > { %6200 = vmatprep.subr.bf16.mxu0 %v6396_v6 }
 0x8fd   : > { %6201 = vmatpush3.bf16.msra.mxu0 %v6396_v6 }
 0x8fe   : > { %6202 = vmatprep.subr.bf16.mxu0 %v6397_v18 }
 0x901   : > { %6203 = vmatpush3.bf16.msra.mxu0 %v6397_v18 }
 0x902   : > { %6204 = vmatprep.subr.bf16.mxu0 %v6398_v11 }
 0x905   : > { %6205 = vmatpush3.bf16.msra.mxu0 %v6398_v11  ;;  %v5022_v11 = vrot.slane %v9222_v37, 1 }
 0x906   : > { %6206 = vmatprep.subr.bf16.mxu0 %v6399_v52 }
 0x909   : > { %6207 = vmatpush3.bf16.msra.mxu0 %v6399_v52 }
 0x90a   : > { %6208 = vmatprep.subr.bf16.mxu0 %v6400_v41 }
 0x90d   : > { %6209 = vmatpush3.bf16.msra.mxu0 %v6400_v41  ;;  %v5023_v41 = vrot.slane %v9224_v20, 1 }
 0x90e   : > { %6210 = vmatprep.subr.bf16.mxu0 %v6401_v53 }
 0x911   : > { %6211 = vmatpush3.bf16.msra.mxu0 %v6401_v53 }
 0x9c7   : > { %v4853_v46 = vpop.f32.mrb[28].mxu0  ;;  %v4894_v36 = vpop.f32.mrb[52].mxu1 }
 0x9c8   : > { %v4901_v19 = vcombine.high %v4853_v46, %v4853_v46  ;;  %v4908_v1 = vrot.slane %v4853_v46, %v7804_v33  ;;  %v4855_v0 = vpop.f32.mrb[29].mxu0  ;;  %v6194_v48 = vpop.f32.mrb[53].mxu1 }
 0x9c9   : > { %v4857_v59 = vpop.f32.mrb[30].mxu0  ;;  %v4897_v17 = vpop.f32.mrb[54].mxu1  ;;  %v5046_v38 = vrot.slane %v4855_v0, %v7804_v33  ;;  %v5039_v16 = vcombine.high %v4855_v0, %v4855_v0  ;;  %v5024_v0 = vrot.slane %v9228_v60, 1  ;;  %v5025_v48 = vrot.slane %v9230_v50, 1 }
 0x9ca   : > { %v4915_v45 = vrot.slane %v4901_v19, %v7804_v33  ;;  %v4916_v54 = vcombine.high %v4908_v1, %v4908_v1  ;;  %v4924_v55 = vrot.slane %v4908_v1, %v7804_v33  ;;  %v4858_v57 = vpop.f32.mrb[31].mxu0  ;;  %v6195_v61 = vpop.f32.mrb[55].mxu1  ;;  %v5152_v19 = vadd.f32 %v9104_v35, %v4894_v36 }
 0x9cb   : > { %v5054_v22 = vcombine.high %v5046_v38, %v5046_v38  ;;  %v5062_v49 = vrot.slane %v5046_v38, %v7804_v33  ;;  %v5053_v6 = vrot.slane %v5039_v16, %v7804_v33  ;;  %v5026_v61 = vrot.slane %v9234_v21, 1 }
 0x9cc   : > { %v4917_v58 = vcombine.high %v4915_v45, %v4915_v45  ;;  %v4931_v32 = vrot.slane %v4915_v45, %v7804_v33  ;;  %v4938_v43 = vrot.slane %v4916_v54, %v7804_v33  ;;  %v4946_v56 = vcombine.high %v4924_v55, %v4924_v55 }
 0x9cd   : > { %v4958_v12 = vadd.f32 %v4924_v55, %v9222_v37  ;;  %v5076_v52 = vrot.slane %v5054_v22, %v7804_v33  ;;  %v5096_v53 = vadd.f32 %v5062_v49, %v5022_v11  ;;  %v5055_v46 = vcombine.high %v5053_v6, %v5053_v6 }
 0x9ce   : > { %v4945_v4 = vrot.slane %v4917_v58, %v7804_v33  ;;  %v4947_v8 = vcombine.high %v4931_v32, %v4931_v32  ;;  %v4948_v39 = vcombine.high %v4938_v43, %v4938_v43  ;;  %v4959_v3 = vadd.f32 %v4938_v43, %v9224_v20 }
 0x9cf   : > { %v4960_v30 = vadd.f32 %v4946_v56, %v9228_v60  ;;  %v4962_v25 = vadd.f32 %v4931_v32, %v9234_v21  ;;  %v5877_v2 = vmul.f32 -1.442695, %v4958_v12  ;;  %v5097_v1 = vadd.f32 %v5076_v52, %v5023_v41 }
 0x9d0   : > { %v4949_v15 = vcombine.high %v4945_v4, %v4945_v4  ;;  %v4961_v44 = vadd.f32 %v4948_v39, %v9230_v50  ;;  %v4963_v47 = vadd.f32 %v4945_v4, %v9236_v9  ;;  %v4964_v23 = vadd.f32 %v4947_v8, %v9240_v7 }
 0x9d1   : > { %6962 = vpow2.f32 %v5877_v2  ;;  %v5878_v62 = vmul.f32 -1.442695, %v4959_v3  ;;  %v5879_v34 = vmul.f32 -1.442695, %v4960_v30  ;;  %v5881_v29 = vmul.f32 -1.442695, %v4962_v25 }
 0x9d2   : > { %v4965_v13 = vadd.f32 %v4949_v15, %v9244_v28  ;;  %v5880_v14 = vmul.f32 -1.442695, %v4961_v44  ;;  %v5882_v63 = vmul.f32 -1.442695, %v4963_v47  ;;  %v5883_v24 = vmul.f32 -1.442695, %v4964_v23 }
 0x9d3   : > { %6964 = vpow2.f32 %v5878_v62  ;;  %v5069_v17 = vrot.slane %v5053_v6, %v7804_v33  ;;  %v5084_v45 = vcombine.high %v5062_v49, %v5062_v49  ;;  %v5885_v54 = vmul.f32 -1.442695, %v5096_v53 }
 0x9d4   : > { %6966 = vpow2.f32 %v5879_v34  ;;  %v5884_v18 = vmul.f32 -1.442695, %v4965_v13  ;;  %v5886_v55 = vmul.f32 -1.442695, %v5097_v1  ;;  %v5083_v58 = vrot.slane %v5055_v46, %v7804_v33 }
 0x9d5   : > { %6968 = vpow2.f32 %v5880_v14  ;;  %v5086_v32 = vcombine.high %v5076_v52, %v5076_v52  ;;  %v5154_v56 = vcombine.high %v5152_v19, %v5152_v19  ;;  %v5027_v35 = vrot.slane %v9236_v9, 1 }
 0x9d6   : > { %6970 = vpow2.f32 %v5881_v29  ;;  %v5028_v36 = vrot.slane %v9240_v7, 1  ;;  %v5161_v4 = vrot.slane %v5152_v19, %v7804_v33  ;;  %v5029_v8 = vrot.slane %v9244_v28, 1 }
 0x9d7   : > { %6972 = vpow2.f32 %v5882_v63  ;;  %v5085_v30 = vcombine.high %v5069_v17, %v5069_v17  ;;  %v5098_v25 = vadd.f32 %v5084_v45, %v5024_v0  ;;  %v5087_v15 = vcombine.high %v5083_v58, %v5083_v58 }
 0x9d8   : > { %6974 = vpow2.f32 %v5883_v24  ;;  %v5099_v44 = vadd.f32 %v5086_v32, %v5025_v48  ;;  %v5168_v62 = vrot.slane %v5154_v56, %v7804_v33  ;;  %v5100_v34 = vadd.f32 %v5069_v17, %v5026_v61 }
 0x9d9   : > { %6976 = vpow2.f32 %v5884_v18  ;;  %v5169_v29 = vcombine.high %v5161_v4, %v5161_v4  ;;  %v5101_v22 = vadd.f32 %v5083_v58, %v5027_v35  ;;  %v5102_v24 = vadd.f32 %v5085_v30, %v5028_v36 }
 0x9da   : > { %6978 = vpow2.f32 %v5885_v54  ;;  %v5887_v6 = vmul.f32 -1.442695, %v5098_v25  ;;  %v5103_v11 = vadd.f32 %v5087_v15, %v5029_v8  ;;  %v5888_v52 = vmul.f32 -1.442695, %v5099_v44 }
 0x9db   : > { %v6963_v59 = vpop.eup %6962  ;;  %v5889_v41 = vmul.f32 -1.442695, %v5100_v34  ;;  %v5170_v53 = vcombine.high %v5168_v62, %v5168_v62  ;;  %v5177_v46 = vrot.slane %v5161_v4, %v7804_v33  ;;  %v5890_v19 = vmul.f32 -1.442695, %v5101_v22 }
 0x9dc   : > { %v4990_v57 = vadd.f32 1.0, %v6963_v59  ;;  %v5191_v0 = vrot.slane %v5169_v29, %v7804_v33  ;;  %v5891_v48 = vmul.f32 -1.442695, %v5102_v24  ;;  %v5219_v17 = vrot.slane %v9222_v37, 2 }
 0x9dd   : > { %v6965_v43 = vpop.eup %6964  ;;  %v5220_v45 = vrot.slane %v9224_v20, 2  ;;  %v5892_v54 = vmul.f32 -1.442695, %v5103_v11  ;;  %v5184_v61 = vrot.slane %v5168_v62, %v7804_v33  ;;  %v5199_v56 = vcombine.high %v5177_v46, %v5177_v46 }
 0x9de   : > { %v6967_v12 = vpop.eup %6966  ;;  %v4991_v38 = vadd.f32 1.0, %v6965_v43  ;;  %6980 = vrcp.f32 %v4990_v57  ;;  %v5221_v57 = vrot.slane %v9228_v60, 2  ;;  %v5198_v43 = vrot.slane %v5170_v53, %v7804_v33 }
 0x9df   : > { %v6969_v39 = vpop.eup %6968  ;;  %v4992_v3 = vadd.f32 1.0, %v6967_v12  ;;  %6982 = vpow2.f32 %v5886_v55  ;;  %v5201_v12 = vcombine.high %v5191_v0, %v5191_v0  ;;  %v5222_v4 = vrot.slane %v9230_v50, 2 }
 0x9e0   : > { %v6971_v2 = vpop.eup %6970  ;;  %v4993_v16 = vadd.f32 1.0, %v6969_v39  ;;  %6984 = vrcp.f32 %v4991_v38  ;;  %v5223_v60 = vrot.slane %v9234_v21, 2  ;;  %v5225_v34 = vrot.slane %v9240_v7, 2 }
 0x9e1   : > { %v6973_v47 = vpop.eup %6972  ;;  %v4994_v23 = vadd.f32 1.0, %v6971_v2  ;;  %6986 = vrcp.f32 %v4992_v3  ;;  %v5224_v3 = vrot.slane %v9236_v9, 2  ;;  %v5226_v29 = vrot.slane %v9244_v28, 2 }
 0x9e2   : > { %v6975_v13 = vpop.eup %6974  ;;  %v4995_v14 = vadd.f32 1.0, %v6973_v47  ;;  %6988 = vrcp.f32 %v4993_v16  ;;  %v5200_v16 = vcombine.high %v5184_v61, %v5184_v61 }
 0x9e3   : > { %v6977_v63 = vpop.eup %6976  ;;  %v4996_v49 = vadd.f32 1.0, %v6975_v13  ;;  %6990 = vrcp.f32 %v4994_v23  ;;  %v5202_v23 = vcombine.high %v5198_v43, %v5198_v43 }
 0x9e4   : > { %v4997_v18 = vadd.f32 1.0, %v6977_v63  ;;  %6992 = vrcp.f32 %v4995_v14  ;;  %v6979_v1 = vpop.eup %6978 }
 0x9e5   : > { %6994 = vrcp.f32 %v4996_v49  ;;  %v5128_v35 = vadd.f32 1.0, %v6979_v1 }
 0x9e6   : > { %6996 = vrcp.f32 %v4997_v18 }
 0x9e7   : > { %6998 = vpow2.f32 %v5887_v6 }
 0x9e8   : > { %v6981_v59 = vpop.eup %6980  ;;  %7000 = vpow2.f32 %v5888_v52 }
 0x9e9   : > { %v6983_v55 = vpop.eup %6982  ;;  %v5211_v58 = vmul.f32 %v6981_v59, %v5177_v46  ;;  %7002 = vpow2.f32 %v5889_v41 }
 0x9ea   : > { %v6985_v32 = vpop.eup %6984  ;;  %7004 = vpow2.f32 %v5890_v19  ;;  %v5129_v6 = vadd.f32 1.0, %v6983_v55 }
 0x9eb   : > { %v6987_v36 = vpop.eup %6986  ;;  %v5212_v37 = vmul.f32 %v6985_v32, %v5191_v0  ;;  %v5235_v38 = vadd.f32 %v5219_v17, %v5211_v58  ;;  %7006 = vpow2.f32 %v5891_v48 }
 0x9ec   : > { %v6989_v20 = vpop.eup %6988  ;;  %v5213_v8 = vmul.f32 %v6987_v36, %v5199_v56  ;;  %7008 = vpow2.f32 %v5892_v54  ;;  %v9285_v54 = vstv %s5285_s27 }
 0x9ed   : > { %v6991_v39 = vpop.eup %6990  ;;  %v5214_v30 = vmul.f32 %v6989_v20, %v5201_v12  ;;  %v5236_v25 = vadd.f32 %v5220_v45, %v5212_v37  ;;  %7010 = vtanh.f32 %v5235_v38  ;;  %vm5287_vm15 = vcmp.eq.s32.totalorder %v9285_v54, 1 }
 0x9ee   : > { %v6993_v2 = vpop.eup %6992  ;;  %v5215_v15 = vmul.f32 %v6991_v39, %v5184_v61  ;;  %v5237_v44 = vadd.f32 %v5221_v57, %v5213_v8  ;;  %7012 = vrcp.f32 %v5128_v35 }
 0x9ef   : > { %v6995_v47 = vpop.eup %6994  ;;  %v5216_v62 = vmul.f32 %v6993_v2, %v5198_v43  ;;  %v5238_v50 = vadd.f32 %v5222_v4, %v5214_v30  ;;  %7014 = vtanh.f32 %v5236_v25 }
 0x9f0   : > { %v6997_v21 = vpop.eup %6996  ;;  %v5217_v13 = vmul.f32 %v6995_v47, %v5200_v16  ;;  %v5239_v14 = vadd.f32 %v5223_v60, %v5215_v15  ;;  %7016 = vtanh.f32 %v5237_v44 }
 0x9f1   : > { %v6999_v9 = vpop.eup %6998  ;;  %v5218_v22 = vmul.f32 %v6997_v21, %v5202_v23  ;;  %v5240_v63 = vadd.f32 %v5224_v3, %v5216_v62  ;;  %7018 = vtanh.f32 %v5238_v50 }
 0x9f2   : > { %v7001_v49 = vpop.eup %7000  ;;  %v5241_v24 = vadd.f32 %v5225_v34, %v5217_v13  ;;  %7020 = vtanh.f32 %v5239_v14  ;;  %v5130_v11 = vadd.f32 1.0, %v6999_v9 }
 0x9f3   : > { %v7003_v18 = vpop.eup %7002  ;;  %v5242_v7 = vadd.f32 %v5226_v29, %v5218_v22  ;;  %7022 = vtanh.f32 %v5240_v63  ;;  %v5131_v41 = vadd.f32 1.0, %v7001_v49 }
 0x9f4   : > { %v7005_v52 = vpop.eup %7004  ;;  %7024 = vtanh.f32 %v5241_v24  ;;  %v5132_v53 = vadd.f32 1.0, %v7003_v18 }
 0x9f5   : > { %v7007_v28 = vpop.eup %7006  ;;  %7026 = vtanh.f32 %v5242_v7  ;;  %v5133_v19 = vadd.f32 1.0, %v7005_v52 }
 0x9f6   : > { %v7009_v46 = vpop.eup %7008  ;;  %7028 = vrcp.f32 %v5129_v6  ;;  %v5134_v0 = vadd.f32 1.0, %v7007_v28 }
 0x9f7   : > { %v7011_v1 = vpop.eup %7010  ;;  %7030 = vrcp.f32 %v5130_v11  ;;  %v5135_v59 = vadd.f32 1.0, %v7009_v46 }
 0x9f8   : > { %v7013_v48 = vpop.eup %7012  ;;  %7032 = vrcp.f32 %v5131_v41 }
 0x9f9   : > { %v7015_v17 = vpop.eup %7014  ;;  %7034 = vrcp.f32 %v5132_v53  ;;  %v5251_v45 = vsub.f32 1.0, %v7013_v48  ;;  %v5267_v58 = vmul.f32 %v7013_v48, %v9144_v31 }
 0x9fa   : > { %v7017_v55 = vpop.eup %7016  ;;  %7036 = vrcp.f32 %v5133_v19 }
 0x9fb   : > { %v7019_v57 = vpop.eup %7018  ;;  %7038 = vrcp.f32 %v5134_v0  ;;  %v5259_v61 = vmul.f32 %v7011_v1, %v5251_v45 }
 0x9fc   : > { %v7021_v32 = vpop.eup %7020  ;;  %7040 = vrcp.f32 %v5135_v59 }
 0x9fd   : > { %v7023_v43 = vpop.eup %7022  ;;  %v5275_v56 = vadd.f32 %v5267_v58, %v5259_v61 }
 0x9fe   : > { %v7025_v35 = vpop.eup %7024 }
 0x9ff   : > { %v7027_v36 = vpop.eup %7026  ;;  %v5288_v12 = vsel %vm5287_vm15, %v5275_v56, %v9144_v31 }
 0xa00   : > { %v7029_v37 = vpop.eup %7028  ;;  %5296 = vst [vmem:[#allocation4 + $0x7] sm:$0x1] %v5288_v12 }
 0xa01   : > { %v7031_v38 = vpop.eup %7030  ;;  %v5252_v20 = vsub.f32 1.0, %v7029_v37  ;;  %v5268_v30 = vmul.f32 %v7029_v37, %v9158_v27 }
 0xa02   : > { %v7033_v4 = vpop.eup %7032  ;;  %v5253_v60 = vsub.f32 1.0, %v7031_v38  ;;  %v5269_v25 = vmul.f32 %v7031_v38, %v9165_v51 }
 0xa03   : > { %v7035_v8 = vpop.eup %7034  ;;  %v5254_v39 = vsub.f32 1.0, %v7033_v4  ;;  %v5260_v3 = vmul.f32 %v7015_v17, %v5252_v20  ;;  %v5270_v44 = vmul.f32 %v7033_v4, %v9170_v10 }
 0xa04   : > { %v7037_v2 = vpop.eup %7036  ;;  %v5255_v16 = vsub.f32 1.0, %v7035_v8  ;;  %v5261_v15 = vmul.f32 %v7017_v55, %v5253_v60  ;;  %v5271_v31 = vmul.f32 %v7035_v8, %v9178_v26 }
 0xa05   : > { %v7039_v47 = vpop.eup %7038  ;;  %v5256_v23 = vsub.f32 1.0, %v7037_v2  ;;  %v5262_v62 = vmul.f32 %v7019_v57, %v5254_v39  ;;  %v5272_v50 = vmul.f32 %v7037_v2, %v9188_v5  ;;  %v5276_v21 = vadd.f32 %v5268_v30, %v5260_v3 }
 0xa06   : > { %v7041_v34 = vpop.eup %7040  ;;  %v5257_v13 = vsub.f32 1.0, %v7039_v47  ;;  %v5263_v14 = vmul.f32 %v7021_v32, %v5255_v16  ;;  %v5273_v9 = vmul.f32 %v7039_v47, %v9196_v42  ;;  %v5277_v29 = vadd.f32 %v5269_v25, %v5261_v15 }
 0xa07   : > { %v5258_v22 = vsub.f32 1.0, %v7041_v34  ;;  %v5264_v63 = vmul.f32 %v7023_v43, %v5256_v23  ;;  %v5274_v49 = vmul.f32 %v7041_v34, %v9204_v40  ;;  %v5278_v24 = vadd.f32 %v5270_v44, %v5262_v62 }
 0xa08   : > { %v5265_v6 = vmul.f32 %v7025_v35, %v5257_v13  ;;  %v5279_v18 = vadd.f32 %v5271_v31, %v5263_v14  ;;  %v5289_v7 = vsel %vm5287_vm15, %v5276_v21, %v9158_v27  ;;  %v5290_v11 = vsel %vm5287_vm15, %v5277_v29, %v9165_v51 }
 0xa09   : > { %v5266_v52 = vmul.f32 %v7027_v36, %v5258_v22  ;;  %v5280_v41 = vadd.f32 %v5272_v50, %v5264_v63  ;;  %v5291_v28 = vsel %vm5287_vm15, %v5278_v24, %v9170_v10  ;;  %5297 = vst [vmem:[#allocation4 + $0xf] sm:$0x1] %v5289_v7  ;;  %5298 = vst [vmem:[#allocation4 + $0x17] sm:$0x1] %v5290_v11 }
 0xa0a   : > { %v5312_v53 = vcombine.low %v5288_v12, %v5289_v7  ;;  %v5281_v46 = vadd.f32 %v5273_v9, %v5265_v6  ;;  %v5292_v19 = vsel %vm5287_vm15, %v5279_v18, %v9178_v26  ;;  %5299 = vst [vmem:[#allocation4 + $0x1f] sm:$0x1] %v5291_v28  ;;  %v5313_v27 = vcombine.low %v5290_v11, %v5291_v28 }
 0xa0b   : > { %v5282_v1 = vadd.f32 %v5274_v49, %v5266_v52  ;;  %v5293_v51 = vsel %vm5287_vm15, %v5280_v41, %v9188_v5  ;;  %5300 = vst [vmem:[#allocation4 + $0x27] sm:$0x1] %v5292_v19  ;;  %v5364_v5 = vld [vmem:[#allocation4] sm:$0xff] }
 0xa0c   : > { %v5294_v10 = vsel %vm5287_vm15, %v5281_v46, %v9196_v42  ;;  %5301 = vst [vmem:[#allocation4 + $0x2f] sm:$0x1] %v5293_v51  ;;  %v5314_v0 = vcombine.low %v5292_v19, %v5293_v51  ;;  %v5322_v48 = vrot.slane %v5312_v53, %v7804_v33  ;;  %v5329_v59 = vrot.slane %v5313_v27, %v7804_v33 }
 0xa0d   : > { %v5295_v26 = vsel %vm5287_vm15, %v5282_v1, %v9204_v40  ;;  %5302 = vst [vmem:[#allocation4 + $0x37] sm:$0x1] %v5294_v10 }
 0xa0e   : > { %5303 = vst [vmem:[#allocation4 + $0x3f] sm:$0x1] %v5295_v26  ;;  %v5315_v17 = vcombine.low %v5294_v10, %v5295_v26  ;;  %v5344_v45 = vcombine.low %v5322_v48, %v5329_v59  ;;  %v5336_v57 = vrot.slane %v5314_v0, %v7804_v33 }
 0xa10   : > { %v5365_v55 = vld [vmem:[#allocation4 + $0x8] sm:$0xff]  ;;  %v5343_v42 = vrot.slane %v5315_v17, %v7804_v33  ;;  %v5366_v58 = vld [vmem:[#allocation4 + $0x10] sm:$0xff]  ;;  %v5352_v54 = vrot.slane %v5344_v45, %v7804_v33 }
 0xa11   : > { %v5912_v61 = vpack.c.bf16 %v5365_v55, %v5364_v5  ;;  %v5367_v32 = vld [vmem:[#allocation4 + $0x18] sm:$0xff] }
 0xa12   : > { %v5913_v43 = vpack.c.bf16 %v5367_v32, %v5366_v58  ;;  %v5345_v56 = vcombine.low %v5336_v57, %v5343_v42  ;;  %v5368_v35 = vld [vmem:[#allocation4 + $0x20] sm:$0xff] }
 0xa13   : > { %6212 = vmatprep.mubr.bf16.mxu0 %v5912_v61  ;;  %v5369_v36 = vld [vmem:[#allocation4 + $0x28] sm:$0xff] }
 0xa14   : > { %6213 = vmatmul.mubr.bf16.vlgmr.msra.gmra.mrb[32].mxu0 %v5913_v43  ;;  %v5914_v40 = vpack.c.bf16 %v5369_v36, %v5368_v35  ;;  %v5359_v12 = vrot.slane %v5345_v56, %v7804_v33  ;;  %v5370_v20 = vld [vmem:[#allocation4 + $0x30] sm:$0xff] }
 0xa15   : > { %v5371_v38 = vld [vmem:[#allocation4 + $0x38] sm:$0xff] }
 0xa16   : > { %6216 = vmatprep.mubr.bf16.mxu0 %v5914_v40  ;;  %v5360_v37 = vcombine.low %v5352_v54, %v5359_v12  ;;  %v5915_v4 = vpack.c.bf16 %v5371_v38, %v5370_v20 }
 0xa18   : > { %5362 = vst [vmem:[#allocation2] sm:$0xff] %v5360_v37  ;;  %5363 = vst [vmem:[#allocation15] sm:$0xff] %v5360_v37 }
 0xa1c   : > { %6217 = vmatmul.mubr.bf16.gmra.mrb[36].mxu0 %v5915_v4 }
 0xa1d   : > { %7272 = shalt.err (!%p7269_p3)
}
 0xa1e   : > { %s7273_s15 = scalar_lea.hbm %s9418_s9, 128  ;;  %p9479_p10 = pmov %p9478_p8 }
 0xa1f   : > { %p7274_p7 = scmp.ne.s32.totalorder %s9418_s9, %s7273_s15  ;;  %p7279_p5 = scmp.lt.u32.totalorder %s7273_s15, %s9418_s9 }
 0xa21   : > { %p7275_p13 = pnand %p7274_p7, %p9479_p10 }
 0xa23   : > { %p7276_p0 = pneg %p7275_p13 }
 0xa25   : > { %p7281_p11 = pnand %p7279_p5, %p7276_p0 }
 0xa27   : > { %7284 = shalt.err (!%p7281_p11)
}
 0xa28   : > { %6240 = dma.vmem_to_hbm [thread:$0]  (%p9478_p8), %s5576_s14, 128, %s9418_s9, [#allocation16]   ;;  %v5893_v33 = vld [vmem:[%s9416_s7] ss:$0 sm:$0xff] }
 0xa29   : > { %s5907_s14 = sshll.u32 %s7454_s13, 7  ;;  %s5561_s21 = sshll.u32 %s7666_s16, 4  ;;  %s9359_s21 = int_to_ptr.vmem [resolvable:$true] %s5561_s21 }
 0xa2a   : > { %s9356_s15 = scalar_lea.hbm %s9417_s8, %s5907_s14  ;;  %s5549_s3 = scalar_lea.sflag [#allocation7], %s7647_s19 }
 0xa2b   : > { %s7285_s24 = scalar_lea.vmem %s9359_s21, 1024  ;;  %s7379_s22 = smov [#allocation14]  }
 0xa2c   : > { %p7286_p12 = scmp.ne.s32.totalorder %s9359_s21, %s7285_s24  ;;  %s7289_s29 = sshll.u32 %s7379_s22, 4  ;;  %s7290_s29 = int_to_ptr.vmem [resolvable:$false] %s7289_s29 }
 0xa2d   : > { %s7291_s28 = scalar_lea.vmem %s7290_s29, 2048  ;;  %p7292_p6 = scmp.lt.s32.totalorder %s9359_s21, %s7290_s29 }
 0xa2e   : > { %p7287_p2 = pnand %p7286_p12, %p7595_p4  ;;  %p7293_p9 = scmp.lt.s32.totalorder %s7291_s28, %s7285_s24 }
 0xa30   : > { %p7288_p1 = pneg %p7287_p2  ;;  %p7294_p3 = por %p7293_p9, %p7292_p6 }
 0xa32   : > { %p7295_p7 = pnand %p7294_p3, %p7288_p1 }
 0xae7   : > { %v6214_v60 = vpop.f32.mrb[32].mxu0 }
 0xae8   : > { %v5518_v8 = vadd.f32 %v6214_v60, %v5893_v33  ;;  %v5509_v39 = vpop.f32.mrb[33].mxu0 }
 0xae9   : > { %v5510_v3 = vadd.f32 %v5893_v33, %v5509_v39  ;;  %v6215_v30 = vpop.f32.mrb[34].mxu0 }
 0xaea   : > { %5542 = vst [vmem:[%s7666_s16 + $0x10] sm:$0xff] %v5518_v8  ;;  %v5521_v25 = vadd.f32 %v6215_v30, %v5893_v33  ;;  %v5512_v2 = vpop.f32.mrb[35].mxu0 }
 0xaeb   : > { %5540 = vst [vmem:[%s7666_s16] sm:$0xff] %v5510_v3  ;;  %v5513_v16 = vadd.f32 %v5893_v33, %v5512_v2 }
 0xaec   : > { %5543 = vst [vmem:[%s7666_s16 + $0x18] sm:$0xff] %v5521_v25 }
 0xaed   : > { %5541 = vst [vmem:[%s7666_s16 + $0x8] sm:$0xff] %v5513_v16 }
 0xaef   : > { %v6218_v15 = vpop.f32.mrb[36].mxu0 }
 0xaf0   : > { %v5534_v44 = vadd.f32 %v6218_v15, %v5893_v33  ;;  %v5525_v31 = vpop.f32.mrb[37].mxu0 }
 0xaf1   : > { %v5526_v47 = vadd.f32 %v5893_v33, %v5525_v31  ;;  %v6219_v23 = vpop.f32.mrb[38].mxu0 }
 0xaf2   : > { %5546 = vst [vmem:[%s7666_s16 + $0x30] sm:$0xff] %v5534_v44  ;;  %v5537_v62 = vadd.f32 %v6219_v23, %v5893_v33  ;;  %v5528_v50 = vpop.f32.mrb[39].mxu0 }
 0xaf3   : > { %5544 = vst [vmem:[%s7666_s16 + $0x20] sm:$0xff] %v5526_v47  ;;  %v5529_v21 = vadd.f32 %v5893_v33, %v5528_v50 }
 0xaf4   : > { %5547 = vst [vmem:[%s7666_s16 + $0x38] sm:$0xff] %v5537_v62 }
 0xaf5   : > { %5545 = vst [vmem:[%s7666_s16 + $0x28] sm:$0xff] %v5529_v21 }
 0xaf6   : > { %7298 = shalt.err (!%p7295_p7)
}
 0xaf7   : > { %s7299_s16 = scalar_lea.hbm %s9356_s15, 1024  ;;  %s7303_s25 = scalar_lea.hbm %s9417_s8, 3072 }
 0xaf8   : > { %p7300_p10 = scmp.ne.s32.totalorder %s9356_s15, %s7299_s16  ;;  %p7304_p5 = scmp.lt.u32.totalorder %s9356_s15, %s9417_s8 }
 0xaf9   : > { %p7305_p11 = scmp.lt.u32.totalorder %s7303_s25, %s7299_s16  ;;  %p7307_p12 = scmp.lt.u32.totalorder %s7299_s16, %s9356_s15 }
 0xafa   : > { %p7301_p13 = pnand %p7300_p10, %p7595_p4 }
 0xafb   : > { %p7306_p8 = por %p7305_p11, %p7304_p5 }
 0xafc   : > { %p7302_p0 = pneg %p7301_p13 }
 0xafd   : > { %p7308_p2 = por %p7307_p12, %p7306_p8 }
 0xaff   : > { %p7309_p1 = pnand %p7308_p2, %p7302_p0 }
 0xb01   : > { %7312 = shalt.err (!%p7309_p1)
}
 0xb02   : > { %s7380_s17 = smov 128   ;;  %s7381_s24 = smov 384  }
 0xb03   : > { %s7382_s22 = smov 8   ;;  %p9480_p6 = scmp.eq.s32.totalorder %s7454_s13, 2 }
 0xb04   : > { %6238 = dma.vmem_to_hbm [thread:$0]  (%p7595_p4), %s9359_s21, 1024, %s9356_s15, %s5549_s3, %s7380_s17, %s7381_s24, %s7382_s22  }
 0xb05   : > { %7342 = dma.done.wait (%p9480_p6), [#allocation16], 128   ;;  %p9481_p9 = pmov %p9480_p6 }
 0xb07   : > { %7344 = vsyncadd (%p9481_p9), [#allocation16], 4294967168 }
 0xb08 PF: > { %s9482_s29 = sld [smem:[#allocation22_spill]]  ;;  %p6276_p3 = scmp.ge.s32.totalorder %s7363_s12, 2 }
 0xb09   : > { %s5591_s28 = sand.u32 1, %s7351_s30  }
 0xb0a   : > { %s5592_s16 = scalar_lea.sflag [#allocation7], %s5591_s28 }
 0xb0e   : > { %p9483_p7 = scmp.ne.s32.totalorder %s9482_s29, 0 }
 0xb10   : > { %p6262_p10 = pnand %p6276_p3, %p9483_p7 }
 0xb12   : > { %7346 = dma.done.wait (!%p6262_p10), %s5592_s16, 1024  }
 0xb13   : > { %7348 = vsyncadd (!%p6262_p10), %s5592_s16, 4294966272  ;;  %p26_p4 = scmp.ge.s32.totalorder %s7582_s1, 5   ;;  %s9484_s30 = smov %s7355_s10 }
 0xb14   : > { %s9485_s10 = smov %s7359_s11  ;;  %s9486_s11 = smov %s7591_s18 }
 0xb15   : > { %s9487_s12 = smov %s7582_s1  ;;  %28 = sbr.rel (!%p26_p4) target bundleno = 11 (0xb), region = 188 }
 0xb1c   :  { %5597 = vsyncpa [#allocation6], 1 }
 0xb1d   :  { %5599 = vsyncpa [#allocation6 + $0x1], 1 }
 0xb1e   :  { %5600 = vsyncpa [#allocation9], 1 }
 0xb1f   :  { %5601 = vsyncpa [#allocation12], 1 }
 0xb20   :  { %5602 = vsyncpa [#allocation7], 1 }
 0xb21   :  { %5604 = vsyncpa [#allocation7 + $0x1], 1 }
 0xb22   :  { %5605 = vsyncpa [#allocation16], 1 }

</bundles_post_ra>
